<compile_context>
chip_gen: v5e
topology: v5e:2x2
jax: 0.10.0
libtpu: 0.0.40
codegen_flags: <defaults>
</compile_context>

<pallas_src>
import functools
import math

import jax
import jax.numpy as jnp
from jax.experimental import pallas as pl
from jax.experimental.pallas import tpu as pltpu


_INV_SQRT2 = 1.0 / math.sqrt(2.0)
_SQRT_2_OVER_PI = math.sqrt(2.0 / math.pi)


def _gelu(x, approx_tanh=False):
    if approx_tanh:
        # tanh-approx GELU: transcendental lands on the EUP slot instead of a long erf
        # VALU polynomial.  Slight numerics deviation from nn.GELU()'s exact erf — opt-in.
        return 0.5 * x * (1.0 + jnp.tanh(_SQRT_2_OVER_PI * (x + 0.044715 * x * x * x)))
    # nn.GELU() default = exact erf formulation (computed in f32).
    return 0.5 * x * (1.0 + jax.lax.erf(x * _INV_SQRT2))


def mlp_kernel(x_ref, w1_ref, b1_ref, w2_ref, b2_ref, o_ref, *, approx_tanh):
    # x_ref:  (tm, C)        w1_ref: (C, th) bf16   b1_ref: (1, th) f32
    # w2_ref: (th, C) bf16   b2_ref: (1, C)  f32    o_ref:  (tm, C) f32 (revisited over k)
    k = pl.program_id(1)

    @pl.when(k == 0)
    def _():
        o_ref[...] = jnp.zeros_like(o_ref)

    # In-kernel cast of the activation tile to bf16 (no wrapper-side astype HBM sweep).
    xb = x_ref[...].astype(jnp.bfloat16)
    # First GEMM chunk (MXU, bf16 x bf16 -> f32 accum), bias, GELU in f32.
    h = jnp.dot(xb, w1_ref[...], preferred_element_type=jnp.float32)
    h = _gelu(h + b1_ref[...], approx_tanh)
    # Second GEMM chunk, accumulated directly into the (resident) f32 output block.
    o_ref[...] += jnp.dot(h.astype(w2_ref.dtype), w2_ref[...],
                          preferred_element_type=jnp.float32)

    @pl.when(k == pl.num_programs(1) - 1)
    def _():
        # TODO(synk): training-mode dropout (pltpu.prng_seed + prng_random_bits mask) not
        # implemented; identity matches PyTorch .eval() / dropout p=0.
        o_ref[...] += b2_ref[...]


def _choose_tile(total, target, align):
    """Largest multiple of `align` that divides `total`, capped at `target`."""
    if total <= align:
        return total
    t = min(target, total)
    t -= t % align
    while t >= align:
        if total % t == 0:
            return t
        t -= align
    return total


def prepare_mlp_params(w1, b1, w2, b2):
    """One-time conversion at weight-load time (hoists per-call astype HBM sweeps).

    Weights stored as (in_features, out_features) = transpose of nn.Linear.weight.
    """
    C, H = w1.shape
    assert w2.shape == (H, C)
    return (jnp.asarray(w1, jnp.bfloat16),
            jnp.asarray(b1, jnp.float32).reshape(1, H),
            jnp.asarray(w2, jnp.bfloat16),
            jnp.asarray(b2, jnp.float32).reshape(1, C))


def mlp_forward(x, w1, b1, w2, b2, *, tm=None, th=None, gelu_approx_tanh=False):
    """x: (B, T, C).  w1: (C, 4C) bf16, b1: (1, 4C) f32, w2: (4C, C) bf16, b2: (1, C) f32
    (as produced by prepare_mlp_params).  Returns (B, T, C) f32."""
    B, T, C = x.shape
    M = B * T
    H = w1.shape[1]
    assert w1.shape == (C, H) and w2.shape == (H, C)
    assert b1.shape == (1, H) and b2.shape == (1, C)

    # Row tile: >=512 rows per weight-slice re-stream keeps the per-step arithmetic
    # intensity above the v6e/v7x HBM rooflines (incl. 2-TC duplication on v7x).
    if tm is None:
        tm = _choose_tile(M, 512, 16)
    # Hidden tile: 1024 halves the number of "arbitrary" steps vs 512; 256-aligned for
    # the v6e/v7x 256x256 MXU (128-aligned fallback for other H).
    if th is None:
        th = _choose_tile(H, 1024, 256 if H % 256 == 0 else 128)
    assert M % tm == 0, f"M={M} must be divisible by row tile tm={tm}"
    assert H % th == 0, f"H={H} must be divisible by hidden tile th={th}"

    x2 = x.reshape(M, C)
    row_tiles = M // tm

    # Advisory cost: weights are re-streamed once per row tile; output is f32.
    w_bytes = w1.size * w1.dtype.itemsize + w2.size * w2.dtype.itemsize
    cost = pl.CostEstimate(
        flops=4 * M * C * H,                       # two GEMMs
        transcendentals=M * H,                     # one erf/tanh per hidden element
        bytes_accessed=(M * C * x2.dtype.itemsize
                        + row_tiles * w_bytes
                        + row_tiles * (b1.size * 4 + b2.size * 4)
                        + M * C * 4),
    )

    kernel = functools.partial(mlp_kernel, approx_tanh=gelu_approx_tanh)

    out = pl.pallas_call(
        kernel,
        out_shape=jax.ShapeDtypeStruct((M, C), jnp.float32),
        grid_spec=pltpu.PrefetchScalarGridSpec(
            num_scalar_prefetch=0,
            grid=(row_tiles, H // th),             # reduction (hidden) axis last
            in_specs=[
                pl.BlockSpec((tm, C), lambda i, k: (i, 0)),   # x rows
                pl.BlockSpec((C, th), lambda i, k: (0, k)),   # W1 slice
                pl.BlockSpec((1, th), lambda i, k: (0, k)),   # b1 slice
                pl.BlockSpec((th, C), lambda i, k: (k, 0)),   # W2 slice
                pl.BlockSpec((1, C), lambda i, k: (0, 0)),    # b2
            ],
            out_specs=pl.BlockSpec((tm, C), lambda i, k: (i, 0)),
        ),
        compiler_params=pltpu.CompilerParams(
            dimension_semantics=("parallel", "arbitrary"),
            vmem_limit_bytes=48 * 1024 * 1024,     # headroom under v7x's 64 MiB VMEM
        ),
        cost_estimate=cost,
    )(x2, w1, b1, w2, b2)
    return out.reshape(B, T, C)


def reference_mlp_f32(x, w1, b1, w2, b2):
    # Pure-f32 reference = PyTorch module semantics (eval mode).
    h = _gelu(x @ w1 + b1)
    return h @ w2 + b2


def reference_mlp_bf16(x, w1, b1, w2, b2):
    # Mirrors kernel numerics: bf16 GEMM operands, f32 accumulation / bias / GELU.
    xb = x.astype(jnp.bfloat16).astype(jnp.float32)
    w1b = w1.astype(jnp.bfloat16).astype(jnp.float32)
    w2b = w2.astype(jnp.bfloat16).astype(jnp.float32)
    h = _gelu(xb @ w1b + b1)
    h = h.astype(jnp.bfloat16).astype(jnp.float32)
    return h @ w2b + b2


if __name__ == "__main__":
    # config: n_embd=128 (lane-dense), bias=True, dropout=0.0; batch=2, seq=128.
    B, T, C = 2, 128, 128
    H = 4 * C

    key = jax.random.PRNGKey(0)
    kx, k1, k2, kb1, kb2 = jax.random.split(key, 5)

    x = jax.random.normal(kx, (B, T, C), dtype=jnp.float32)
    # "Linear" params stored as (in_features, out_features) = nn.Linear.weight.T.
    w1 = jax.random.normal(k1, (C, H), dtype=jnp.float32) * (1.0 / math.sqrt(C))
    b1 = jax.random.normal(kb1, (H,), dtype=jnp.float32) * 0.01
    w2 = jax.random.normal(k2, (H, C), dtype=jnp.float32) * (1.0 / math.sqrt(H))
    b2 = jax.random.normal(kb2, (C,), dtype=jnp.float32) * 0.01

    # One-time bf16 weight conversion (hoisted out of the per-call path).
    params = prepare_mlp_params(w1, b1, w2, b2)

    # tm=128 -> 2 parallel row steps; th=256 -> 2 accumulation steps (exercises init /
    # accumulate / finalize branches).  Production defaults are tm=512 / th=1024.
    y = mlp_forward(x, *params, tm=128, th=256)
    y = jax.block_until_ready(y)

    # Tight check vs a reference that mirrors the kernel's bf16-operand numerics.
    y_ref_bf16 = reference_mlp_bf16(x, w1, b1, w2, b2)
    err_bf16 = float(jnp.max(jnp.abs(y - y_ref_bf16)))
    assert jnp.allclose(y, y_ref_bf16, atol=2e-3, rtol=2e-3), (
        f"mismatch vs bf16-mirrored reference, max|err|={err_bf16}")

    # Looser check vs the pure-f32 PyTorch-equivalent reference (bounds bf16 drift).
    y_ref_f32 = reference_mlp_f32(x, w1, b1, w2, b2)
    err_f32 = float(jnp.max(jnp.abs(y - y_ref_f32)))
    assert jnp.allclose(y, y_ref_f32, atol=1e-1, rtol=1e-1), (
        f"mismatch vs f32 reference, max|err|={err_f32}")

    print("KERNEL_OK")
</pallas_src>

<mosaic_0001>
module attributes {stable_mosaic.version = 11 : i64} {
  func.func @mlp_kernel(%arg0: i32, %arg1: i32, %arg2: memref<128x128xf32, #tpu.memory_space<vmem>>, %arg3: memref<128x256xbf16, #tpu.memory_space<vmem>>, %arg4: memref<1x256xf32, #tpu.memory_space<vmem>>, %arg5: memref<256x128xbf16, #tpu.memory_space<vmem>>, %arg6: memref<1x128xf32, #tpu.memory_space<vmem>>, %arg7: memref<128x128xf32, #tpu.memory_space<vmem>>) attributes {dimension_semantics = [#tpu.dimension_semantics<parallel>, #tpu.dimension_semantics<arbitrary>], iteration_bounds = array<i64: 2, 2>, scalar_prefetch = 0 : i64, scratch_operands = 0 : i64, tpu.core_type = #tpu.core_type<tc>, window_params = [{transform_indices = @transform_0, window_bounds = array<i64: 128, 128>}, {transform_indices = @transform_1, window_bounds = array<i64: 128, 256>}, {transform_indices = @transform_2, window_bounds = array<i64: 1, 256>}, {transform_indices = @transform_3, window_bounds = array<i64: 256, 128>}, {pipeline_mode = #tpu.pipeline_mode<synchronous>, transform_indices = @transform_4, window_bounds = array<i64: 1, 128>}, {transform_indices = @transform_5, window_bounds = array<i64: 128, 128>}]} {
    %c0_i32 = arith.constant 0 : i32
    %0 = arith.cmpi eq, %arg1, %c0_i32 : i32
    %1 = arith.extui %0 : i1 to i32
    %c0_i32_0 = arith.constant 0 : i32
    %2 = arith.cmpi ne, %1, %c0_i32_0 : i32
    scf.if %2 {
      %cst_17 = arith.constant 0.000000e+00 : f32
      %27 = vector.broadcast %cst_17 : f32 to vector<128x128xf32>
      %c0_18 = arith.constant 0 : index
      %c0_19 = arith.constant 0 : index
      %28 = vector.load %arg7[%c0_18, %c0_19] : memref<128x128xf32, #tpu.memory_space<vmem>>, vector<128x128xf32>
      tpu.vector_store %arg7[%c0_18, %c0_19], %27 {strides = array<i32>} : memref<128x128xf32, #tpu.memory_space<vmem>>, vector<128x128xf32>,
    } else {
    }
    %c0 = arith.constant 0 : index
    %c0_1 = arith.constant 0 : index
    %3 = vector.load %arg2[%c0, %c0_1] : memref<128x128xf32, #tpu.memory_space<vmem>>, vector<128x128xf32>
    %4 = arith.truncf %3 : vector<128x128xf32> to vector<128x128xbf16>
    %c0_2 = arith.constant 0 : index
    %c0_3 = arith.constant 0 : index
    %5 = vector.load %arg3[%c0_2, %c0_3] : memref<128x256xbf16, #tpu.memory_space<vmem>>, vector<128x256xbf16>
    %cst = arith.constant dense<0.000000e+00> : vector<128x256xf32>
    %6 = tpu.matmul %4, %5, %cst {dimension_numbers = #tpu.dot_dimension_numbers<[1], [0], [0], [1], [0, 0, 1, 1], [], []>} : vector<128x128xbf16>, vector<128x256xbf16>, vector<128x256xf32> -> vector<128x256xf32>
    %c0_4 = arith.constant 0 : index
    %c0_5 = arith.constant 0 : index
    %7 = vector.load %arg4[%c0_4, %c0_5] : memref<1x256xf32, #tpu.memory_space<vmem>>, vector<1x256xf32>
    %8 = vector.broadcast %7 : vector<1x256xf32> to vector<128x256xf32>
    %9 = arith.addf %6, %8 : vector<128x256xf32>
    %cst_6 = arith.constant 5.000000e-01 : f32
    %10 = vector.broadcast %cst_6 : f32 to vector<128x256xf32>
    %11 = arith.mulf %10, %9 : vector<128x256xf32>
    %cst_7 = arith.constant 0.707106769 : f32
    %12 = vector.broadcast %cst_7 : f32 to vector<128x256xf32>
    %13 = arith.mulf %9, %12 : vector<128x256xf32>
    %14 = math.erf %13 : vector<128x256xf32>
    %cst_8 = arith.constant 1.000000e+00 : f32
    %15 = vector.broadcast %cst_8 : f32 to vector<128x256xf32>
    %16 = arith.addf %15, %14 : vector<128x256xf32>
    %17 = arith.mulf %11, %16 : vector<128x256xf32>
    %c0_9 = arith.constant 0 : index
    %c0_10 = arith.constant 0 : index
    %18 = vector.load %arg7[%c0_9, %c0_10] : memref<128x128xf32, #tpu.memory_space<vmem>>, vector<128x128xf32>
    %19 = arith.truncf %17 : vector<128x256xf32> to vector<128x256xbf16>
    %c0_11 = arith.constant 0 : index
    %c0_12 = arith.constant 0 : index
    %20 = vector.load %arg5[%c0_11, %c0_12] : memref<256x128xbf16, #tpu.memory_space<vmem>>, vector<256x128xbf16>
    %cst_13 = arith.constant dense<0.000000e+00> : vector<128x128xf32>
    %21 = tpu.matmul %19, %20, %cst_13 {dimension_numbers = #tpu.dot_dimension_numbers<[1], [0], [0], [1], [0, 0, 1, 1], [], []>} : vector<128x256xbf16>, vector<256x128xbf16>, vector<128x128xf32> -> vector<128x128xf32>
    %22 = arith.addf %18, %21 : vector<128x128xf32>
    %c0_14 = arith.constant 0 : index
    %c0_15 = arith.constant 0 : index
    %23 = vector.load %arg7[%c0_14, %c0_15] : memref<128x128xf32, #tpu.memory_space<vmem>>, vector<128x128xf32>
    tpu.vector_store %arg7[%c0_14, %c0_15], %22 {strides = array<i32>} : memref<128x128xf32, #tpu.memory_space<vmem>>, vector<128x128xf32>,
    %c1_i32 = arith.constant 1 : i32
    %24 = arith.cmpi eq, %arg1, %c1_i32 : i32
    %25 = arith.extui %24 : i1 to i32
    %c0_i32_16 = arith.constant 0 : i32
    %26 = arith.cmpi ne, %25, %c0_i32_16 : i32
    scf.if %26 {
      %c0_17 = arith.constant 0 : index
      %c0_18 = arith.constant 0 : index
      %27 = vector.load %arg7[%c0_17, %c0_18] : memref<128x128xf32, #tpu.memory_space<vmem>>, vector<128x128xf32>
      %c0_19 = arith.constant 0 : index
      %c0_20 = arith.constant 0 : index
      %28 = vector.load %arg6[%c0_19, %c0_20] : memref<1x128xf32, #tpu.memory_space<vmem>>, vector<1x128xf32>
      %29 = vector.broadcast %28 : vector<1x128xf32> to vector<128x128xf32>
      %30 = arith.addf %27, %29 : vector<128x128xf32>
      %c0_21 = arith.constant 0 : index
      %c0_22 = arith.constant 0 : index
      %31 = vector.load %arg7[%c0_21, %c0_22] : memref<128x128xf32, #tpu.memory_space<vmem>>, vector<128x128xf32>
      tpu.vector_store %arg7[%c0_21, %c0_22], %30 {strides = array<i32>} : memref<128x128xf32, #tpu.memory_space<vmem>>, vector<128x128xf32>,
    } else {
    }
    return
  }
  func.func @transform_0(%arg0: i32, %arg1: i32) -> (i32, i32) {
    %c0_i32 = arith.constant 0 : i32
    %c0_i32_0 = arith.constant 0 : i32
    return %arg0, %c0_i32 : i32, i32
  }
  func.func @transform_1(%arg0: i32, %arg1: i32) -> (i32, i32) {
    %c0_i32 = arith.constant 0 : i32
    %c0_i32_0 = arith.constant 0 : i32
    return %c0_i32, %arg1 : i32, i32
  }
  func.func @transform_2(%arg0: i32, %arg1: i32) -> (i32, i32) {
    %c0_i32 = arith.constant 0 : i32
    %c0_i32_0 = arith.constant 0 : i32
    return %c0_i32, %arg1 : i32, i32
  }
  func.func @transform_3(%arg0: i32, %arg1: i32) -> (i32, i32) {
    %c0_i32 = arith.constant 0 : i32
    %c0_i32_0 = arith.constant 0 : i32
    return %arg1, %c0_i32 : i32, i32
  }
  func.func @transform_4(%arg0: i32, %arg1: i32) -> (i32, i32) {
    %c0_i32 = arith.constant 0 : i32
    %c0_i32_0 = arith.constant 0 : i32
    %c0_i32_1 = arith.constant 0 : i32
    return %c0_i32, %c0_i32_0 : i32, i32
  }
  func.func @transform_5(%arg0: i32, %arg1: i32) -> (i32, i32) {
    %c0_i32 = arith.constant 0 : i32
    %c0_i32_0 = arith.constant 0 : i32
    return %arg0, %c0_i32 : i32, i32
  }
}

</mosaic_0001>

<bundles_post_ra>
// kernel: tpu_custom_call.1
= control target key start
LH: loop header
LB: loop body
LE: loop exit
PB: predicated region body
PF: predicated region fallthrough
CT: control target
= control target key end

     0   :  { %s4980_s0 = inlined_call_operand.hbm [shape: f32[256,128], index: 0, kind: input, shape index: {}]   ;;  %s4981_s1 = inlined_call_operand.hbm [shape: bf16[128,512], index: 1, kind: input, shape index: {}]   ;;  %s4982_s2 = inlined_call_operand.hbm [shape: f32[1,512], index: 2, kind: input, shape index: {}]   ;;  %s4983_s3 = inlined_call_operand.hbm [shape: bf16[512,128], index: 3, kind: input, shape index: {}]   ;;  %s4984_s4 = inlined_call_operand.vmem [shape: f32[1,128], index: 4, kind: input, shape index: {}]   ;;  %s4985_s5 = inlined_call_operand.hbm [shape: f32[256,128], index: 5, kind: output, shape index: {}]  }
   0x1   :  { %5011 = sst [smem:[#allocation52_spill]] %s4980_s0 }
   0x2   :  { %5012 = sst [smem:[#allocation53_spill]] %s4981_s1 }
   0x3   :  { %5013 = sst [smem:[#allocation54_spill]] %s4984_s4 }
   0x4   :  { %5014 = sst [smem:[#allocation55_spill]] %s4985_s5 }
   0x5   :  { %10 = vsyncpa [#allocation3], 0 }
   0x6   :  { %12 = vsyncpa [#allocation3 + $0x1], 0 }
   0x7   :  { %13 = vsyncpa [#allocation6], 0 }
   0x8   :  { %15 = vsyncpa [#allocation6 + $0x1], 0 }
   0x9   :  { %16 = vsyncpa [#allocation9], 0 }
   0xa   :  { %18 = vsyncpa [#allocation9 + $0x1], 0 }
   0xb   :  { %19 = vsyncpa [#allocation4], 0 }
   0xc   :  { %21 = vsyncpa [#allocation4 + $0x1], 0  ;;  %s3250_s18 = smov 0   ;;  %s3252_s19 = smov 0  }
   0xd   :  { %s3254_s20 = smov 0   ;;  %s3256_s21 = smov 0  }
   0xe   :  { %s3258_s22 = smov 0   ;;  %s3260_s23 = smov 0  }
   0xf   :  { %s3262_s24 = smov 0   ;;  %s3264_s25 = smov 0  }
  0x10   :  { %s3266_s26 = smov 0   ;;  %s3268_s27 = smov 0  }
  0x11   :  { %s3270_s28 = smov 0  }
  0x12 LB: > { %5015 = sst [smem:[#allocation15_spill]] %s3178_s20  ;;  %p54_p0 = scmp.eq.s32.totalorder %s3210_s28, 0  ;;  %s3210_s28 = sphi %s3270_s28, %s27_s28   ;;  %s3206_s27 = sphi %s3268_s27, %s5162_s27   ;;  %s3202_s26 = sphi %s3266_s26, %s5168_s26   ;;  %s3198_s25 = sphi %s3264_s25, %s5160_s25   ;;  %s3194_s24 = sphi %s3262_s24, %s5167_s24   ;;  %s3190_s23 = sphi %s3260_s23, %s5159_s23   ;;  %s3186_s22 = sphi %s3258_s22, %s5166_s22   ;;  %s3182_s21 = sphi %s3256_s21, %s5165_s21   ;;  %s3178_s20 = sphi %s3254_s20, %s5157_s20   ;;  %s3174_s19 = sphi %s3252_s19, %s5164_s19   ;;  %s3170_s18 = sphi %s3250_s18, %s5163_s18  }
  0x13   : > { %5016 = sst [smem:[#allocation16_spill]] %s3182_s21  ;;  %p79_p1 = scmp.ne.s32.totalorder %s3178_s20, %s3174_s19 }
  0x14   : > { %5017 = sst [smem:[#allocation17_spill]] %s3190_s23  ;;  %p85_p2 = scmp.ne.s32.totalorder %s3174_s19, %s3170_s18 }
  0x15   : > { %5018 = sst [smem:[#allocation18_spill]] %s3194_s24  ;;  %p4990_p3 = scmp.lt.s32.totalorder %s3210_s28, 4 }
  0x16   : > { %5019 = sst [smem:[#allocation19_spill]] %s3198_s25  ;;  %p81_p4 = por %p79_p1, %p54_p0 }
  0x17   : > { %5020 = sst [smem:[#allocation20_spill]] %s3206_s27  ;;  %s233_s30 = sand.u32 1, %s3210_s28  }
  0x18   : > { %5021 = sst [smem:[#allocation21_spill]] %s3210_s28  ;;  %s3316_s6 = sand.u32 1, %s3178_s20  }
  0x19   : > { %s4986_s7 = sshll.u32 %s3316_s6, 7  ;;  %s2735_s8 = sshll.u32 %s3202_s26, 3 }
  0x1a   : > { %s5022_s1 = sld [smem:[#allocation53_spill]]  ;;  %s237_s13 = scalar_lea.vmem [#allocation5], %s4986_s7 }
  0x1b   : > { %s245_s14 = sshll.u32 %s237_s13, 4  ;;  %p3327_p5 = pnand %p4990_p3, %p81_p4  ;;  %s246_s14 = int_to_ptr.vmem [resolvable:$true] %s245_s14 }
  0x1c   : > { %p2561_p6 = scmp.ge.s32.totalorder %s3210_s28, 1  ;;  %p294_p7 = scmp.lt.s32.totalorder %s3210_s28, 5 }
  0x1d   : > { %s3333_s16 = scalar_lea.sflag [#allocation6], %s233_s30  ;;  %s3212_s17 = smov 256  }
  0x1e   : > { %s4988_s9 = smov 8   ;;  %p3340_p8 = pnand %p2561_p6, %p294_p7 }
  0x1f   : > { %s3345_s30 = sadd.s32 4294967295, %s3210_s28   ;;  %s36_s13 = sadd.s32 1, %s3202_s26 }
  0x20   : > { %s242_s11 = scalar_lea.hbm %s5022_s1, %s2735_s8  ;;  %s4987_s8 = smov 128  }
  0x21   : > { %s243_s12 = sshll.u32 %s242_s11, 4  ;;  %s2547_s11 = sadd.s32 4294967294, %s3210_s28   ;;  %s244_s12 = int_to_ptr.hbm [resolvable:$true] %s243_s12 }
  0x22   : > { %2786 = dma.hbm_to_vmem [thread:$0]  (!%p3327_p5), %s244_s12, 2048, %s246_s14, %s3333_s16, %s3212_s17, %s4987_s8, %s4988_s9  }
  0x23   : > { %s39_s7 = sadd.s32 1, %s3206_s27  ;;  %p37_p9 = scmp.ge.s32.totalorder %s36_s13, 2 }
  0x24   : > { %s46_s29 = sadd.s32 1, %s3190_s23  ;;  %p53_p10 = scmp.ne.s32.totalorder %s3190_s23, %s3186_s22 }
  0x25   : > { %p59_p11 = scmp.ne.s32.totalorder %s3186_s22, %s3182_s21  ;;  %s5170_s13 = smov (%p37_p9, %s36_s13), 0 }
  0x26   : > { %5025 = sst [smem:[#allocation22_spill]] %s5170_s13  ;;  %s5172_s7 = smov (!%p37_p9, %s39_s7), %s3206_s27 }
  0x27   : > { %p3363_p12 = por %p54_p0, %p53_p10  ;;  %p60_p13 = scmp.eq.s32.totalorder %s3345_s30, 0 }
  0x28   : > { %p41_p1 = scmp.ge.s32.totalorder %s5172_s7, 2  ;;  %s69_s14 = ssub.s32 %s3202_s26, %s5170_s13 }
  0x29   : > { %p3373_p4 = por %p60_p13, %p59_p11  ;;  %p70_p6 = scmp.eq.s32.totalorder %s69_s14, 0 }
  0x2a   : > { %s5174_s7 = smov (%p41_p1, %s5172_s7), 0  ;;  %s5029_s8 = sadd.s32 1, %s3178_s20 }
  0x2b   : > { %5028 = sst [smem:[#allocation23_spill]] %s5174_s7  ;;  %s43_s1 = ssub.s32 %s3206_s27, %s5174_s7 }
  0x2c   : > { %s3382_s9 = scalar_select %p70_p6, %s3178_s20, %s5029_s8  }
  0x2d   : > { %p3389_p0 = por %p85_p2, %p60_p13  ;;  %p44_p7 = scmp.eq.s32.totalorder %s43_s1, 0 }
  0x2e   : > { %5030 = sst [smem:[#allocation24_spill]] %s3382_s9  ;;  %p182_p9 = scmp.eq.s32.totalorder %s3345_s30, 3 }
  0x2f   : > { %p188_p3 = scmp.eq.s32.totalorder %s2547_s11, 3  ;;  %s211_s14 = sand.u32 1, %s3190_s23  }
  0x30   : > { %s3396_s13 = scalar_select %p44_p7, %s3190_s23, %s46_s29  }
  0x31   : > { %p3401_p1 = por %p182_p9, %p53_p10  ;;  %p3408_p2 = por %p188_p3, %p59_p11 }
  0x32   : > { %5032 = sst [smem:[#allocation25_spill]] %s3396_s13  ;;  %s2550_s7 = sshll.u32 %s211_s14, 7 }
  0x33   : > { %s5033_s8 = scalar_select %p3401_p1, 1, 0 }
  0x34   : > { %s5035_s18 = scalar_select %p3408_p2, 1, 0 }
  0x35   : > { %5034 = sst [smem:[#allocation26_spill]] %s5033_s8  ;;  %s2734_s9 = sshll.u32 %s3206_s27, 7 }
  0x36   : > { %5036 = sst [smem:[#allocation27_spill]] %s5035_s18  ;;  %s215_s11 = scalar_lea.vmem [#allocation2], %s2550_s7 }
  0x37   : > { %s5037_s0 = sld [smem:[#allocation52_spill]]  ;;  %s223_s29 = sshll.u32 %s215_s11, 4  ;;  %s224_s29 = int_to_ptr.vmem [resolvable:$true] %s223_s29 }
  0x38   : > { %p5038_p3 = scmp.lt.s32.totalorder %s3210_s28, 4  ;;  %s2556_s23 = sshll.u32 %s3316_s6, 1 }
  0x39   : > { %s2557_s18 = sshll.u32 %s3202_s26, 1  ;;  %s212_s21 = scalar_lea.sflag [#allocation3], %s211_s14 }
  0x3a   : > { %p2781_p10 = pnand %p5038_p3, %p3363_p12  ;;  %s5039_s27 = smov 8  }
  0x3b   : > { %s5040_s8 = smov 128   ;;  %s259_s1 = scalar_lea.vmem [#allocation7], %s2556_s23 }
  0x3c   : > { %s2736_s12 = sshll.u32 %s3202_s26, 7  ;;  %s5041_s4 = sshll.u32 %s3316_s6, 7 }
  0x3d   : > { %s220_s25 = scalar_lea.hbm %s5037_s0, %s2734_s9  ;;  %s263_s9 = scalar_lea.hbm %s4982_s2, %s2557_s18 }
  0x3e   : > { %s221_s13 = sshll.u32 %s220_s25, 4  ;;  %s267_s25 = sshll.u32 %s259_s1, 4  ;;  %s222_s13 = int_to_ptr.hbm [resolvable:$true] %s221_s13  ;;  %s268_s25 = int_to_ptr.vmem [resolvable:$true] %s267_s25 }
  0x3f   : > { %2783 = dma.hbm_to_vmem [thread:$0]  (!%p2781_p10), %s222_s13, 2048, %s224_s29, %s212_s21, %s5040_s8, %s5040_s8, %s5039_s27  }
  0x40   : > { %s265_s11 = sshll.u32 %s263_s9, 4  ;;  %s283_s28 = scalar_lea.hbm %s4983_s3, %s2736_s12  ;;  %s266_s11 = int_to_ptr.hbm [resolvable:$true] %s265_s11 }
  0x41   : > { %2789 = dma.hbm_to_vmem [thread:$0]  (!%p3327_p5), %s266_s11, 32, %s268_s25, %s3333_s16  }
  0x42   : > { %s278_s24 = scalar_lea.vmem [#allocation8], %s5041_s4  ;;  %s284_s27 = sshll.u32 %s283_s28, 4  ;;  %s285_s27 = int_to_ptr.hbm [resolvable:$true] %s284_s27 }
  0x43   : > { %s286_s21 = sshll.u32 %s278_s24, 4  ;;  %s275_s13 = scalar_lea.sflag [#allocation9], %s3316_s6  ;;  %s287_s21 = int_to_ptr.vmem [resolvable:$true] %s286_s21 }
  0x44   : > { %s3215_s23 = smov 64   ;;  %s3216_s8 = smov 4  }
  0x45   : > { %2792 = dma.hbm_to_vmem [thread:$0]  (!%p3327_p5), %s285_s27, 2048, %s287_s21, %s275_s13, %s3215_s23, %s3215_s23, %s3216_s8  }
  0x46   : > { %298 = sbr.rel (%p3340_p8) target bundleno = 837 (0x345), region = 40 }
  0x4b   : > { %s3443_s16 = sand.u32 1, %s3186_s22  }
  0x4c   : > { %s2562_s0 = sshll.u32 %s3443_s16, 7  ;;  %s301_s4 = scalar_lea.sflag [#allocation3], %s3443_s16 }
  0x4d   : > { %s3447_s24 = scalar_lea.vmem [#allocation2], %s2562_s0 }
  0x4e   : > { %3153 = dma.done.wait (%p3373_p4), %s301_s4, 2048  }
  0x4f   : > { %3155 = vsyncadd (%p3373_p4), %s301_s4, 4294965248  ;;  %s310_s28 = sand.u32 1, %s3345_s30   ;;  %s312_s6 = sand.u32 1, %s3174_s19  }
  0x50   : > { %s2563_s15 = sshll.u32 %s312_s6, 7  ;;  %s311_s10 = scalar_lea.sflag [#allocation6], %s310_s28 }
  0x51   : > { %s3455_s18 = scalar_lea.vmem [#allocation5], %s2563_s15 }
  0x52   : > { %3157 = dma.done.wait (%p3389_p0), %s311_s10, 2080  }
  0x53   : > { %3159 = vsyncadd (%p3389_p0), %s311_s10, 4294965216  ;;  %s2564_s29 = sshll.u32 %s312_s6, 1  ;;  %s331_s17 = scalar_lea.sflag [#allocation9], %s312_s6 }
  0x54   : > { %s3461_s20 = scalar_lea.vmem [#allocation7], %s2564_s29  ;;  %s3463_s7 = scalar_lea.vmem [#allocation8], %s2563_s15 }
  0x55   : > { %3161 = dma.done.wait (%p3389_p0), %s331_s17, 2048  }
  0x56   : > { %3163 = vsyncadd (%p3389_p0), %s331_s17, 4294965248  ;;  %s3469_s30 = scalar_lea.vmem [#allocation10], %s2562_s0  ;;  %s5042_s9 = sld [smem:[#allocation18_spill]] }
  0x5c   : > { %p2567_p5 = scmp.ne.s32.totalorder %s5042_s9, 0 }
  0x5e   : > { %385 = sbr.rel (%p2567_p5) target bundleno = 116 (0x74), region = 60 }
  0x63   : > { %v3217_v0 = vmov 0.0  }
  0x64   : > { %386 = vst [vmem:[%s3469_s30] sm:$0xff] %v3217_v0 }
  0x65   : > { %387 = vst [vmem:[%s3469_s30 + $0x8] sm:$0xff] %v3217_v0 }
  0x66   : > { %388 = vst [vmem:[%s3469_s30 + $0x10] sm:$0xff] %v3217_v0 }
  0x67   : > { %389 = vst [vmem:[%s3469_s30 + $0x18] sm:$0xff] %v3217_v0 }
  0x68   : > { %390 = vst [vmem:[%s3469_s30 + $0x20] sm:$0xff] %v3217_v0 }
  0x69   : > { %391 = vst [vmem:[%s3469_s30 + $0x28] sm:$0xff] %v3217_v0 }
  0x6a   : > { %392 = vst [vmem:[%s3469_s30 + $0x30] sm:$0xff] %v3217_v0 }
  0x6b   : > { %393 = vst [vmem:[%s3469_s30 + $0x38] sm:$0xff] %v3217_v0 }
  0x6c   : > { %394 = vst [vmem:[%s3469_s30 + $0x40] sm:$0xff] %v3217_v0 }
  0x6d   : > { %395 = vst [vmem:[%s3469_s30 + $0x48] sm:$0xff] %v3217_v0 }
  0x6e   : > { %396 = vst [vmem:[%s3469_s30 + $0x50] sm:$0xff] %v3217_v0 }
  0x6f   : > { %397 = vst [vmem:[%s3469_s30 + $0x58] sm:$0xff] %v3217_v0 }
  0x70   : > { %398 = vst [vmem:[%s3469_s30 + $0x60] sm:$0xff] %v3217_v0 }
  0x71   : > { %399 = vst [vmem:[%s3469_s30 + $0x68] sm:$0xff] %v3217_v0 }
  0x72   : > { %400 = vst [vmem:[%s3469_s30 + $0x70] sm:$0xff] %v3217_v0 }
  0x73   : > { %401 = vst [vmem:[%s3469_s30 + $0x78] sm:$0xff] %v3217_v0 }
  0x74 PF: > { %v2626_v1 = vld [vmem:[%s3455_s18 + $0x70] sm:$0xf]  ;;  %v2752_v2 = vld [vmem:[%s3455_s18 + $0x74] sm:$0xf0]  ;;  %v2751_v3 = vld [vmem:[%s3455_s18 + $0x74] sm:$0xf] }
  0x75   : > { %v2627_v4 = vor.u32 %v2752_v2, %v2626_v1  ;;  %v2628_v5 = vld [vmem:[%s3455_s18 + $0x78] sm:$0xf0]  ;;  %v2618_v6 = vld [vmem:[%s3455_s18 + $0x60] sm:$0xf]  ;;  %v2750_v7 = vld [vmem:[%s3455_s18 + $0x64] sm:$0xf0] }
  0x76   : > { %v2631_v8 = vor.u32 %v2751_v3, %v2628_v5  ;;  %v2749_v9 = vld [vmem:[%s3455_s18 + $0x64] sm:$0xf]  ;;  %v2620_v10 = vld [vmem:[%s3455_s18 + $0x68] sm:$0xf0]  ;;  %v2619_v11 = vor.u32 %v2750_v7, %v2618_v6  ;;  %v2610_v13 = vld [vmem:[%s3455_s18 + $0x50] sm:$0xf] }
  0x77   : > { %528 = vmatpush.bf16.msra.mxu0 %v2627_v4  ;;  %v2623_v12 = vor.u32 %v2749_v9, %v2620_v10  ;;  %v2748_v14 = vld [vmem:[%s3455_s18 + $0x54] sm:$0xf0]  ;;  %v2747_v15 = vld [vmem:[%s3455_s18 + $0x54] sm:$0xf]  ;;  %v2612_v16 = vld [vmem:[%s3455_s18 + $0x58] sm:$0xf0] }
  0x78   : > { %577 = vmatpush.bf16.msra.mxu1 %v2631_v8  ;;  %v2611_v17 = vor.u32 %v2748_v14, %v2610_v13  ;;  %v2615_v18 = vor.u32 %v2747_v15, %v2612_v16  ;;  %v2602_v19 = vld [vmem:[%s3455_s18 + $0x40] sm:$0xf]  ;;  %v2746_v20 = vld [vmem:[%s3455_s18 + $0x44] sm:$0xf0]  ;;  %v2745_v21 = vld [vmem:[%s3455_s18 + $0x44] sm:$0xf] }
  0x79   : > { %v2604_v22 = vld [vmem:[%s3455_s18 + $0x48] sm:$0xf0]  ;;  %v2603_v23 = vor.u32 %v2746_v20, %v2602_v19  ;;  %v2594_v25 = vld [vmem:[%s3455_s18 + $0x30] sm:$0xf]  ;;  %v2744_v26 = vld [vmem:[%s3455_s18 + $0x34] sm:$0xf0] }
  0x7a   : > { %v2607_v24 = vor.u32 %v2745_v21, %v2604_v22  ;;  %v2743_v27 = vld [vmem:[%s3455_s18 + $0x34] sm:$0xf]  ;;  %v2596_v28 = vld [vmem:[%s3455_s18 + $0x38] sm:$0xf0]  ;;  %v2595_v29 = vor.u32 %v2744_v26, %v2594_v25  ;;  %v2586_v31 = vld [vmem:[%s3455_s18 + $0x20] sm:$0xf] }
  0x7b   : > { %529 = vmatpush.bf16.msra.mxu0 %v2619_v11  ;;  %v2599_v30 = vor.u32 %v2743_v27, %v2596_v28  ;;  %v2742_v32 = vld [vmem:[%s3455_s18 + $0x24] sm:$0xf0]  ;;  %v2741_v33 = vld [vmem:[%s3455_s18 + $0x24] sm:$0xf]  ;;  %v2588_v34 = vld [vmem:[%s3455_s18 + $0x28] sm:$0xf0] }
  0x7c   : > { %578 = vmatpush.bf16.msra.mxu1 %v2623_v12  ;;  %v2587_v35 = vor.u32 %v2742_v32, %v2586_v31  ;;  %v2591_v36 = vor.u32 %v2741_v33, %v2588_v34  ;;  %v2578_v37 = vld [vmem:[%s3455_s18 + $0x10] sm:$0xf]  ;;  %v2740_v38 = vld [vmem:[%s3455_s18 + $0x14] sm:$0xf0]  ;;  %v2739_v39 = vld [vmem:[%s3455_s18 + $0x14] sm:$0xf] }
  0x7d   : > { %v2580_v40 = vld [vmem:[%s3455_s18 + $0x18] sm:$0xf0]  ;;  %v2579_v41 = vor.u32 %v2740_v38, %v2578_v37  ;;  %v2570_v43 = vld [vmem:[%s3455_s18] sm:$0xf]  ;;  %v2738_v44 = vld [vmem:[%s3455_s18 + $0x4] sm:$0xf0] }
  0x7e   : > { %v2583_v42 = vor.u32 %v2739_v39, %v2580_v40  ;;  %v2737_v45 = vld [vmem:[%s3455_s18 + $0x4] sm:$0xf]  ;;  %v2572_v46 = vld [vmem:[%s3455_s18 + $0x8] sm:$0xf0]  ;;  %v2571_v47 = vor.u32 %v2738_v44, %v2570_v43  ;;  %v404_v52 = vld [vmem:[%s3447_s24 + $0x10] sm:$0xff]  ;;  %s5147_s5 = sld [smem:[#allocation18_spill]] }
  0x7f   : > { %530 = vmatpush.bf16.msra.mxu0 %v2611_v17  ;;  %v402_v48 = vld [vmem:[%s3447_s24] sm:$0xff]  ;;  %v403_v49 = vld [vmem:[%s3447_s24 + $0x8] sm:$0xff]  ;;  %v2575_v50 = vor.u32 %v2737_v45, %v2572_v46  ;;  %v405_v53 = vld [vmem:[%s3447_s24 + $0x18] sm:$0xff] }
  0x80   : > { %579 = vmatpush.bf16.msra.mxu1 %v2615_v18  ;;  %v418_v51 = vpack.c.bf16 %v403_v49, %v402_v48  ;;  %v419_v54 = vpack.c.bf16 %v405_v53, %v404_v52  ;;  %v406_v55 = vld [vmem:[%s3447_s24 + $0x20] sm:$0xff]  ;;  %v407_v56 = vld [vmem:[%s3447_s24 + $0x28] sm:$0xff]  ;;  %v408_v58 = vld [vmem:[%s3447_s24 + $0x30] sm:$0xff] }
  0x81   : > { %v420_v57 = vpack.c.bf16 %v407_v56, %v406_v55  ;;  %v409_v59 = vld [vmem:[%s3447_s24 + $0x38] sm:$0xff]  ;;  %v410_v61 = vld [vmem:[%s3447_s24 + $0x40] sm:$0xff]  ;;  %v411_v62 = vld [vmem:[%s3447_s24 + $0x48] sm:$0xff] }
  0x82   : > { %v421_v60 = vpack.c.bf16 %v409_v59, %v408_v58  ;;  %v422_v63 = vpack.c.bf16 %v411_v62, %v410_v61  ;;  %v412_v0 = vld [vmem:[%s3447_s24 + $0x50] sm:$0xff]  ;;  %v413_v1 = vld [vmem:[%s3447_s24 + $0x58] sm:$0xff]  ;;  %v414_v3 = vld [vmem:[%s3447_s24 + $0x60] sm:$0xff] }
  0x83   : > { %531 = vmatpush.bf16.msra.mxu0 %v2603_v23  ;;  %v423_v2 = vpack.c.bf16 %v413_v1, %v412_v0  ;;  %v415_v4 = vld [vmem:[%s3447_s24 + $0x68] sm:$0xff]  ;;  %v416_v6 = vld [vmem:[%s3447_s24 + $0x70] sm:$0xff]  ;;  %v417_v7 = vld [vmem:[%s3447_s24 + $0x78] sm:$0xff] }
  0x84   : > { %580 = vmatpush.bf16.msra.mxu1 %v2607_v24  ;;  %v424_v5 = vpack.c.bf16 %v415_v4, %v414_v3  ;;  %v425_v8 = vpack.c.bf16 %v417_v7, %v416_v6  ;;  %v442_v9 = vld [vmem:[%s3461_s20] sm:$0x3]  ;;  %v2759_v18 = vld [vmem:[%s3463_s7 + $0x30] sm:$0xff]  ;;  %v2758_v27 = vld [vmem:[%s3463_s7 + $0x28] sm:$0xff]  ;;  %p2728_p8 = scmp.ne.s32.totalorder %s5147_s5, 1 }
  0x85   : > { %v3537_v10 = vperm.slane %v442_v9, 0  ;;  %v3539_v12 = vperm.slane %v442_v9, 1  ;;  %v2760_v14 = vld [vmem:[%s3463_s7 + $0x38] sm:$0xff]  ;;  %v2767_v19 = vld [vmem:[%s3463_s7 + $0x70] sm:$0xff]  ;;  %v2757_v34 = vld [vmem:[%s3463_s7 + $0x20] sm:$0xff]  ;;  %s5148_s11 = sld [smem:[#allocation54_spill]] (!%p2728_p8) }
  0x86   : > { %v2768_v15 = vld [vmem:[%s3463_s7 + $0x78] sm:$0xff]  ;;  %2194 = vmatpush.bf16.msra.mxu2 %v2760_v14  ;;  %v2755_v53 = vld [vmem:[%s3463_s7 + $0x10] sm:$0xff]  ;;  %v2762_v3 = vld [vmem:[%s3463_s7 + $0x48] sm:$0xff] }
  0x87   : > { %532 = vmatpush.bf16.msra.mxu0 %v2595_v29  ;;  %2243 = vmatpush.bf16.msra.mxu3 %v2768_v15  ;;  %v2756_v45 = vld [vmem:[%s3463_s7 + $0x18] sm:$0xff] }
  0x88   : > { %581 = vmatpush.bf16.msra.mxu1 %v2599_v30  ;;  %v2766_v30 = vld [vmem:[%s3463_s7 + $0x68] sm:$0xff]  ;;  %v2764_v46 = vld [vmem:[%s3463_s7 + $0x58] sm:$0xff] }
  0x8a   : > { %2195 = vmatpush.bf16.msra.mxu2 %v2759_v18 }
  0x8b   : > { %533 = vmatpush.bf16.msra.mxu0 %v2587_v35  ;;  %2244 = vmatpush.bf16.msra.mxu3 %v2767_v19  ;;  %v2765_v35 = vld [vmem:[%s3463_s7 + $0x60] sm:$0xff] }
  0x8c   : > { %582 = vmatpush.bf16.msra.mxu1 %v2591_v36 }
  0x8e   : > { %2196 = vmatpush.bf16.msra.mxu2 %v2758_v27 }
  0x8f   : > { %534 = vmatpush.bf16.msra.mxu0 %v2579_v41  ;;  %2245 = vmatpush.bf16.msra.mxu3 %v2766_v30 }
  0x90   : > { %583 = vmatpush.bf16.msra.mxu1 %v2583_v42 }
  0x92   : > { %2197 = vmatpush.bf16.msra.mxu2 %v2757_v34 }
  0x93   : > { %535 = vmatpush.bf16.msra.mxu0 %v2571_v47  ;;  %2246 = vmatpush.bf16.msra.mxu3 %v2765_v35 }
  0x94   : > { %584 = vmatpush.bf16.msra.mxu1 %v2575_v50 }
  0x96   : > { %536 = vmatmul.bf16.vlgmr.msra.gmra.mxu0 %v418_v51  ;;  %2198 = vmatpush.bf16.msra.mxu2 %v2756_v45 }
  0x97   : > { %585 = vmatmul.bf16.vlgmr.msra.gmra.mxu1 %v418_v51  ;;  %2247 = vmatpush.bf16.msra.mxu3 %v2764_v46 }
  0x9a   : > { %2199 = vmatpush.bf16.msra.mxu2 %v2755_v53 }
  0xa6   : > { %541 = vmatmul.bf16.gmra.mxu0 %v419_v54 }
  0xa7   : > { %590 = vmatmul.bf16.gmra.mxu1 %v419_v54 }
  0xb6   : > { %546 = vmatmul.bf16.gmra.mxu0 %v420_v57 }
  0xb7   : > { %595 = vmatmul.bf16.gmra.mxu1 %v420_v57  ;;  %v2763_v57 = vld [vmem:[%s3463_s7 + $0x50] sm:$0xff] }
  0xb8   : > { %2248 = vmatpush.bf16.msra.mxu3 %v2763_v57 }
  0xbc   : > { %2249 = vmatpush.bf16.msra.mxu3 %v2762_v3 }
  0xc6   : > { %551 = vmatmul.bf16.gmra.mxu0 %v421_v60 }
  0xc7   : > { %600 = vmatmul.bf16.gmra.mxu1 %v421_v60 }
  0xd6   : > { %556 = vmatmul.bf16.gmra.mxu0 %v422_v63 }
  0xd7   : > { %605 = vmatmul.bf16.gmra.mxu1 %v422_v63 }
  0xe6   : > { %561 = vmatmul.bf16.gmra.mxu0 %v423_v2 }
  0xe7   : > { %610 = vmatmul.bf16.gmra.mxu1 %v423_v2  ;;  %v2754_v2 = vld [vmem:[%s3463_s7 + $0x8] sm:$0xff] }
  0xe8   : > { %2200 = vmatpush.bf16.msra.mxu2 %v2754_v2 }
  0xf6   : > { %566 = vmatmul.bf16.gmra.mxu0 %v424_v5 }
  0xf7   : > { %615 = vmatmul.bf16.gmra.mxu1 %v424_v5 }
 0x106   : > { %571 = vmatmul.bf16.gmra.mxu0 %v425_v8 }
 0x107   : > { %620 = vmatmul.bf16.gmra.mxu1 %v425_v8 }
 0x113   : > { %v537_v11 = vpop.f32.mrf.mxu0 }
 0x114   : > { %v586_v13 = vpop.f32.mrf.mxu1  ;;  %v3544_v16 = vadd.f32 %v537_v11, %v3537_v10 }
 0x115   : > { %v3547_v17 = vadd.f32 %v586_v13, %v3539_v12 }
 0x116   : > { %v3552_v20 = vmul.f32 0.70710677, %v3544_v16 }
 0x117   : > { %v3555_v22 = vmul.f32 0.70710677, %v3547_v17 }
 0x118   : > { %v690_v26 = vmul.f32 %v3552_v20, %v3552_v20 }
 0x119   : > { %v730_v28 = vmul.f32 %v3555_v22, %v3555_v22 }
 0x11a   : > { %v3575_v32 = vmin.f32 %v690_v26, 16.0  ;;  %v2761_v26 = vld [vmem:[%s3463_s7 + $0x40] sm:$0xff] }
 0x11b   : > { %v539_v21 = vpop.f32.mrf.mxu0  ;;  %v3579_v36 = vmin.f32 %v730_v28, 16.0  ;;  %2250 = vmatpush.bf16.msra.mxu3 %v2761_v26  ;;  %v3687_v26 = vmul.f32 0.5, %v3544_v16 }
 0x11c   : > { %v3558_v23 = vadd.f32 %v539_v21, %v3537_v10  ;;  %v588_v24 = vpop.f32.mrf.mxu1  ;;  %v692_v41 = vmul.f32 2.1237322e-06, %v3575_v32  ;;  %v703_v49 = vmul.f32 3.8918573e-05, %v3575_v32 }
 0x11d   : > { %v3561_v25 = vadd.f32 %v588_v24, %v3539_v12  ;;  %v732_v43 = vmul.f32 2.1237322e-06, %v3579_v36  ;;  %v2753_v24 = vld [vmem:[%s3463_s7] sm:$0xff] }
 0x11e   : > { %v3569_v29 = vmul.f32 0.70710677, %v3558_v23  ;;  %v693_v50 = vadd.f32 0.00028619796, %v692_v41  ;;  %v704_v4 = vadd.f32 0.001143296, %v703_v49  ;;  %2201 = vmatpush.bf16.msra.mxu2 %v2753_v24 }
 0x11f   : > { %v3573_v31 = vmul.f32 0.70710677, %v3561_v25  ;;  %v733_v54 = vadd.f32 0.00028619796, %v732_v43 }
 0x120   : > { %v770_v37 = vmul.f32 %v3569_v29, %v3569_v29  ;;  %v694_v62 = vmul.f32 %v693_v50, %v3575_v32  ;;  %v705_v27 = vmul.f32 %v704_v4, %v3575_v32 }
 0x121   : > { %v810_v39 = vmul.f32 %v3573_v31, %v3573_v31  ;;  %v734_v0 = vmul.f32 %v733_v54, %v3579_v36 }
 0x122   : > { %v3593_v44 = vmin.f32 %v770_v37, 16.0  ;;  %v695_v9 = vadd.f32 0.0036580483, %v694_v62  ;;  %v706_v45 = vadd.f32 0.014752088, %v705_v27 }
 0x123   : > { %v542_v33 = vpop.f32.mrf.mxu0  ;;  %v3597_v47 = vmin.f32 %v810_v39, 16.0  ;;  %v735_v15 = vadd.f32 0.0036580483, %v734_v0 }
 0x124   : > { %v591_v38 = vpop.f32.mrf.mxu1  ;;  %v3586_v40 = vadd.f32 %v542_v33, %v3537_v10  ;;  %v772_v55 = vmul.f32 2.1237322e-06, %v3593_v44  ;;  %v707_v4 = vmul.f32 %v706_v45, %v3575_v32 }
 0x125   : > { %v3590_v42 = vadd.f32 %v591_v38, %v3539_v12  ;;  %v812_v58 = vmul.f32 2.1237322e-06, %v3597_v47  ;;  %v696_v38 = vmul.f32 %v695_v9, %v3575_v32  ;;  %v736_v41 = vmul.f32 %v735_v15, %v3579_v36 }
 0x126   : > { %v3600_v48 = vmul.f32 0.70710677, %v3586_v40  ;;  %v773_v1 = vadd.f32 0.00028619796, %v772_v55 }
 0x127   : > { %v3604_v51 = vmul.f32 0.70710677, %v3590_v42  ;;  %v813_v5 = vadd.f32 0.00028619796, %v812_v58 }
 0x128   : > { %v850_v59 = vmul.f32 %v3600_v48, %v3600_v48  ;;  %v774_v28 = vmul.f32 %v773_v1, %v3593_v44 }
 0x129   : > { %v890_v63 = vmul.f32 %v3604_v51, %v3604_v51  ;;  %v814_v30 = vmul.f32 %v813_v5, %v3597_v47 }
 0x12a   : > { %v3624_v6 = vmin.f32 %v850_v59, 16.0  ;;  %v775_v46 = vadd.f32 0.0036580483, %v774_v28  ;;  %v737_v59 = vadd.f32 0.05243302, %v736_v41 }
 0x12b   : > { %v544_v52 = vpop.f32.mrf.mxu0  ;;  %v3632_v11 = vmin.f32 %v890_v63, 16.0  ;;  %v815_v49 = vadd.f32 0.0036580483, %v814_v30  ;;  %v708_v41 = vadd.f32 0.112945676, %v707_v4 }
 0x12c   : > { %v593_v56 = vpop.f32.mrf.mxu1  ;;  %v3613_v60 = vadd.f32 %v544_v52, %v3537_v10  ;;  %v852_v33 = vmul.f32 2.1237322e-06, %v3624_v6  ;;  %v776_v1 = vmul.f32 %v775_v46, %v3593_v44  ;;  %v738_v27 = vmul.f32 %v737_v59, %v3579_v36 }
 0x12d   : > { %v3616_v61 = vadd.f32 %v593_v56, %v3539_v12  ;;  %v892_v39 = vmul.f32 2.1237322e-06, %v3632_v11  ;;  %v697_v56 = vadd.f32 0.05243302, %v696_v38  ;;  %v816_v5 = vmul.f32 %v815_v49, %v3597_v47 }
 0x12e   : > { %v3627_v7 = vmul.f32 0.70710677, %v3613_v60  ;;  %v853_v50 = vadd.f32 0.00028619796, %v852_v33  ;;  %v3695_v33 = vmul.f32 0.5, %v3547_v17  ;;  %v3698_v38 = vmul.f32 0.5, %v3558_v23 }
 0x12f   : > { %v3630_v8 = vmul.f32 0.70710677, %v3616_v61  ;;  %v893_v57 = vadd.f32 0.00028619796, %v892_v39  ;;  %v698_v15 = vmul.f32 %v697_v56, %v3575_v32  ;;  %v777_v45 = vadd.f32 0.05243302, %v776_v1 }
 0x130   : > { %v930_v13 = vmul.f32 %v3627_v7, %v3627_v7  ;;  %v854_v2 = vmul.f32 %v853_v50, %v3624_v6  ;;  %v817_v46 = vadd.f32 0.05243302, %v816_v5  ;;  %v739_v17 = vadd.f32 0.18741608, %v738_v27 }
 0x131   : > { %v970_v18 = vmul.f32 %v3630_v8, %v3630_v8  ;;  %v699_v50 = vadd.f32 0.18741608, %v698_v15  ;;  %v778_v1 = vmul.f32 %v777_v45, %v3593_v44 }
 0x132   : > { %v3647_v34 = vmin.f32 %v930_v13, 16.0  ;;  %v855_v39 = vadd.f32 0.0036580483, %v854_v2  ;;  %v818_v2 = vmul.f32 %v817_v46, %v3597_v47  ;;  %v740_v27 = vmul.f32 %v739_v17, %v3579_v36 }
 0x133   : > { %v547_v14 = vpop.f32.mrf.mxu0  ;;  %v3649_v35 = vmin.f32 %v970_v18, 16.0  ;;  %v894_v18 = vmul.f32 %v893_v57, %v3632_v11 }
 0x134   : > { %v3639_v19 = vadd.f32 %v547_v14, %v3537_v10  ;;  %v596_v21 = vpop.f32.mrf.mxu1  ;;  %v932_v52 = vmul.f32 2.1237322e-06, %v3647_v34  ;;  %v856_v59 = vmul.f32 %v855_v39, %v3624_v6 }
 0x135   : > { %v3652_v37 = vadd.f32 %v596_v21, %v3539_v12  ;;  %v972_v53 = vmul.f32 2.1237322e-06, %v3649_v35 }
 0x136   : > { %v3658_v43 = vmul.f32 0.70710677, %v3639_v19  ;;  %v933_v9 = vadd.f32 0.00028619796, %v932_v52  ;;  %v895_v52 = vadd.f32 0.0036580483, %v894_v18 }
 0x137   : > { %v3665_v55 = vmul.f32 0.70710677, %v3652_v37  ;;  %v973_v13 = vadd.f32 0.00028619796, %v972_v53 }
 0x138   : > { %v1010_v54 = vmul.f32 %v3658_v43, %v3658_v43  ;;  %v934_v16 = vmul.f32 %v933_v9, %v3647_v34 }
 0x139   : > { %v1050_v63 = vmul.f32 %v3665_v55, %v3665_v55  ;;  %v974_v49 = vmul.f32 %v973_v13, %v3649_v35  ;;  %v3718_v13 = vmul.f32 0.5, %v3586_v40 }
 0x13a   : > { %v3667_v62 = vmin.f32 %v1010_v54, 16.0  ;;  %v935_v4 = vadd.f32 0.0036580483, %v934_v16  ;;  %v779_v16 = vadd.f32 0.18741608, %v778_v1 }
 0x13b   : > { %v549_v58 = vpop.f32.mrf.mxu0  ;;  %v3678_v14 = vmin.f32 %v1050_v63, 16.0  ;;  %v975_v5 = vadd.f32 0.0036580483, %v974_v49  ;;  %5045 = vst [vmem:[#allocation30_spill] sm:$0xff] %v3718_v13  ;;  %v819_v49 = vadd.f32 0.18741608, %v818_v2 }
 0x13c   : > { %v598_v0 = vpop.f32.mrf.mxu1  ;;  %v3674_v3 = vadd.f32 %v549_v58, %v3537_v10  ;;  %v1012_v21 = vmul.f32 2.1237322e-06, %v3667_v62  ;;  %v3708_v58 = vmul.f32 0.5, %v3561_v25  ;;  %v896_v25 = vmul.f32 %v895_v52, %v3632_v11 }
 0x13d   : > { %5043 = vst [vmem:[#allocation28_spill] sm:$0xff] %v3678_v14  ;;  %v1052_v28 = vmul.f32 2.1237322e-06, %v3678_v14  ;;  %v3692_v30 = vadd.f32 %v598_v0, %v3539_v12  ;;  %v709_v0 = vmul.f32 %v708_v41, %v3575_v32  ;;  %v857_v41 = vadd.f32 0.05243302, %v856_v59 }
 0x13e   : > { %v3684_v24 = vmul.f32 0.70710677, %v3674_v3  ;;  %v1013_v53 = vadd.f32 0.00028619796, %v1012_v21  ;;  %v700_v21 = vmul.f32 %v699_v50, %v3575_v32  ;;  %v936_v52 = vmul.f32 %v935_v4, %v3647_v34 }
 0x13f   : > { %v1053_v57 = vadd.f32 0.00028619796, %v1052_v28  ;;  %v3705_v23 = vmul.f32 0.70710677, %v3692_v30  ;;  %v710_v46 = vadd.f32 0.4994258, %v709_v0  ;;  %v976_v50 = vmul.f32 %v975_v5, %v3649_v35 }
 0x140   : > { %v1090_v54 = vmul.f32 %v3684_v24, %v3684_v24  ;;  %v1014_v15 = vmul.f32 %v1013_v53, %v3667_v62  ;;  %v897_v53 = vadd.f32 0.05243302, %v896_v25  ;;  %v701_v17 = vadd.f32 1.1283791, %v700_v21 }
 0x141   : > { %5044 = vst [vmem:[#allocation29_spill] sm:$0xff] %v3705_v23  ;;  %v1054_v28 = vmul.f32 %v1053_v57, %v3678_v14  ;;  %v1130_v39 = vmul.f32 %v3705_v23, %v3705_v23  ;;  %v3739_v57 = vmul.f32 0.5, %v3590_v42  ;;  %v711_v4 = vmul.f32 %v710_v46, %v3575_v32 }
 0x142   : > { %v3722_v18 = vmin.f32 %v1090_v54, 16.0  ;;  %v1015_v54 = vadd.f32 0.0036580483, %v1014_v15  ;;  %v741_v5 = vadd.f32 1.1283791, %v740_v27  ;;  %v780_v25 = vmul.f32 %v779_v16, %v3593_v44 }
 0x143   : > { %v552_v56 = vpop.f32.mrf.mxu0  ;;  %5047 = vst [vmem:[#allocation32_spill] sm:$0xff] %v3739_v57  ;;  %v1055_v59 = vadd.f32 0.0036580483, %v1054_v28  ;;  %v3741_v13 = vmin.f32 %v1130_v39, 16.0  ;;  %v937_v15 = vadd.f32 0.05243302, %v936_v52  ;;  %v820_v21 = vmul.f32 %v819_v49, %v3597_v47 }
 0x144   : > { %v3712_v63 = vadd.f32 %v552_v56, %v3537_v10  ;;  %v601_v9 = vpop.f32.mrf.mxu1  ;;  %v1092_v56 = vmul.f32 2.1237322e-06, %v3722_v18  ;;  %v977_v42 = vadd.f32 0.05243302, %v976_v50  ;;  %v898_v28 = vmul.f32 %v897_v53, %v3632_v11 }
 0x145   : > { %v3733_v40 = vadd.f32 %v601_v9, %v3539_v12  ;;  %v858_v9 = vmul.f32 %v857_v41, %v3624_v6  ;;  %v1016_v39 = vmul.f32 %v1015_v54, %v3667_v62  ;;  %v3755_v57 = vmul.f32 %v701_v17, %v3552_v20 }
 0x146   : > { %v3730_v45 = vmul.f32 0.70710677, %v3712_v63  ;;  %v1093_v41 = vadd.f32 0.00028619796, %v1092_v56  ;;  %v1132_v23 = vmul.f32 2.1237322e-06, %v3741_v13  ;;  %v938_v20 = vmul.f32 %v937_v15, %v3647_v34 }
 0x147   : > { %v3747_v1 = vmul.f32 0.70710677, %v3733_v40  ;;  %v859_v27 = vadd.f32 0.18741608, %v858_v9  ;;  %v3766_v49 = vadd.f32 1.0, %v711_v4  ;;  %v3769_v50 = vmul.f32 0.5, %v3613_v60 }
 0x148   : > { %5046 = vst [vmem:[#allocation31_spill] sm:$0xff] %v3730_v45  ;;  %v1170_v0 = vmul.f32 %v3730_v45, %v3730_v45  ;;  %v1056_v45 = vmul.f32 %v1055_v59, %v3678_v14  ;;  %v781_v52 = vadd.f32 1.1283791, %v780_v25  ;;  %v978_v53 = vmul.f32 %v977_v42, %v3649_v35 }
 0x149   : > { %v1210_v16 = vmul.f32 %v3747_v1, %v3747_v1  ;;  %5048 = vst [vmem:[#allocation33_spill] sm:$0xff] %v3769_v50  ;;  %v821_v54 = vadd.f32 1.1283791, %v820_v21  ;;  %v899_v56 = vadd.f32 0.18741608, %v898_v28  ;;  %v1094_v59 = vmul.f32 %v1093_v41, %v3722_v18 }
 0x14a   : > { %v3762_v46 = vmin.f32 %v1170_v0, 16.0  ;;  %v1017_v17 = vadd.f32 0.05243302, %v1016_v39  ;;  %v3775_v0 = vmul.f32 %v741_v5, %v3555_v22  ;;  %v1133_v4 = vadd.f32 0.00028619796, %v1132_v23 }
 0x14b   : > { %v554_v2 = vpop.f32.mrf.mxu0  ;;  %v860_v60 = vmul.f32 %v859_v27, %v3624_v6  ;;  %v3782_v50 = vmin.f32 %v1210_v16, 16.0  ;;  %2895 = vrcp.f32 %v3766_v49  ;;  %v939_v42 = vadd.f32 0.18741608, %v938_v20 }
 0x14c   : > { %v3760_v32 = vadd.f32 %v554_v2, %v3537_v10  ;;  %v603_v9 = vpop.f32.mrf.mxu1  ;;  %v1057_v2 = vadd.f32 0.05243302, %v1056_v45  ;;  %v1172_v15 = vmul.f32 2.1237322e-06, %v3762_v46  ;;  %v3786_v21 = vmul.f32 0.5, %v3616_v61 }
 0x14d   : > { %v979_v28 = vadd.f32 0.18741608, %v978_v53  ;;  %v3789_v22 = vadd.f32 %v603_v9, %v3539_v12  ;;  %v900_v23 = vmul.f32 %v899_v56, %v3632_v11  ;;  %v3793_v45 = vmul.f32 0.5, %v3639_v19 }
 0x14e   : > { %v3778_v25 = vmul.f32 0.70710677, %v3760_v32  ;;  %5049 = vst [vmem:[#allocation34_spill] sm:$0xff] %v3786_v21  ;;  %v1018_v5 = vmul.f32 %v1017_v17, %v3667_v62  ;;  %v1095_v39 = vadd.f32 0.0036580483, %v1094_v59  ;;  %v3797_v41 = vmul.f32 %v781_v52, %v3569_v29 }
 0x14f   : > { %5050 = vst [vmem:[#allocation35_spill] sm:$0xff] %v3793_v45  ;;  %v1058_v27 = vmul.f32 %v1057_v2, %v3678_v14  ;;  %v1134_v61 = vmul.f32 %v1133_v4, %v3741_v13  ;;  %v3804_v20 = vmul.f32 %v821_v54, %v3573_v31  ;;  %v861_v53 = vadd.f32 1.1283791, %v860_v60 }
 0x150   : > { %v1250_v16 = vmul.f32 %v3778_v25, %v3778_v25  ;;  %v1173_v56 = vadd.f32 0.00028619796, %v1172_v15  ;;  %v1212_v19 = vmul.f32 2.1237322e-06, %v3782_v50  ;;  %v940_v17 = vmul.f32 %v939_v42, %v3647_v34 }
 0x151   : > { %v980_v29 = vmul.f32 %v979_v28, %v3649_v35  ;;  %v3810_v52 = vmul.f32 0.5, %v3652_v37  ;;  %v3813_v59 = vmul.f32 0.70710677, %v3789_v22  ;;  %v3815_v2 = vpop.eup %2895  ;;  %v901_v4 = vadd.f32 1.1283791, %v900_v23 }
 0x152   : > { %v1019_v31 = vadd.f32 0.18741608, %v1018_v5  ;;  %v1096_v54 = vmul.f32 %v1095_v39, %v3722_v18  ;;  %v783_v60 = vmul.f32 3.8918573e-05, %v3593_v44  ;;  %v1059_v15 = vadd.f32 0.18741608, %v1058_v27 }
 0x153   : > { %v557_v9 = vpop.f32.mrf.mxu0  ;;  %5051 = vst [vmem:[#allocation36_spill] sm:$0xff] %v3810_v52  ;;  %v1135_v45 = vadd.f32 0.0036580483, %v1134_v61  ;;  %v3819_v21 = vmin.f32 %v1250_v16, 16.0  ;;  %v3825_v37 = vmul.f32 %v861_v53, %v3600_v48  ;;  %v3828_v28 = vmul.f32 0.5, %v3674_v3 }
 0x154   : > { %v3822_v42 = vadd.f32 %v557_v9, %v3537_v10  ;;  %v1174_v23 = vmul.f32 %v1173_v56, %v3762_v46  ;;  %v1213_v5 = vadd.f32 0.00028619796, %v1212_v19  ;;  %v941_v52 = vadd.f32 1.1283791, %v940_v17 }
 0x155   : > { %5052 = vst [vmem:[#allocation37_spill] sm:$0xff] %v3825_v37  ;;  %v981_v39 = vadd.f32 1.1283791, %v980_v29  ;;  %v1290_v27 = vmul.f32 %v3813_v59, %v3813_v59  ;;  %v714_v61 = vmul.f32 %v3815_v2, %v3766_v49  ;;  %v3836_v16 = vmul.f32 %v901_v4, %v3604_v51 }
 0x156   : > { %5053 = vst [vmem:[#allocation38_spill] sm:$0xff] %v3828_v28  ;;  %v1020_v48 = vmul.f32 %v1019_v31, %v3667_v62  ;;  %v1097_v53 = vadd.f32 0.05243302, %v1096_v54  ;;  %v3840_v3 = vmul.f32 0.5, %v3692_v30  ;;  %v1060_v56 = vmul.f32 %v1059_v15, %v3678_v14 }
 0x157   : > { %5054 = vst [vmem:[#allocation39_spill] sm:$0xff] %v3836_v16  ;;  %v1136_v19 = vmul.f32 %v1135_v45, %v3741_v13  ;;  %v1252_v9 = vmul.f32 2.1237322e-06, %v3819_v21  ;;  %v3846_v17 = vmul.f32 0.70710677, %v3822_v42  ;;  %v3849_v29 = vmul.f32 0.5, %v3712_v63 }
 0x158   : > { %5055 = vst [vmem:[#allocation40_spill] sm:$0xff] %v3840_v3  ;;  %v1175_v51 = vadd.f32 0.0036580483, %v1174_v23  ;;  %v3852_v4 = vmul.f32 0.5, %v3733_v40  ;;  %v1214_v31 = vmul.f32 %v1213_v5, %v3782_v50  ;;  %v3856_v30 = vmul.f32 %v941_v52, %v3627_v7  ;;  %v606_v23 = vpop.f32.mrf.mxu1 }
 0x159   : > { %5056 = vst [vmem:[#allocation41_spill] sm:$0xff] %v3846_v17  ;;  %v3859_v54 = vmul.f32 %v981_v39, %v3630_v8  ;;  %v3861_v45 = vmin.f32 %v1290_v27, 16.0  ;;  %v715_v15 = vsub.f32 1.0, %v714_v61  ;;  %v1021_v3 = vadd.f32 1.1283791, %v1020_v48 }
 0x15a   : > { %5057 = vst [vmem:[#allocation42_spill] sm:$0xff] %v3849_v29  ;;  %v1098_v28 = vmul.f32 %v1097_v53, %v3722_v18  ;;  %v3865_v63 = vmul.f32 0.5, %v3760_v32  ;;  %v784_v40 = vadd.f32 0.001143296, %v783_v60  ;;  %v1137_v5 = vadd.f32 0.05243302, %v1136_v19 }
 0x15b   : > { %5058 = vst [vmem:[#allocation43_spill] sm:$0xff] %v3852_v4  ;;  %v3867_v4 = vadd.f32 1.1283791, %v1060_v56  ;;  %v1253_v29 = vadd.f32 0.00028619796, %v1252_v9  ;;  %v1330_v7 = vmul.f32 %v3846_v17, %v3846_v17  ;;  %v1176_v8 = vmul.f32 %v1175_v51, %v3762_v46 }
 0x15c   : > { %5059 = vst [vmem:[#allocation44_spill] sm:$0xff] %v3856_v30  ;;  %v1215_v52 = vadd.f32 0.0036580483, %v1214_v31  ;;  %v785_v39 = vmul.f32 %v784_v40, %v3593_v44  ;;  %v743_v27 = vmul.f32 3.8918573e-05, %v3579_v36  ;;  %v3876_v32 = vadd.f32 %v606_v23, %v3539_v12 }
 0x15d   : > { %5060 = vst [vmem:[#allocation45_spill] sm:$0xff] %v3859_v54  ;;  %v1292_v61 = vmul.f32 2.1237322e-06, %v3861_v45  ;;  %v716_v60 = vmul.f32 %v3815_v2, %v715_v15  ;;  %v823_v48 = vmul.f32 3.8918573e-05, %v3597_v47  ;;  %v3881_v53 = vmul.f32 %v1021_v3, %v3658_v43 }
 0x15e   : > { %5061 = vst [vmem:[#allocation46_spill] sm:$0xff] %v3865_v63  ;;  %v3884_v56 = vmul.f32 0.5, %v3789_v22  ;;  %v786_v19 = vadd.f32 0.014752088, %v785_v39  ;;  %v744_v9 = vadd.f32 0.001143296, %v743_v27  ;;  %v1138_v31 = vmul.f32 %v1137_v5, %v3741_v13 }
 0x15f   : > { %5062 = vst [vmem:[#allocation47_spill] sm:$0xff] %v3881_v53  ;;  %v1099_v51 = vadd.f32 0.18741608, %v1098_v28  ;;  %v1254_v40 = vmul.f32 %v1253_v29, %v3819_v21  ;;  %v3888_v63 = vmin.f32 %v1330_v7, 16.0  ;;  %v1177_v23 = vadd.f32 0.05243302, %v1176_v8 }
 0x160   : > { %5063 = vst [vmem:[#allocation48_spill] sm:$0xff] %v3884_v56  ;;  %v787_v15 = vmul.f32 %v786_v19, %v3593_v44  ;;  %v745_v54 = vmul.f32 %v744_v9, %v3579_v36  ;;  %v824_v14 = vadd.f32 0.001143296, %v823_v48  ;;  %v1216_v43 = vmul.f32 %v1215_v52, %v3782_v50 }
 0x161   : > { %v1293_v3 = vadd.f32 0.00028619796, %v1292_v61  ;;  %v3894_v22 = vmul.f32 0.70710677, %v3876_v32  ;;  %v717_v28 = vadd.f32 %v3815_v2, %v716_v60  ;;  %vm719_vm0 = vweird.f32 %v3815_v2 }
 0x162   : > { %v788_v5 = vadd.f32 0.112945676, %v787_v15  ;;  %v746_v29 = vadd.f32 0.014752088, %v745_v54  ;;  %v825_v7 = vmul.f32 %v824_v14, %v3597_v47  ;;  %v1255_v8 = vadd.f32 0.0036580483, %v1254_v40 }
 0x163   : > { %5064 = vst [vmem:[#allocation49_spill] sm:$0xff] %v3894_v22  ;;  %v1332_v39 = vmul.f32 2.1237322e-06, %v3888_v63  ;;  %vm718_vm1 = vweird.f32 %v3766_v49  ;;  %v724_v27 = vand.u32 2147483648, %v3766_v49  ;;  %v722_v52 = vand.u32 2147483647, %v3766_v49 }
 0x164   : > { %v789_v61 = vmul.f32 %v788_v5, %v3593_v44  ;;  %v747_v48 = vmul.f32 %v746_v29, %v3579_v36  ;;  %v826_v60 = vadd.f32 0.014752088, %v825_v7  ;;  %v1217_v19 = vadd.f32 0.05243302, %v1216_v43  ;;  %vm3910_vm2 = vmor %vm718_vm1, %vm719_vm0 }
 0x165   : > { %v1294_v9 = vmul.f32 %v1293_v3, %v3861_v45  ;;  %v1370_v14 = vmul.f32 %v3894_v22, %v3894_v22  ;;  %v863_v40 = vmul.f32 3.8918573e-05, %v3624_v6  ;;  %v721_v49 = vsel %vm3910_vm2, %v3815_v2, %v717_v28 }
 0x166   : > { %v790_v15 = vadd.f32 0.4994258, %v789_v61  ;;  %v748_v5 = vadd.f32 0.112945676, %v747_v48  ;;  %v827_v43 = vmul.f32 %v826_v60, %v3597_v47  ;;  %v1256_v3 = vmul.f32 %v1255_v8, %v3819_v21 }
 0x167   : > { %v1333_v29 = vadd.f32 0.00028619796, %v1332_v39  ;;  %v725_v7 = vor.u32 1.1754944e-38, %v724_v27  ;;  %v864_v56 = vadd.f32 0.001143296, %v863_v40  ;;  %vm723_vm3 = vcmp.eq.f32.partialorder %v722_v52, 8.507059e+37 }
 0x168   : > { %v791_v53 = vmul.f32 %v790_v15, %v3593_v44  ;;  %v749_v16 = vmul.f32 %v748_v5, %v3579_v36  ;;  %v828_v22 = vadd.f32 0.112945676, %v827_v43  ;;  %v1139_v30 = vadd.f32 0.18741608, %v1138_v31 }
 0x169   : > { %v1295_v37 = vadd.f32 0.0036580483, %v1294_v9  ;;  %v726_v17 = vsel %vm723_vm3, %v725_v7, %v721_v49  ;;  %v865_v2 = vmul.f32 %v864_v56, %v3624_v6  ;;  %v3923_v28 = vmin.f32 %v1370_v14, 16.0 }
 0x16a   : > { %v3925_v61 = vadd.f32 1.0, %v791_v53  ;;  %v750_v48 = vadd.f32 0.4994258, %v749_v16  ;;  %v829_v8 = vmul.f32 %v828_v22, %v3597_v47  ;;  %v1100_v39 = vmul.f32 %v1099_v51, %v3722_v18 }
 0x16b   : > { %v1178_v27 = vmul.f32 %v1177_v23, %v3762_v46  ;;  %v1218_v44 = vmul.f32 %v1217_v19, %v3782_v50  ;;  %v866_v52 = vadd.f32 0.014752088, %v865_v2  ;;  %v1257_v60 = vadd.f32 0.05243302, %v1256_v3 }
 0x16c   : > { %v1334_v31 = vmul.f32 %v1333_v29, %v3888_v63  ;;  %v727_v9 = vmul.f32 %v726_v17, %v3755_v57  ;;  %2897 = vrcp.f32 %v3925_v61  ;;  %v1296_v53 = vmul.f32 %v1295_v37, %v3861_v45 }
 0x16d   : > { %v751_v16 = vmul.f32 %v750_v48, %v3579_v36  ;;  %v830_v56 = vadd.f32 0.4994258, %v829_v8  ;;  %v867_v22 = vmul.f32 %v866_v52, %v3624_v6  ;;  %v3939_v51 = vmul.f32 %v3867_v4, %v3665_v55  ;;  %v559_v8 = vpop.f32.mrf.mxu0 }
 0x16e   : > { %v1140_v23 = vmul.f32 %v1139_v30, %v3741_v13  ;;  %v1372_v19 = vmul.f32 2.1237322e-06, %v3923_v28  ;;  %v943_v14 = vmul.f32 3.8918573e-05, %v3647_v34  ;;  %v1179_v57 = vadd.f32 0.18741608, %v1178_v27 }
 0x16f   : > { %v1219_v17 = vadd.f32 0.18741608, %v1218_v44  ;;  %v3944_v54 = vadd.f32 1.0, %v751_v16  ;;  %v831_v37 = vmul.f32 %v830_v56, %v3597_v47  ;;  %v3947_v36 = vadd.f32 1.1283791, %v1100_v39 }
 0x170   : > { %v3950_v40 = vmul.f32 0.5, %v3822_v42  ;;  %v1335_v49 = vadd.f32 0.0036580483, %v1334_v31  ;;  %v2632_v55 = vclamps-f32 %v727_v9, 1.0  ;;  %v1258_v4 = vmul.f32 %v1257_v60, %v3819_v21 }
 0x171   : > { %v1297_v30 = vadd.f32 0.05243302, %v1296_v53  ;;  %2899 = vrcp.f32 %v3944_v54  ;;  %v868_v15 = vadd.f32 0.112945676, %v867_v22  ;;  %v3955_v43 = vmul.f32 0.5, %v3876_v32 }
 0x172   : > { %5067 = vst [vmem:[#allocation50_spill] sm:$0xff] %v3950_v40  ;;  %v2898_v5 = vpop.eup %2897  ;;  %v1373_v3 = vadd.f32 0.00028619796, %v1372_v19  ;;  %v3957_v29 = vadd.f32 1.0, %v831_v37  ;;  %v944_v47 = vadd.f32 0.001143296, %v943_v14  ;;  %v3962_v42 = vmul.f32 %v1179_v57, %v3762_v46  ;;  %v608_v37 = vpop.f32.mrf.mxu1 }
 0x173   : > { %5068 = vst [vmem:[#allocation51_spill] sm:$0xff] %v3955_v43  ;;  %v3959_v7 = vadd.f32 1.1283791, %v1140_v23  ;;  %v3965_v2 = vmul.f32 %v1219_v17, %v3782_v50  ;;  %v794_v48 = vmul.f32 %v2898_v5, %v3925_v61  ;;  %v3969_v39 = vmul.f32 %v1335_v49, %v3888_v63 }
 0x174   : > { %v1970_v32 = vadd.f32 1.0, %v2632_v55  ;;  %2901 = vrcp.f32 %v3957_v29  ;;  %v903_v27 = vmul.f32 3.8918573e-05, %v3632_v11  ;;  %v3973_v44 = vadd.f32 0.18741608, %v1258_v4 }
 0x175   : > { %v795_v52 = vsub.f32 1.0, %v794_v48  ;;  %v802_v60 = vand.u32 2147483647, %v3925_v61  ;;  %v869_v31 = vmul.f32 %v868_v15, %v3624_v6  ;;  %v3978_v9 = vmul.f32 %v1297_v30, %v3861_v45 }
 0x176   : > { %v3981_v53 = vmul.f32 %v1373_v3, %v3923_v28  ;;  %v804_v16 = vand.u32 2147483648, %v3925_v61  ;;  %v945_v56 = vmul.f32 %v944_v47, %v3647_v34  ;;  %vm799_vm4 = vweird.f32 %v2898_v5 }
 0x177   : > { %v2900_v22 = vpop.eup %2899  ;;  %v796_v23 = vmul.f32 %v2898_v5, %v795_v52  ;;  %v3986_v19 = vadd.f32 %v559_v8, %v3537_v10  ;;  %v870_v14 = vadd.f32 0.4994258, %v869_v31  ;;  %vm798_vm5 = vweird.f32 %v3925_v61 }
 0x178   : > { %v3990_v57 = vmul.f32 %v1970_v32, %v3687_v26  ;;  %v754_v17 = vmul.f32 %v2900_v22, %v3944_v54  ;;  %v904_v49 = vadd.f32 0.001143296, %v903_v27  ;;  %vm803_vm6 = vcmp.eq.f32.partialorder %v802_v60, 8.507059e+37  ;;  %vm800_vm7 = vmor %vm798_vm5, %vm799_vm4 }
 0x179   : > { %v797_v55 = vadd.f32 %v2898_v5, %v796_v23  ;;  %v762_v4 = vand.u32 2147483647, %v3944_v54  ;;  %v764_v30 = vand.u32 2147483648, %v3944_v54  ;;  %v805_v3 = vor.u32 1.1754944e-38, %v804_v16 }
 0x17a   : > { %v2902_v15 = vpop.eup %2901  ;;  %v755_v47 = vsub.f32 1.0, %v754_v17  ;;  %v871_v48 = vmul.f32 %v870_v14, %v3624_v6  ;;  %v946_v61 = vadd.f32 0.014752088, %v945_v56  ;;  %v3998_v32 = vmul.f32 0.70710677, %v3986_v19  ;;  %v562_v56 = vpop.f32.mrf.mxu0 }
 0x17b   : > { %v801_v8 = vsel %vm800_vm7, %v2898_v5, %v797_v55  ;;  %v834_v26 = vmul.f32 %v2902_v15, %v3957_v29  ;;  %v4001_v27 = vadd.f32 %v608_v37, %v3539_v12  ;;  %vm758_vm8 = vweird.f32 %v3944_v54 }
 0x17c   : > { %v806_v52 = vsel %vm803_vm6, %v805_v3, %v801_v8  ;;  %v756_v60 = vmul.f32 %v2900_v22, %v755_v47  ;;  %vm759_vm9 = vweird.f32 %v2900_v22  ;;  %vm4005_vm10 = vcmp.eq.f32.partialorder %v762_v4, 8.507059e+37 }
 0x17d   : > { %v807_v31 = vmul.f32 %v806_v52, %v3797_v41  ;;  %v765_v6 = vor.u32 1.1754944e-38, %v764_v30  ;;  %v835_v5 = vsub.f32 1.0, %v834_v26  ;;  %v842_v14 = vand.u32 2147483647, %v3957_v29  ;;  %vm760_vm11 = vmor %vm758_vm8, %vm759_vm9 }
 0x17e   : > { %v757_v23 = vadd.f32 %v2900_v22, %v756_v60  ;;  %v844_v17 = vand.u32 2147483648, %v3957_v29  ;;  %v4011_v37 = vadd.f32 1.0, %v871_v48  ;;  %vm839_vm12 = vweird.f32 %v2902_v15 }
 0x17f   : > { %v2634_v55 = vclamps-f32 %v807_v31, 1.0  ;;  %v836_v54 = vmul.f32 %v2902_v15, %v835_v5  ;;  %v1410_v41 = vmul.f32 %v3998_v32, %v3998_v32  ;;  %vm838_vm13 = vweird.f32 %v3957_v29 }
 0x180   : > { %v761_v4 = vsel %vm760_vm11, %v2900_v22, %v757_v23  ;;  %v4017_v30 = vadd.f32 %v562_v56, %v3537_v10  ;;  %2903 = vrcp.f32 %v4011_v37  ;;  %v4023_v8 = vmul.f32 0.70710677, %v4001_v27  ;;  %vm840_vm14 = vmor %vm838_vm13, %vm839_vm12 }
 0x181   : > { %v1972_v3 = vadd.f32 1.0, %v2634_v55  ;;  %v766_v47 = vsel %vm4005_vm10, %v765_v6, %v761_v4  ;;  %v837_v48 = vadd.f32 %v2902_v15, %v836_v54  ;;  %v845_v52 = vor.u32 1.1754944e-38, %v844_v17 }
 0x182   : > { %v767_v26 = vmul.f32 %v766_v47, %v3775_v0  ;;  %v947_v22 = vmul.f32 %v946_v61, %v3647_v34  ;;  %v905_v29 = vmul.f32 %v904_v49, %v3632_v11  ;;  %vm843_vm15 = vcmp.eq.f32.partialorder %v842_v14, 8.507059e+37 }
 0x183   : > { %v2004_v60 = vmul.f32 %v1972_v3, %v3698_v38  ;;  %v841_v31 = vsel %vm840_vm14, %v2902_v15, %v837_v48  ;;  %v4029_v5 = vmin.f32 %v1410_v41, 16.0  ;;  %v1337_v16 = vadd.f32 0.05243302, %v3969_v39 }
 0x184   : > { %v2633_v6 = vclamps-f32 %v767_v26, 1.0  ;;  %v846_v56 = vsel %vm843_vm15, %v845_v52, %v841_v31  ;;  %v4033_v23 = vmul.f32 0.70710677, %v4017_v30  ;;  %v1375_v0 = vadd.f32 0.0036580483, %v3981_v53 }
 0x185   : > { %v2050_v17 = vpack.c.bf16 %v2004_v60, %v3990_v57  ;;  %v847_v61 = vmul.f32 %v846_v56, %v3804_v20  ;;  %v1450_v38 = vmul.f32 %v4023_v8, %v4023_v8  ;;  %v4044_v15 = vmul.f32 %v3947_v36, %v3684_v24 }
 0x186   : > { %v4040_v49 = vpop.eup %2903  ;;  %v1181_v39 = vadd.f32 1.1283791, %v3962_v42  ;;  %v948_v14 = vadd.f32 0.112945676, %v947_v22  ;;  %v906_v55 = vadd.f32 0.014752088, %v905_v29  ;;  %v1260_v4 = vmul.f32 %v3973_v44, %v3819_v21  ;;  %v611_v42 = vpop.f32.mrf.mxu1 }
 0x187   : > { %2202 = vmatmul.bf16.vlgmr.msra.gmra.mxu2 %v2050_v17  ;;  %v2635_v54 = vclamps-f32 %v847_v61, 1.0  ;;  %v1971_v53 = vadd.f32 1.0, %v2633_v6  ;;  %v1412_v57 = vmul.f32 2.1237322e-06, %v4029_v5  ;;  %v874_v20 = vmul.f32 %v4040_v49, %v4011_v37  ;;  %v5072_v61 = vld [vmem:[#allocation31_spill] sm:$0xff] }
 0x188   : > { %v1221_v41 = vadd.f32 1.1283791, %v3965_v2  ;;  %v1338_v24 = vmul.f32 %v1337_v16, %v3888_v63  ;;  %v1490_v36 = vmul.f32 %v4033_v23, %v4033_v23  ;;  %v1299_v3 = vadd.f32 0.18741608, %v3978_v9  ;;  %v5071_v9 = vld [vmem:[#allocation29_spill] sm:$0xff] }
 0x189   : > { %v1376_v47 = vmul.f32 %v1375_v0, %v3923_v28  ;;  %v1973_v48 = vadd.f32 1.0, %v2635_v54  ;;  %v4058_v26 = vmin.f32 %v1450_v38, 16.0  ;;  %v875_v52 = vsub.f32 1.0, %v874_v20 }
 0x18a   : > { %v949_v22 = vmul.f32 %v948_v14, %v3647_v34  ;;  %v907_v2 = vmul.f32 %v906_v55, %v3632_v11  ;;  %v983_v44 = vmul.f32 3.8918573e-05, %v3649_v35  ;;  %v2003_v29 = vmul.f32 %v1971_v53, %v3695_v33 }
 0x18b   : > { %v2005_v60 = vmul.f32 %v1973_v48, %v3708_v58  ;;  %v1413_v31 = vadd.f32 0.00028619796, %v1412_v57  ;;  %v4066_v16 = vadd.f32 %v611_v42, %v3539_v12  ;;  %v4070_v6 = vmul.f32 %v3959_v7, %v5071_v9 }
 0x18c   : > { %v1261_v56 = vadd.f32 1.1283791, %v1260_v4  ;;  %v1339_v0 = vadd.f32 0.18741608, %v1338_v24  ;;  %v4072_v17 = vmin.f32 %v1490_v36, 16.0  ;;  %v4075_v38 = vmul.f32 %v1181_v39, %v5072_v61 }
 0x18d   : > { %v1377_v14 = vadd.f32 0.05243302, %v1376_v47  ;;  %v2051_v55 = vpack.c.bf16 %v2005_v60, %v2003_v29  ;;  %v1452_v33 = vmul.f32 2.1237322e-06, %v4058_v26  ;;  %v4079_v58 = vmul.f32 %v1221_v41, %v3747_v1 }
 0x18e   : > { %v1300_v54 = vmul.f32 %v1299_v3, %v3861_v45  ;;  %v876_v53 = vmul.f32 %v4040_v49, %v875_v52  ;;  %v950_v7 = vadd.f32 0.4994258, %v949_v22  ;;  %v1414_v57 = vmul.f32 %v1413_v31, %v4029_v5 }
 0x18f   : > { %2251 = vmatmul.bf16.vlgmr.msra.gmra.mxu3 %v2051_v55  ;;  %v4085_v20 = vmul.f32 0.70710677, %v4066_v16  ;;  %v908_v39 = vadd.f32 0.112945676, %v907_v2  ;;  %v984_v4 = vadd.f32 0.001143296, %v983_v44  ;;  %v4088_v24 = vmul.f32 %v1261_v56, %v3778_v25 }
 0x190   : > { %v1340_v36 = vmul.f32 %v1339_v0, %v3888_v63  ;;  %v1492_v1 = vmul.f32 2.1237322e-06, %v4072_v17  ;;  %v951_v41 = vmul.f32 %v950_v7, %v3647_v34  ;;  %v1378_v42 = vmul.f32 %v1377_v14, %v3923_v28 }
 0x191   : > { %v1453_v3 = vadd.f32 0.00028619796, %v1452_v33  ;;  %vm879_vm0 = vweird.f32 %v4040_v49  ;;  %v909_v47 = vmul.f32 %v908_v39, %v3632_v11  ;;  %v877_v48 = vadd.f32 %v4040_v49, %v876_v53 }
 0x192   : > { %v4097_v52 = vadd.f32 1.0, %v951_v41  ;;  %v985_v25 = vmul.f32 %v984_v4, %v3649_v35  ;;  %v1023_v22 = vmul.f32 3.8918573e-05, %v3667_v62  ;;  %v1415_v2 = vadd.f32 0.0036580483, %v1414_v57 }
 0x193   : > { %v1530_v44 = vmul.f32 %v4085_v20, %v4085_v20  ;;  %v884_v34 = vand.u32 2147483648, %v4011_v37  ;;  %v910_v29 = vadd.f32 0.4994258, %v909_v47  ;;  %v1493_v60 = vadd.f32 0.00028619796, %v1492_v1 }
 0x194   : > { %vm878_vm1 = vweird.f32 %v4011_v37  ;;  %v882_v31 = vand.u32 2147483647, %v4011_v37  ;;  %2905 = vrcp.f32 %v4097_v52  ;;  %v1301_v9 = vadd.f32 1.1283791, %v1300_v54 }
 0x195   : > { %v1379_v56 = vadd.f32 0.18741608, %v1378_v42  ;;  %v1454_v0 = vmul.f32 %v1453_v3, %v4058_v26  ;;  %vm4110_vm2 = vmor %vm878_vm1, %vm879_vm0  ;;  %v911_v14 = vmul.f32 %v910_v29, %v3632_v11  ;;  %v1341_v55 = vadd.f32 1.1283791, %v1340_v36 }
 0x196   : > { %v881_v33 = vsel %vm4110_vm2, %v4040_v49, %v877_v48  ;;  %v986_v37 = vadd.f32 0.014752088, %v985_v25  ;;  %v1024_v53 = vadd.f32 0.001143296, %v1023_v22  ;;  %v1416_v54 = vmul.f32 %v1415_v2, %v4029_v5  ;;  %v5076_v22 = vld [vmem:[#allocation41_spill] sm:$0xff] }
 0x197   : > { %v4119_v7 = vmin.f32 %v1530_v44, 16.0  ;;  %v885_v57 = vor.u32 1.1754944e-38, %v884_v34  ;;  %v4121_v39 = vadd.f32 1.0, %v911_v14  ;;  %v1494_v4 = vmul.f32 %v1493_v60, %v4072_v17 }
 0x198   : > { %vm883_vm3 = vcmp.eq.f32.partialorder %v882_v31, 8.507059e+37  ;;  %v987_v1 = vmul.f32 %v986_v37, %v3649_v35  ;;  %v1025_v11 = vmul.f32 %v1024_v53, %v3667_v62  ;;  %v1380_v36 = vmul.f32 %v1379_v56, %v3923_v28  ;;  %v5078_v31 = vld [vmem:[#allocation37_spill] sm:$0xff] }
 0x199   : > { %v1455_v41 = vadd.f32 0.0036580483, %v1454_v0  ;;  %v886_v49 = vsel %vm883_vm3, %v885_v57, %v881_v33  ;;  %2907 = vrcp.f32 %v4121_v39  ;;  %v4129_v3 = vmul.f32 %v1301_v9, %v3813_v59 }
 0x19a   : > { %v2906_v42 = vpop.eup %2905  ;;  %v988_v47 = vadd.f32 0.112945676, %v987_v1  ;;  %v1026_v48 = vadd.f32 0.014752088, %v1025_v11  ;;  %v1103_v25 = vmul.f32 3.8918573e-05, %v3722_v18  ;;  %v4133_v2 = vmul.f32 %v1341_v55, %v5076_v22  ;;  %v564_v22 = vpop.f32.mrf.mxu0 }
 0x19b   : > { %5075 = vst [vmem:[#allocation29_spill] sm:$0xff] %v4129_v3  ;;  %v1417_v44 = vadd.f32 0.05243302, %v1416_v54  ;;  %v1532_v34 = vmul.f32 2.1237322e-06, %v4119_v7  ;;  %v954_v29 = vmul.f32 %v2906_v42, %v4097_v52  ;;  %v887_v56 = vmul.f32 %v886_v49, %v5078_v31 }
 0x19c   : > { %5077 = vst [vmem:[#allocation31_spill] sm:$0xff] %v4133_v2  ;;  %v1495_v60 = vadd.f32 0.0036580483, %v1494_v4  ;;  %v989_v0 = vmul.f32 %v988_v47, %v3649_v35  ;;  %v1027_v59 = vmul.f32 %v1026_v48, %v3667_v62  ;;  %v1381_v9 = vadd.f32 1.1283791, %v1380_v36 }
 0x19d   : > { %v955_v61 = vsub.f32 1.0, %v954_v29  ;;  %v962_v14 = vand.u32 2147483647, %v4097_v52  ;;  %v964_v33 = vand.u32 2147483648, %v4097_v52  ;;  %v1456_v55 = vmul.f32 %v1455_v41, %v4058_v26  ;;  %v613_v41 = vpop.f32.mrf.mxu1 }
 0x19e   : > { %v990_v37 = vadd.f32 0.4994258, %v989_v0  ;;  %v1028_v53 = vadd.f32 0.112945676, %v1027_v59  ;;  %v1104_v54 = vadd.f32 0.001143296, %v1103_v25  ;;  %v1418_v4 = vmul.f32 %v1417_v44, %v4029_v5 }
 0x19f   : > { %v2908_v57 = vpop.eup %2907  ;;  %v1533_v1 = vadd.f32 0.00028619796, %v1532_v34  ;;  %v956_v11 = vmul.f32 %v2906_v42, %v955_v61  ;;  %vm959_vm4 = vweird.f32 %v2906_v42  ;;  %v1496_v49 = vmul.f32 %v1495_v60, %v4072_v17 }
 0x1a0   : > { %v2636_v47 = vclamps-f32 %v887_v56, 1.0  ;;  %v914_v36 = vmul.f32 %v2908_v57, %v4121_v39  ;;  %v991_v48 = vmul.f32 %v990_v37, %v3649_v35  ;;  %vm958_vm5 = vweird.f32 %v4097_v52 }
 0x1a1   : > { %v957_v29 = vadd.f32 %v2906_v42, %v956_v11  ;;  %vm963_vm6 = vcmp.eq.f32.partialorder %v962_v14, 8.507059e+37  ;;  %v1029_v25 = vmul.f32 %v1028_v53, %v3667_v62  ;;  %vm960_vm7 = vmor %vm958_vm5, %vm959_vm4  ;;  %v965_v44 = vor.u32 1.1754944e-38, %v964_v33  ;;  %v5079_v33 = vld [vmem:[#allocation44_spill] sm:$0xff] }
 0x1a2   : > { %v915_v34 = vsub.f32 1.0, %v914_v36  ;;  %v4149_v31 = vadd.f32 1.0, %v991_v48  ;;  %v1105_v60 = vmul.f32 %v1104_v54, %v3722_v18  ;;  %vm919_vm8 = vweird.f32 %v2908_v57  ;;  %v5080_v48 = vld [vmem:[#allocation49_spill] sm:$0xff] }
 0x1a3   : > { %v961_v56 = vsel %vm960_vm7, %v2906_v42, %v957_v29  ;;  %v4153_v0 = vadd.f32 %v564_v22, %v3537_v10  ;;  %v1030_v35 = vadd.f32 0.4994258, %v1029_v25  ;;  %v4157_v52 = vadd.f32 %v613_v41, %v3539_v12 }
 0x1a4   : > { %v966_v59 = vsel %vm963_vm6, %v965_v44, %v961_v56  ;;  %v916_v61 = vmul.f32 %v2908_v57, %v915_v34  ;;  %2909 = vrcp.f32 %v4149_v31  ;;  %v1534_v14 = vmul.f32 %v1533_v1, %v4119_v7 }
 0x1a5   : > { %v967_v37 = vmul.f32 %v966_v59, %v5079_v33  ;;  %vm918_vm9 = vweird.f32 %v4121_v39  ;;  %v924_v42 = vand.u32 2147483648, %v4121_v39  ;;  %v922_v54 = vand.u32 2147483647, %v4121_v39  ;;  %v567_v59 = vpop.f32.mrf.mxu0  ;;  %v616_v43 = vpop.f32.mrf.mxu1 }
 0x1a6   : > { %v917_v53 = vadd.f32 %v2908_v57, %v916_v61  ;;  %v1031_v11 = vmul.f32 %v1030_v35, %v3667_v62  ;;  %v1106_v36 = vadd.f32 0.014752088, %v1105_v60  ;;  %v4166_v22 = vmul.f32 %v1381_v9, %v5080_v48  ;;  %vm4169_vm10 = vmor %vm918_vm9, %vm919_vm8  ;;  %v5085_v61 = vld [vmem:[#allocation30_spill] sm:$0xff] }
 0x1a7   : > { %v1457_v29 = vadd.f32 0.05243302, %v1456_v55  ;;  %v2638_v41 = vclamps-f32 %v967_v37, 1.0  ;;  %v1974_v25 = vadd.f32 1.0, %v2636_v47  ;;  %v1497_v44 = vadd.f32 0.05243302, %v1496_v49 }
 0x1a8   : > { %5081 = vst [vmem:[#allocation41_spill] sm:$0xff] %v4166_v22  ;;  %v921_v34 = vsel %vm4169_vm10, %v2908_v57, %v917_v53  ;;  %v4176_v39 = vmul.f32 0.70710677, %v4153_v0  ;;  %v4179_v62 = vmul.f32 0.70710677, %v4157_v52  ;;  %v4182_v9 = vmul.f32 0.5, %v3986_v19 }
 0x1a9   : > { %v1535_v55 = vadd.f32 0.0036580483, %v1534_v14  ;;  %v1976_v47 = vadd.f32 1.0, %v2638_v41  ;;  %v925_v60 = vor.u32 1.1754944e-38, %v924_v42  ;;  %v1419_v35 = vadd.f32 0.18741608, %v1418_v4 }
 0x1aa   : > { %5084 = vst [vmem:[#allocation37_spill] sm:$0xff] %v4182_v9  ;;  %v2910_v56 = vpop.eup %2909  ;;  %vm923_vm11 = vcmp.eq.f32.partialorder %v922_v54, 8.507059e+37  ;;  %v4184_v49 = vadd.f32 1.0, %v1031_v11  ;;  %v1107_v57 = vmul.f32 %v1106_v36, %v3722_v18  ;;  %v2006_v33 = vmul.f32 %v1974_v25, %v5085_v61  ;;  %v5086_v37 = vld [vmem:[#allocation33_spill] sm:$0xff]  ;;  %v5087_v25 = vld [vmem:[#allocation39_spill] sm:$0xff]  ;;  %v5088_v61 = vld [vmem:[#allocation28_spill] sm:$0xff] }
 0x1ab   : > { %v2008_v53 = vmul.f32 %v1976_v47, %v5086_v37  ;;  %v926_v48 = vsel %vm923_vm11, %v925_v60, %v921_v34  ;;  %v994_v1 = vmul.f32 %v2910_v56, %v4149_v31  ;;  %v1458_v19 = vmul.f32 %v1457_v29, %v4058_v26  ;;  %v5090_v9 = vld [vmem:[#allocation45_spill] sm:$0xff] }
 0x1ac   : > { %v1498_v14 = vmul.f32 %v1497_v44, %v4072_v17  ;;  %v1570_v4 = vmul.f32 %v4176_v39, %v4176_v39  ;;  %v1610_v42 = vmul.f32 %v4179_v62, %v4179_v62  ;;  %v1536_v54 = vmul.f32 %v1535_v55, %v4119_v7 }
 0x1ad   : > { %v2052_v11 = vpack.c.bf16 %v2008_v53, %v2006_v33  ;;  %v995_v36 = vsub.f32 1.0, %v994_v1  ;;  %v4198_v41 = vadd.f32 %v567_v59, %v3537_v10  ;;  %v927_v34 = vmul.f32 %v926_v48, %v5087_v25 }
 0x1ae   : > { %v1004_v47 = vand.u32 2147483648, %v4149_v31  ;;  %2911 = vrcp.f32 %v4184_v49  ;;  %v1108_v29 = vadd.f32 0.112945676, %v1107_v57  ;;  %vm999_vm12 = vweird.f32 %v2910_v56 }
 0x1af   : > { %2207 = vmatmul.bf16.gmra.mxu2 %v2052_v11  ;;  %v996_v44 = vmul.f32 %v2910_v56, %v995_v36  ;;  %v1002_v60 = vand.u32 2147483647, %v4149_v31  ;;  %v1063_v37 = vmul.f32 3.8918573e-05, %v5088_v61  ;;  %v1420_v55 = vmul.f32 %v1419_v35, %v4029_v5 }
 0x1b0   : > { %v4207_v33 = vmul.f32 0.5, %v4001_v27  ;;  %v4209_v59 = vmin.f32 %v1570_v4, 16.0  ;;  %v4211_v53 = vmin.f32 %v1610_v42, 16.0  ;;  %v1459_v48 = vadd.f32 0.18741608, %v1458_v19 }
 0x1b1   : > { %v997_v1 = vadd.f32 %v2910_v56, %v996_v44  ;;  %vm998_vm13 = vweird.f32 %v4149_v31  ;;  %v4215_v57 = vmul.f32 0.70710677, %v4198_v41  ;;  %v1499_v11 = vadd.f32 0.18741608, %v1498_v14 }
 0x1b2   : > { %5089 = vst [vmem:[#allocation44_spill] sm:$0xff] %v4207_v33  ;;  %v2637_v36 = vclamps-f32 %v927_v34, 1.0  ;;  %vm1000_vm14 = vmor %vm998_vm13, %vm999_vm12  ;;  %v1005_v25 = vor.u32 1.1754944e-38, %v1004_v47  ;;  %v1109_v35 = vmul.f32 %v1108_v29, %v3722_v18  ;;  %v1537_v27 = vadd.f32 0.05243302, %v1536_v54 }
 0x1b3   : > { %v1001_v33 = vsel %vm1000_vm14, %v2910_v56, %v997_v1  ;;  %vm1003_vm15 = vcmp.eq.f32.partialorder %v1002_v60, 8.507059e+37  ;;  %v1064_v4 = vadd.f32 0.001143296, %v1063_v37  ;;  %v1572_v19 = vmul.f32 2.1237322e-06, %v4209_v59 }
 0x1b4   : > { %v2912_v42 = vpop.eup %2911  ;;  %v1006_v22 = vsel %vm1003_vm15, %v1005_v25, %v1001_v33  ;;  %v1612_v31 = vmul.f32 2.1237322e-06, %v4211_v53  ;;  %v1110_v44 = vadd.f32 0.4994258, %v1109_v35  ;;  %v1650_v14 = vmul.f32 %v4215_v57, %v4215_v57 }
 0x1b5   : > { %v1007_v40 = vmul.f32 %v1006_v22, %v5090_v9  ;;  %v4224_v34 = vadd.f32 %v616_v43, %v3539_v12  ;;  %v1034_v54 = vmul.f32 %v2912_v42, %v4184_v49  ;;  %v1421_v56 = vadd.f32 1.1283791, %v1420_v55 }
 0x1b6   : > { %v1460_v47 = vmul.f32 %v1459_v48, %v4058_v26  ;;  %v1975_v29 = vadd.f32 1.0, %v2637_v36  ;;  %v1111_v60 = vmul.f32 %v1110_v44, %v3722_v18  ;;  %v1500_v37 = vmul.f32 %v1499_v11, %v4072_v17  ;;  %v5091_v18 = vld [vmem:[#allocation32_spill] sm:$0xff]  ;;  %v5092_v11 = vld [vmem:[#allocation34_spill] sm:$0xff] }
 0x1b7   : > { %v2639_v33 = vclamps-f32 %v1007_v40, 1.0  ;;  %v1035_v1 = vsub.f32 1.0, %v1034_v54  ;;  %v1065_v22 = vmul.f32 %v1064_v4, %v5088_v61  ;;  %v1538_v9 = vmul.f32 %v1537_v27, %v4119_v7 }
 0x1b8   : > { %v1573_v25 = vadd.f32 0.00028619796, %v1572_v19  ;;  %v1613_v35 = vadd.f32 0.00028619796, %v1612_v31  ;;  %v4232_v43 = vadd.f32 1.0, %v1111_v60  ;;  %v4234_v3 = vmin.f32 %v1650_v14, 16.0 }
 0x1b9   : > { %v1977_v2 = vadd.f32 1.0, %v2639_v33  ;;  %v4237_v55 = vmul.f32 0.70710677, %v4224_v34  ;;  %v1036_v48 = vmul.f32 %v2912_v42, %v1035_v1  ;;  %v2007_v36 = vmul.f32 %v1975_v29, %v5091_v18  ;;  %v5097_v1 = vld [vmem:[#allocation47_spill] sm:$0xff] }
 0x1ba   : > { %vm1039_vm0 = vweird.f32 %v2912_v42  ;;  %v1042_v40 = vand.u32 2147483647, %v4184_v49  ;;  %2913 = vrcp.f32 %v4232_v43  ;;  %v1044_v19 = vand.u32 2147483648, %v4184_v49 }
 0x1bb   : > { %v2009_v27 = vmul.f32 %v1977_v2, %v5092_v11  ;;  %v1037_v4 = vadd.f32 %v2912_v42, %v1036_v48  ;;  %v1066_v31 = vadd.f32 0.014752088, %v1065_v22  ;;  %v1461_v44 = vadd.f32 1.1283791, %v1460_v47 }
 0x1bc   : > { %v4245_v14 = vmul.f32 0.5, %v4017_v30  ;;  %v4248_v54 = vmul.f32 0.5, %v4066_v16  ;;  %vm1038_vm1 = vweird.f32 %v4184_v49  ;;  %v4252_v29 = vmul.f32 %v1421_v56, %v3998_v32 }
 0x1bd   : > { %v2053_v60 = vpack.c.bf16 %v2009_v27, %v2007_v36  ;;  %v1574_v33 = vmul.f32 %v1573_v25, %v4209_v59  ;;  %v1614_v2 = vmul.f32 %v1613_v35, %v4211_v53  ;;  %vm4257_vm2 = vmor %vm1038_vm1, %vm1039_vm0  ;;  %v1501_v30 = vadd.f32 1.1283791, %v1500_v37 }
 0x1be   : > { %5093 = vst [vmem:[#allocation49_spill] sm:$0xff] %v4245_v14  ;;  %v1539_v47 = vadd.f32 0.18741608, %v1538_v9  ;;  %v1690_v16 = vmul.f32 %v4237_v55, %v4237_v55  ;;  %v1041_v49 = vsel %vm4257_vm2, %v2912_v42, %v1037_v4  ;;  %v1652_v32 = vmul.f32 2.1237322e-06, %v4234_v3 }
 0x1bf   : > { %5094 = vst [vmem:[#allocation30_spill] sm:$0xff] %v4248_v54  ;;  %2256 = vmatmul.bf16.gmra.mxu3 %v2053_v60  ;;  %vm1043_vm3 = vcmp.eq.f32.partialorder %v1042_v40, 8.507059e+37  ;;  %v1045_v56 = vor.u32 1.1754944e-38, %v1044_v19  ;;  %v1067_v22 = vmul.f32 %v1066_v31, %v5088_v61  ;;  %v4268_v35 = vmul.f32 %v1461_v44, %v4023_v8 }
 0x1c0   : > { %v2914_v25 = vpop.eup %2913  ;;  %v1143_v37 = vmul.f32 3.8918573e-05, %v3741_v13  ;;  %v1183_v9 = vmul.f32 3.8918573e-05, %v3762_v46  ;;  %v1263_v48 = vmul.f32 3.8918573e-05, %v3819_v21  ;;  %v1540_v40 = vmul.f32 %v1539_v47, %v4119_v7 }
 0x1c1   : > { %v1575_v18 = vadd.f32 0.0036580483, %v1574_v33  ;;  %v1615_v36 = vadd.f32 0.0036580483, %v1614_v2  ;;  %v1046_v42 = vsel %vm1043_vm3, %v1045_v56, %v1041_v49  ;;  %v1114_v11 = vmul.f32 %v2914_v25, %v4232_v43 }
 0x1c2   : > { %v4275_v27 = vmin.f32 %v1690_v16, 16.0  ;;  %v1068_v4 = vadd.f32 0.112945676, %v1067_v22  ;;  %v1144_v19 = vadd.f32 0.001143296, %v1143_v37  ;;  %v1124_v44 = vand.u32 2147483648, %v4232_v43 }
 0x1c3   : > { %v1653_v31 = vadd.f32 0.00028619796, %v1652_v32  ;;  %v1115_v8 = vsub.f32 1.0, %v1114_v11  ;;  %v1184_v60 = vadd.f32 0.001143296, %v1183_v9  ;;  %v1047_v54 = vmul.f32 %v1046_v42, %v5097_v1 }
 0x1c4   : > { %v1069_v14 = vmul.f32 %v1068_v4, %v5088_v61  ;;  %v1145_v33 = vmul.f32 %v1144_v19, %v3741_v13  ;;  %v1264_v2 = vadd.f32 0.001143296, %v1263_v48  ;;  %vm1119_vm4 = vweird.f32 %v2914_v25 }
 0x1c5   : > { %v1116_v49 = vmul.f32 %v2914_v25, %v1115_v8  ;;  %v1122_v47 = vand.u32 2147483647, %v4232_v43  ;;  %v1185_v16 = vmul.f32 %v1184_v60, %v3762_v46  ;;  %v4284_v56 = vmul.f32 %v1501_v30, %v4033_v23 }
 0x1c6   : > { %v1692_v32 = vmul.f32 2.1237322e-06, %v4275_v27  ;;  %v1070_v22 = vadd.f32 0.4994258, %v1069_v14  ;;  %v1146_v37 = vadd.f32 0.014752088, %v1145_v33  ;;  %vm1118_vm5 = vweird.f32 %v4232_v43 }
 0x1c7   : > { %v1117_v9 = vadd.f32 %v2914_v25, %v1116_v49  ;;  %v1186_v42 = vadd.f32 0.014752088, %v1185_v16  ;;  %v1265_v11 = vmul.f32 %v1264_v2, %v3819_v21  ;;  %v2640_v48 = vclamps-f32 %v1047_v54, 1.0  ;;  %vm1120_vm6 = vmor %vm1118_vm5, %vm1119_vm4 }
 0x1c8   : > { %v1125_v4 = vor.u32 1.1754944e-38, %v1124_v44  ;;  %v1071_v19 = vmul.f32 %v1070_v22, %v5088_v61  ;;  %v1147_v8 = vmul.f32 %v1146_v37, %v3741_v13  ;;  %v1541_v60 = vadd.f32 1.1283791, %v1540_v40 }
 0x1c9   : > { %v1121_v23 = vsel %vm1120_vm6, %v2914_v25, %v1117_v9  ;;  %vm1123_vm7 = vcmp.eq.f32.partialorder %v1122_v47, 8.507059e+37  ;;  %v1187_v30 = vmul.f32 %v1186_v42, %v3762_v46  ;;  %v1654_v14 = vmul.f32 %v1653_v31, %v4234_v3 }
 0x1ca   : > { %v1126_v1 = vsel %vm1123_vm7, %v1125_v4, %v1121_v23  ;;  %v4293_v33 = vadd.f32 1.0, %v1071_v19  ;;  %v1148_v43 = vadd.f32 0.112945676, %v1147_v8  ;;  %v1576_v2 = vmul.f32 %v1575_v18, %v4209_v59  ;;  %v5099_v19 = vld [vmem:[#allocation35_spill] sm:$0xff]  ;;  %v5100_v23 = vld [vmem:[#allocation38_spill] sm:$0xff] }
 0x1cb   : > { %v1127_v54 = vmul.f32 %v1126_v1, %v4044_v15  ;;  %v1188_v44 = vadd.f32 0.112945676, %v1187_v30  ;;  %v1266_v49 = vadd.f32 0.014752088, %v1265_v11  ;;  %v1616_v61 = vmul.f32 %v1615_v36, %v4211_v53 }
 0x1cc   : > { %v1693_v16 = vadd.f32 0.00028619796, %v1692_v32  ;;  %v1978_v40 = vadd.f32 1.0, %v2640_v48  ;;  %2915 = vrcp.f32 %v4293_v33  ;;  %v4300_v25 = vmul.f32 %v1541_v60, %v4085_v20  ;;  %v569_v60 = vpop.f32.mrf.mxu0 }
 0x1cd   : > { %v2642_v31 = vclamps-f32 %v1127_v54, 1.0  ;;  %v1149_v47 = vmul.f32 %v1148_v43, %v3741_v13  ;;  %v1189_v22 = vmul.f32 %v1188_v44, %v3762_v46  ;;  %v4305_v18 = vmul.f32 0.5, %v4153_v0  ;;  %v618_v0 = vpop.f32.mrf.mxu1 }
 0x1ce   : > { %v4308_v15 = vmul.f32 0.5, %v4157_v52  ;;  %v1655_v37 = vadd.f32 0.0036580483, %v1654_v14  ;;  %v1223_v36 = vmul.f32 3.8918573e-05, %v3782_v50  ;;  %v1267_v20 = vmul.f32 %v1266_v49, %v3819_v21 }
 0x1cf   : > { %v1980_v32 = vadd.f32 1.0, %v2642_v31  ;;  %v1150_v9 = vadd.f32 0.4994258, %v1149_v47  ;;  %v1190_v42 = vadd.f32 0.4994258, %v1189_v22  ;;  %v1694_v4 = vmul.f32 %v1693_v16, %v4275_v27 }
 0x1d0   : > { %5098 = vst [vmem:[#allocation33_spill] sm:$0xff] %v4308_v15  ;;  %v1577_v11 = vadd.f32 0.05243302, %v1576_v2  ;;  %v1617_v48 = vadd.f32 0.05243302, %v1616_v61  ;;  %v2010_v8 = vmul.f32 %v1978_v40, %v5099_v19  ;;  %v4317_v14 = vadd.f32 %v569_v60, %v3537_v10 }
 0x1d1   : > { %v2012_v30 = vmul.f32 %v1980_v32, %v5100_v23  ;;  %v1151_v52 = vmul.f32 %v1150_v9, %v3741_v13  ;;  %v4320_v1 = vadd.f32 %v618_v0, %v3539_v12  ;;  %v4323_v2 = vmul.f32 0.5, %v4198_v41 }
 0x1d2   : > { %v2916_v43 = vpop.eup %2915  ;;  %v1656_v54 = vmul.f32 %v1655_v37, %v4234_v3  ;;  %v1191_v44 = vmul.f32 %v1190_v42, %v3762_v46  ;;  %v1224_v49 = vadd.f32 0.001143296, %v1223_v36  ;;  %v1268_v13 = vadd.f32 0.112945676, %v1267_v20 }
 0x1d3   : > { %5101 = vst [vmem:[#allocation39_spill] sm:$0xff] %v4323_v2  ;;  %v2054_v61 = vpack.c.bf16 %v2012_v30, %v2010_v8  ;;  %v1074_v16 = vmul.f32 %v2916_v43, %v4293_v33  ;;  %v4328_v40 = vadd.f32 1.0, %v1151_v52  ;;  %v1578_v31 = vmul.f32 %v1577_v11, %v4209_v59 }
 0x1d4   : > { %v1618_v47 = vmul.f32 %v1617_v48, %v4211_v53  ;;  %v1695_v22 = vadd.f32 0.0036580483, %v1694_v4  ;;  %v4333_v32 = vmul.f32 0.70710677, %v4317_v14  ;;  %v4337_v46 = vmul.f32 0.70710677, %v4320_v1 }
 0x1d5   : > { %2212 = vmatmul.bf16.gmra.mxu2 %v2054_v61  ;;  %v1075_v41 = vsub.f32 1.0, %v1074_v16  ;;  %2917 = vrcp.f32 %v4328_v40  ;;  %v1303_v37 = vmul.f32 3.8918573e-05, %v3861_v45  ;;  %v1657_v36 = vadd.f32 0.05243302, %v1656_v54 }
 0x1d6   : > { %5102 = vst [vmem:[#allocation28_spill] sm:$0xff] %v4337_v46  ;;  %v1084_v9 = vand.u32 2147483648, %v4293_v33  ;;  %v4341_v42 = vadd.f32 1.0, %v1191_v44  ;;  %v1225_v20 = vmul.f32 %v1224_v49, %v3782_v50  ;;  %vm1079_vm8 = vweird.f32 %v2916_v43  ;;  %v572_v49 = vpop.f32.mrf.mxu0 }
 0x1d7   : > { %v1076_v11 = vmul.f32 %v2916_v43, %v1075_v41  ;;  %v1730_v48 = vmul.f32 %v4333_v32, %v4333_v32  ;;  %v1269_v4 = vmul.f32 %v1268_v13, %v3819_v21  ;;  %v1579_v19 = vadd.f32 0.18741608, %v1578_v31 }
 0x1d8   : > { %v1696_v8 = vmul.f32 %v1695_v22, %v4275_v27  ;;  %v1082_v60 = vand.u32 2147483647, %v4293_v33  ;;  %2919 = vrcp.f32 %v4341_v42  ;;  %vm1078_vm9 = vweird.f32 %v4293_v33 }
 0x1d9   : > { %v1077_v0 = vadd.f32 %v2916_v43, %v1076_v11  ;;  %v1770_v23 = vmul.f32 %v4337_v46, %v4337_v46  ;;  %v1304_v30 = vadd.f32 0.001143296, %v1303_v37  ;;  %v1619_v52 = vadd.f32 0.18741608, %v1618_v47  ;;  %vm1080_vm10 = vmor %vm1078_vm9, %vm1079_vm8 }
 0x1da   : > { %v1658_v54 = vmul.f32 %v1657_v36, %v4234_v3  ;;  %v4355_v44 = vmul.f32 0.5, %v4224_v34  ;;  %v1226_v61 = vadd.f32 0.014752088, %v1225_v20  ;;  %v1085_v31 = vor.u32 1.1754944e-38, %v1084_v9 }
 0x1db   : > { %v2918_v16 = vpop.eup %2917  ;;  %v1081_v13 = vsel %vm1080_vm10, %v2916_v43, %v1077_v0  ;;  %v4357_v22 = vmin.f32 %v1730_v48, 16.0  ;;  %v1270_v41 = vadd.f32 0.4994258, %v1269_v4  ;;  %v1580_v33 = vmul.f32 %v1579_v19, %v4209_v59 }
 0x1dc   : > { %5103 = vst [vmem:[#allocation45_spill] sm:$0xff] %v4355_v44  ;;  %v1697_v11 = vadd.f32 0.05243302, %v1696_v8  ;;  %vm1083_vm11 = vcmp.eq.f32.partialorder %v1082_v60, 8.507059e+37  ;;  %v1154_v47 = vmul.f32 %v2918_v16, %v4328_v40  ;;  %v4361_v36 = vmin.f32 %v1770_v23, 16.0 }
 0x1dd   : > { %v1086_v37 = vsel %vm1083_vm11, %v1085_v31, %v1081_v13  ;;  %v4364_v34 = vadd.f32 %v572_v49, %v3537_v10  ;;  %v1305_v20 = vmul.f32 %v1304_v30, %v3861_v45  ;;  %v4370_v43 = vmul.f32 %v1619_v52, %v4211_v53  ;;  %v621_v49 = vpop.f32.mrf.mxu1 }
 0x1de   : > { %v4367_v44 = vpop.eup %2919  ;;  %v1659_v9 = vadd.f32 0.18741608, %v1658_v54  ;;  %v1155_v48 = vsub.f32 1.0, %v1154_v47  ;;  %v1227_v4 = vmul.f32 %v1226_v61, %v3782_v50  ;;  %v1162_v19 = vand.u32 2147483647, %v4328_v40 }
 0x1df   : > { %5104 = vst [vmem:[#allocation32_spill] sm:$0xff] %v4364_v34  ;;  %v1164_v8 = vand.u32 2147483648, %v4328_v40  ;;  %v1732_v60 = vmul.f32 2.1237322e-06, %v4357_v22  ;;  %v1271_v0 = vmul.f32 %v1270_v41, %v3819_v21  ;;  %v1087_v23 = vmul.f32 %v1086_v37, %v3939_v51 }
 0x1e0   : > { %v1156_v30 = vmul.f32 %v2918_v16, %v1155_v48  ;;  %vm1159_vm12 = vweird.f32 %v2918_v16  ;;  %v1194_v52 = vmul.f32 %v4367_v44, %v4341_v42  ;;  %v1698_v54 = vmul.f32 %v1697_v11, %v4275_v27 }
 0x1e1   : > { %v1772_v61 = vmul.f32 2.1237322e-06, %v4361_v36  ;;  %v4383_v13 = vmul.f32 0.70710677, %v4364_v34  ;;  %v1306_v31 = vadd.f32 0.014752088, %v1305_v20  ;;  %vm1158_vm13 = vweird.f32 %v4328_v40 }
 0x1e2   : > { %v1157_v47 = vadd.f32 %v2918_v16, %v1156_v30  ;;  %v1195_v21 = vsub.f32 1.0, %v1194_v52  ;;  %v1228_v41 = vadd.f32 0.112945676, %v1227_v4  ;;  %vm1160_vm14 = vmor %vm1158_vm13, %vm1159_vm12  ;;  %vm1163_vm15 = vcmp.eq.f32.partialorder %v1162_v19, 8.507059e+37 }
 0x1e3   : > { %v1165_v51 = vor.u32 1.1754944e-38, %v1164_v8  ;;  %v1733_v37 = vadd.f32 0.00028619796, %v1732_v60  ;;  %v4387_v48 = vadd.f32 %v621_v49, %v3539_v12  ;;  %v2641_v2 = vclamps-f32 %v1087_v23, 1.0 }
 0x1e4   : > { %v1161_v11 = vsel %vm1160_vm14, %v2918_v16, %v1157_v47  ;;  %v1196_v15 = vmul.f32 %v4367_v44, %v1195_v21  ;;  %v4390_v46 = vadd.f32 1.0, %v1271_v0  ;;  %v1773_v20 = vadd.f32 0.00028619796, %v1772_v61 }
 0x1e5   : > { %5105 = vst [vmem:[#allocation34_spill] sm:$0xff] %v4387_v48  ;;  %v1166_v34 = vsel %vm1163_vm15, %v1165_v51, %v1161_v11  ;;  %v1810_v40 = vmul.f32 %v4383_v13, %v4383_v13  ;;  %vm1199_vm0 = vweird.f32 %v4367_v44  ;;  %v1204_v8 = vand.u32 2147483648, %v4341_v42 }
 0x1e6   : > { %v1167_v4 = vmul.f32 %v1166_v34, %v4070_v6  ;;  %v1197_v19 = vadd.f32 %v4367_v44, %v1196_v15  ;;  %2921 = vrcp.f32 %v4390_v46  ;;  %v1734_v16 = vmul.f32 %v1733_v37, %v4357_v22 }
 0x1e7   : > { %v4401_v60 = vmul.f32 0.70710677, %v4387_v48  ;;  %vm1198_vm1 = vweird.f32 %v4341_v42  ;;  %v1202_v0 = vand.u32 2147483647, %v4341_v42  ;;  %v1581_v23 = vadd.f32 1.1283791, %v1580_v33 }
 0x1e8   : > { %v2643_v30 = vclamps-f32 %v1167_v4, 1.0  ;;  %v1979_v49 = vadd.f32 1.0, %v2641_v2  ;;  %vm4405_vm2 = vmor %vm1198_vm1, %vm1199_vm0  ;;  %v1229_v15 = vmul.f32 %v1228_v41, %v3782_v50  ;;  %v1660_v34 = vmul.f32 %v1659_v9, %v4234_v3  ;;  %v5108_v41 = vld [vmem:[#allocation36_spill] sm:$0xff] }
 0x1e9   : > { %v1699_v52 = vadd.f32 0.18741608, %v1698_v54  ;;  %v1774_v61 = vmul.f32 %v1773_v20, %v4361_v36  ;;  %v1201_v47 = vsel %vm4405_vm2, %v4367_v44, %v1197_v19  ;;  %v4415_v42 = vmin.f32 %v1810_v40, 16.0  ;;  %v5109_v20 = vld [vmem:[#allocation40_spill] sm:$0xff] }
 0x1ea   : > { %v1981_v21 = vadd.f32 1.0, %v2643_v30  ;;  %v1205_v33 = vor.u32 1.1754944e-38, %v1204_v8  ;;  %v1343_v2 = vmul.f32 3.8918573e-05, %v3888_v63  ;;  %v1735_v51 = vadd.f32 0.0036580483, %v1734_v16 }
 0x1eb   : > { %v1850_v37 = vmul.f32 %v4401_v60, %v4401_v60  ;;  %vm1203_vm3 = vcmp.eq.f32.partialorder %v1202_v0, 8.507059e+37  ;;  %v1307_v9 = vmul.f32 %v1306_v31, %v3861_v45  ;;  %v2011_v11 = vmul.f32 %v1979_v49, %v5108_v41 }
 0x1ec   : > { %v2922_v54 = vpop.eup %2921  ;;  %v2013_v4 = vmul.f32 %v1981_v21, %v5109_v20  ;;  %v1206_v6 = vsel %vm1203_vm3, %v1205_v33, %v1201_v47  ;;  %v1230_v44 = vadd.f32 0.4994258, %v1229_v15  ;;  %v4424_v40 = vmul.f32 %v1581_v23, %v4176_v39 }
 0x1ed   : > { %v1621_v19 = vadd.f32 1.1283791, %v4370_v43  ;;  %v1775_v8 = vadd.f32 0.0036580483, %v1774_v61  ;;  %v1274_v16 = vmul.f32 %v2922_v54, %v4390_v46  ;;  %v1661_v30 = vadd.f32 1.1283791, %v1660_v34 }
 0x1ee   : > { %v1700_v0 = vmul.f32 %v1699_v52, %v4275_v27  ;;  %v2055_v48 = vpack.c.bf16 %v2013_v4, %v2011_v11  ;;  %v1812_v31 = vmul.f32 2.1237322e-06, %v4415_v42  ;;  %v1736_v49 = vmul.f32 %v1735_v51, %v4357_v22 }
 0x1ef   : > { %v4431_v41 = vmin.f32 %v1850_v37, 16.0  ;;  %v1207_v15 = vmul.f32 %v1206_v6, %v4075_v38  ;;  %v1275_v47 = vsub.f32 1.0, %v1274_v16  ;;  %v1284_v39 = vand.u32 2147483648, %v4390_v46 }
 0x1f0   : > { %2261 = vmatmul.bf16.gmra.mxu3 %v2055_v48  ;;  %v1231_v43 = vmul.f32 %v1230_v44, %v3782_v50  ;;  %v1308_v23 = vadd.f32 0.112945676, %v1307_v9  ;;  %v1344_v61 = vadd.f32 0.001143296, %v1343_v2  ;;  %v1776_v34 = vmul.f32 %v1775_v8, %v4361_v36 }
 0x1f1   : > { %v1276_v52 = vmul.f32 %v2922_v54, %v1275_v47  ;;  %vm1279_vm4 = vweird.f32 %v2922_v54  ;;  %v1282_v21 = vand.u32 2147483647, %v4390_v46  ;;  %v1423_v48 = vmul.f32 3.8918573e-05, %v4029_v5 }
 0x1f2   : > { %v4438_v33 = vadd.f32 1.0, %v1231_v43  ;;  %v1309_v51 = vmul.f32 %v1308_v23, %v3861_v45  ;;  %v1345_v38 = vmul.f32 %v1344_v61, %v3888_v63  ;;  %v1813_v37 = vadd.f32 0.00028619796, %v1812_v31 }
 0x1f3   : > { %v1852_v11 = vmul.f32 2.1237322e-06, %v4431_v41  ;;  %v1277_v50 = vadd.f32 %v2922_v54, %v1276_v52  ;;  %vm1278_vm5 = vweird.f32 %v4390_v46  ;;  %v1737_v2 = vadd.f32 0.05243302, %v1736_v49 }
 0x1f4   : > { %v2644_v9 = vclamps-f32 %v1207_v15, 1.0  ;;  %vm1280_vm6 = vmor %vm1278_vm5, %vm1279_vm4  ;;  %v1285_v20 = vor.u32 1.1754944e-38, %v1284_v39  ;;  %2923 = vrcp.f32 %v4438_v33  ;;  %v1701_v4 = vadd.f32 1.1283791, %v1700_v0 }
 0x1f5   : > { %v1281_v6 = vsel %vm1280_vm6, %v2922_v54, %v1277_v50  ;;  %vm1283_vm7 = vcmp.eq.f32.partialorder %v1282_v21, 8.507059e+37  ;;  %v1310_v44 = vadd.f32 0.4994258, %v1309_v51  ;;  %v4447_v8 = vmul.f32 %v1621_v19, %v4179_v62 }
 0x1f6   : > { %v1286_v16 = vsel %vm1283_vm7, %v1285_v20, %v1281_v6  ;;  %v1346_v31 = vadd.f32 0.014752088, %v1345_v38  ;;  %v1424_v47 = vadd.f32 0.001143296, %v1423_v48  ;;  %v1777_v43 = vadd.f32 0.05243302, %v1776_v34 }
 0x1f7   : > { %v1814_v23 = vmul.f32 %v1813_v37, %v4415_v42  ;;  %v1287_v46 = vmul.f32 %v1286_v16, %v4088_v24  ;;  %v1311_v49 = vmul.f32 %v1310_v44, %v3861_v45  ;;  %v1738_v15 = vmul.f32 %v1737_v2, %v4357_v22  ;;  %v5111_v2 = vld [vmem:[#allocation46_spill] sm:$0xff]  ;;  %v623_v16 = vpop.f32.mrf.mxu1 }
 0x1f8   : > { %v1853_v39 = vadd.f32 0.00028619796, %v1852_v11  ;;  %v1982_v0 = vadd.f32 1.0, %v2644_v9  ;;  %v1347_v54 = vmul.f32 %v1346_v31, %v3888_v63  ;;  %v4455_v61 = vmul.f32 %v1661_v30, %v4215_v57 }
 0x1f9   : > { %v4458_v62 = vmul.f32 %v1701_v4, %v4237_v55  ;;  %v2646_v19 = vclamps-f32 %v1287_v46, 1.0  ;;  %v4460_v34 = vadd.f32 1.0, %v1311_v49  ;;  %v4463_v24 = vmul.f32 0.5, %v4317_v14  ;;  %v574_v55 = vpop.f32.mrf.mxu0  ;;  %v5110_v14 = vld [vmem:[#allocation42_spill] sm:$0xff] }
 0x1fa   : > { %v2924_v52 = vpop.eup %2923  ;;  %v4466_v45 = vmul.f32 0.5, %v4320_v1  ;;  %v1348_v21 = vadd.f32 0.112945676, %v1347_v54  ;;  %v1425_v51 = vmul.f32 %v1424_v47, %v4029_v5  ;;  %v1778_v38 = vmul.f32 %v1777_v43, %v4361_v36 }
 0x1fb   : > { %v1984_v57 = vadd.f32 1.0, %v2646_v19  ;;  %v1234_v30 = vmul.f32 %v2924_v52, %v4438_v33  ;;  %2925 = vrcp.f32 %v4460_v34  ;;  %v1739_v48 = vadd.f32 0.18741608, %v1738_v15 }
 0x1fc   : > { %v1815_v37 = vadd.f32 0.0036580483, %v1814_v23  ;;  %v1854_v11 = vmul.f32 %v1853_v39, %v4431_v41  ;;  %v2014_v50 = vmul.f32 %v1982_v0, %v5110_v14  ;;  %v1242_v20 = vand.u32 2147483647, %v4438_v33 }
 0x1fd   : > { %v2016_v1 = vmul.f32 %v1984_v57, %v5111_v2  ;;  %v1235_v9 = vsub.f32 1.0, %v1234_v30  ;;  %v1349_v4 = vmul.f32 %v1348_v21, %v3888_v63  ;;  %v1244_v6 = vand.u32 2147483648, %v4438_v33 }
 0x1fe   : > { %v4479_v44 = vadd.f32 %v574_v55, %v3537_v10  ;;  %v1426_v31 = vadd.f32 0.014752088, %v1425_v51  ;;  %v1383_v47 = vmul.f32 3.8918573e-05, %v3923_v28  ;;  %vm1239_vm8 = vweird.f32 %v2924_v52 }
 0x1ff   : > { %v2056_v43 = vpack.c.bf16 %v2016_v1, %v2014_v50  ;;  %v1236_v23 = vmul.f32 %v2924_v52, %v1235_v9  ;;  %v1350_v46 = vadd.f32 0.4994258, %v1349_v4  ;;  %v1779_v49 = vadd.f32 0.18741608, %v1778_v38 }
 0x200   : > { %v1816_v15 = vmul.f32 %v1815_v37, %v4415_v42  ;;  %v1855_v39 = vadd.f32 0.0036580483, %v1854_v11  ;;  %v1427_v0 = vmul.f32 %v1426_v31, %v4029_v5  ;;  %vm1238_vm9 = vweird.f32 %v4438_v33 }
 0x201   : > { %v2926_v54 = vpop.eup %2925  ;;  %2217 = vmatmul.bf16.gmra.mxu2 %v2056_v43  ;;  %v1237_v19 = vadd.f32 %v2924_v52, %v1236_v23  ;;  %v4486_v10 = vadd.f32 %v623_v16, %v3539_v12  ;;  %v1351_v21 = vmul.f32 %v1350_v46, %v3888_v63  ;;  %vm1240_vm10 = vmor %vm1238_vm9, %vm1239_vm8  ;;  %v1245_v51 = vor.u32 1.1754944e-38, %v1244_v6 }
 0x202   : > { %v1314_v57 = vmul.f32 %v2926_v54, %v4460_v34  ;;  %v4491_v38 = vmul.f32 0.70710677, %v4479_v44  ;;  %v1428_v30 = vadd.f32 0.112945676, %v1427_v0  ;;  %vm1243_vm11 = vcmp.eq.f32.partialorder %v1242_v20, 8.507059e+37 }
 0x203   : > { %v1241_v55 = vsel %vm1240_vm10, %v2924_v52, %v1237_v19  ;;  %v4493_v37 = vadd.f32 1.0, %v1351_v21  ;;  %v1384_v11 = vadd.f32 0.001143296, %v1383_v47  ;;  %v1740_v33 = vmul.f32 %v1739_v48, %v4357_v22 }
 0x204   : > { %v1246_v14 = vsel %vm1243_vm11, %v1245_v51, %v1241_v55  ;;  %v1315_v12 = vsub.f32 1.0, %v1314_v57  ;;  %v1429_v50 = vmul.f32 %v1428_v30, %v4029_v5  ;;  %v1322_v63 = vand.u32 2147483647, %v4460_v34 }
 0x205   : > { %v1324_v2 = vand.u32 2147483648, %v4460_v34  ;;  %v4500_v1 = vmul.f32 0.70710677, %v4486_v10  ;;  %2927 = vrcp.f32 %v4493_v37  ;;  %v1247_v52 = vmul.f32 %v1246_v14, %v4079_v58 }
 0x206   : > { %v1316_v9 = vmul.f32 %v2926_v54, %v1315_v12  ;;  %vm1319_vm12 = vweird.f32 %v2926_v54  ;;  %v1890_v48 = vmul.f32 %v4491_v38, %v4491_v38  ;;  %v1780_v20 = vmul.f32 %v1779_v49, %v4361_v36 }
 0x207   : > { %v1430_v4 = vadd.f32 0.4994258, %v1429_v50  ;;  %v1385_v6 = vmul.f32 %v1384_v11, %v3923_v28  ;;  %v1463_v16 = vmul.f32 3.8918573e-05, %v4058_v26  ;;  %v1817_v31 = vadd.f32 0.05243302, %v1816_v15 }
 0x208   : > { %v1856_v47 = vmul.f32 %v1855_v39, %v4431_v41  ;;  %v1317_v43 = vadd.f32 %v2926_v54, %v1316_v9  ;;  %vm1318_vm13 = vweird.f32 %v4460_v34  ;;  %v1325_v58 = vor.u32 1.1754944e-38, %v1324_v2  ;;  %v5112_v11 = vld [vmem:[#allocation29_spill] sm:$0xff] }
 0x209   : > { %vm1320_vm14 = vmor %vm1318_vm13, %vm1319_vm12  ;;  %v1930_v23 = vmul.f32 %v4500_v1, %v4500_v1  ;;  %v1431_v46 = vmul.f32 %v1430_v4, %v4029_v5  ;;  %v1503_v49 = vmul.f32 3.8918573e-05, %v4072_v17  ;;  %v2645_v0 = vclamps-f32 %v1247_v52, 1.0 }
 0x20a   : > { %v1321_v19 = vsel %vm1320_vm14, %v2926_v54, %v1317_v43  ;;  %vm1323_vm15 = vcmp.eq.f32.partialorder %v1322_v63, 8.507059e+37  ;;  %v4515_v21 = vmin.f32 %v1890_v48, 16.0  ;;  %v1386_v57 = vadd.f32 0.014752088, %v1385_v6 }
 0x20b   : > { %v2928_v15 = vpop.eup %2927  ;;  %v1326_v51 = vsel %vm1323_vm15, %v1325_v58, %v1321_v19  ;;  %v4517_v39 = vadd.f32 1.0, %v1431_v46  ;;  %v1464_v34 = vadd.f32 0.001143296, %v1463_v16  ;;  %v4519_v30 = vadd.f32 1.1283791, %v1740_v33  ;;  %v5113_v46 = vld [vmem:[#allocation43_spill] sm:$0xff] }
 0x20c   : > { %v4521_v55 = vadd.f32 1.1283791, %v1780_v20  ;;  %v1327_v14 = vmul.f32 %v1326_v51, %v5112_v11  ;;  %v1354_v5 = vmul.f32 %v2928_v15, %v4493_v37  ;;  %v4526_v12 = vmul.f32 %v1817_v31, %v4415_v42 }
 0x20d   : > { %v4528_v54 = vadd.f32 0.05243302, %v1856_v47  ;;  %2929 = vrcp.f32 %v4517_v39  ;;  %v1504_v50 = vadd.f32 0.001143296, %v1503_v49  ;;  %v1983_v2 = vadd.f32 1.0, %v2645_v0  ;;  %v5114_v0 = vld [vmem:[#allocation48_spill] sm:$0xff] }
 0x20e   : > { %v2647_v63 = vclamps-f32 %v1327_v14, 1.0  ;;  %v1355_v52 = vsub.f32 1.0, %v1354_v5  ;;  %v1364_v33 = vand.u32 2147483648, %v4493_v37  ;;  %v4533_v9 = vmul.f32 2.1237322e-06, %v4515_v21 }
 0x20f   : > { %v4535_v48 = vmin.f32 %v1930_v23, 16.0  ;;  %v1387_v20 = vmul.f32 %v1386_v57, %v3923_v28  ;;  %v1465_v4 = vmul.f32 %v1464_v34, %v4058_v26  ;;  %vm1359_vm0 = vweird.f32 %v2928_v15 }
 0x210   : > { %v1985_v6 = vadd.f32 1.0, %v2647_v63  ;;  %v1356_v16 = vmul.f32 %v2928_v15, %v1355_v52  ;;  %v1362_v31 = vand.u32 2147483647, %v4493_v37  ;;  %vm1358_vm1 = vweird.f32 %v4493_v37 }
 0x211   : > { %v1388_v47 = vadd.f32 0.112945676, %v1387_v20  ;;  %v1466_v43 = vadd.f32 0.014752088, %v1465_v4  ;;  %v1505_v58 = vmul.f32 %v1504_v50, %v4072_v17  ;;  %v2015_v49 = vmul.f32 %v1983_v2, %v5113_v46  ;;  %vm1360_vm2 = vmor %vm1358_vm1, %vm1359_vm0  ;;  %v5115_v4 = vld [vmem:[#allocation31_spill] sm:$0xff] }
 0x212   : > { %v2017_v23 = vmul.f32 %v1985_v6, %v5114_v0  ;;  %v1357_v19 = vadd.f32 %v2928_v15, %v1356_v16  ;;  %v1365_v51 = vor.u32 1.1754944e-38, %v1364_v33  ;;  %v1583_v5 = vmul.f32 3.8918573e-05, %v4209_v59 }
 0x213   : > { %v2930_v57 = vpop.eup %2929  ;;  %v1389_v34 = vmul.f32 %v1388_v47, %v3923_v28  ;;  %v1467_v11 = vmul.f32 %v1466_v43, %v4058_v26  ;;  %v1506_v14 = vadd.f32 0.014752088, %v1505_v58  ;;  %vm1363_vm3 = vcmp.eq.f32.partialorder %v1362_v31, 8.507059e+37 }
 0x214   : > { %v2057_v37 = vpack.c.bf16 %v2017_v23, %v2015_v49  ;;  %v1361_v63 = vsel %vm1360_vm2, %v2928_v15, %v1357_v19  ;;  %v1434_v50 = vmul.f32 %v2930_v57, %v4517_v39  ;;  %v1442_v2 = vand.u32 2147483647, %v4517_v39 }
 0x215   : > { %v1366_v52 = vsel %vm1363_vm3, %v1365_v51, %v1361_v63  ;;  %v1444_v20 = vand.u32 2147483648, %v4517_v39  ;;  %v1390_v33 = vadd.f32 0.4994258, %v1389_v34  ;;  %v1468_v47 = vadd.f32 0.112945676, %v1467_v11 }
 0x216   : > { %2266 = vmatmul.bf16.gmra.mxu3 %v2057_v37  ;;  %v1367_v6 = vmul.f32 %v1366_v52, %v5115_v4  ;;  %v1435_v16 = vsub.f32 1.0, %v1434_v50  ;;  %v1507_v43 = vmul.f32 %v1506_v14, %v4072_v17  ;;  %vm1439_vm4 = vweird.f32 %v2930_v57 }
 0x217   : > { %v1391_v58 = vmul.f32 %v1390_v33, %v3923_v28  ;;  %v1584_v15 = vadd.f32 0.001143296, %v1583_v5  ;;  %v1543_v31 = vmul.f32 3.8918573e-05, %v4119_v7  ;;  %v1469_v49 = vmul.f32 %v1468_v47, %v4058_v26 }
 0x218   : > { %v1436_v46 = vmul.f32 %v2930_v57, %v1435_v16  ;;  %v1508_v0 = vadd.f32 0.112945676, %v1507_v43  ;;  %v1623_v23 = vmul.f32 3.8918573e-05, %v4211_v53  ;;  %v2648_v19 = vclamps-f32 %v1367_v6, 1.0 }
 0x219   : > { %vm1438_vm5 = vweird.f32 %v4517_v39  ;;  %v4557_v51 = vadd.f32 1.0, %v1391_v58  ;;  %v1585_v34 = vmul.f32 %v1584_v15, %v4209_v59  ;;  %v1470_v14 = vadd.f32 0.4994258, %v1469_v49 }
 0x21a   : > { %v1437_v11 = vadd.f32 %v2930_v57, %v1436_v46  ;;  %v1509_v28 = vmul.f32 %v1508_v0, %v4072_v17  ;;  %v1544_v5 = vadd.f32 0.001143296, %v1543_v31  ;;  %v1932_v37 = vmul.f32 2.1237322e-06, %v4535_v48  ;;  %vm1440_vm6 = vmor %vm1438_vm5, %vm1439_vm4 }
 0x21b   : > { %vm1443_vm7 = vcmp.eq.f32.partialorder %v1442_v2, 8.507059e+37  ;;  %v1445_v63 = vor.u32 1.1754944e-38, %v1444_v20  ;;  %2931 = vrcp.f32 %v4557_v51  ;;  %v1471_v39 = vmul.f32 %v1470_v14, %v4058_v26 }
 0x21c   : > { %v1441_v50 = vsel %vm1440_vm6, %v2930_v57, %v1437_v11  ;;  %v1510_v52 = vadd.f32 0.4994258, %v1509_v28  ;;  %v1624_v33 = vadd.f32 0.001143296, %v1623_v23  ;;  %v1986_v6 = vadd.f32 1.0, %v2648_v19  ;;  %v5116_v23 = vld [vmem:[#allocation50_spill] sm:$0xff] }
 0x21d   : > { %v1446_v4 = vsel %vm1443_vm7, %v1445_v63, %v1441_v50  ;;  %v1402_v16 = vand.u32 2147483647, %v4557_v51  ;;  %v1586_v47 = vadd.f32 0.014752088, %v1585_v34  ;;  %v4567_v58 = vadd.f32 1.0, %v1471_v39 }
 0x21e   : > { %v1447_v43 = vmul.f32 %v1446_v4, %v4252_v29  ;;  %v1511_v15 = vmul.f32 %v1510_v52, %v4072_v17  ;;  %v1545_v2 = vmul.f32 %v1544_v5, %v4119_v7  ;;  %v4573_v57 = vmul.f32 %v4519_v30, %v4333_v32 }
 0x21f   : > { %v4576_v26 = vadd.f32 0.00028619796, %v4533_v9  ;;  %v1404_v20 = vand.u32 2147483648, %v4557_v51  ;;  %v1587_v31 = vmul.f32 %v1586_v47, %v4209_v59  ;;  %v4580_v46 = vadd.f32 0.00028619796, %v1932_v37  ;;  %v5119_v37 = vld [vmem:[#allocation37_spill] sm:$0xff] }
 0x220   : > { %v2650_v29 = vclamps-f32 %v1447_v43, 1.0  ;;  %vm1398_vm8 = vweird.f32 %v4557_v51  ;;  %2933 = vrcp.f32 %v4567_v58  ;;  %v4584_v49 = vadd.f32 1.0, %v1511_v15 }
 0x221   : > { %v2932_v17 = vpop.eup %2931  ;;  %v1588_v0 = vadd.f32 0.112945676, %v1587_v31  ;;  %v1546_v32 = vadd.f32 0.014752088, %v1545_v2  ;;  %v1625_v30 = vmul.f32 %v1624_v33, %v4211_v53  ;;  %v2018_v19 = vmul.f32 %v1986_v6, %v5116_v23 }
 0x222   : > { %v1988_v9 = vadd.f32 1.0, %v2650_v29  ;;  %v1394_v34 = vmul.f32 %v2932_v17, %v4557_v51  ;;  %vm4589_vm9 = vcmp.eq.f32.partialorder %v1402_v16, 8.507059e+37  ;;  %v1405_v14 = vor.u32 1.1754944e-38, %v1404_v20  ;;  %v5122_v51 = vld [vmem:[#allocation41_spill] sm:$0xff] }
 0x223   : > { %v1482_v28 = vand.u32 2147483647, %v4567_v58  ;;  %v1484_v5 = vand.u32 2147483648, %v4567_v58  ;;  %2935 = vrcp.f32 %v4584_v49  ;;  %v1589_v39 = vmul.f32 %v1588_v0, %v4209_v59 }
 0x224   : > { %v2020_v63 = vmul.f32 %v1988_v9, %v5119_v37  ;;  %v1395_v50 = vsub.f32 1.0, %v1394_v34  ;;  %v1663_v52 = vmul.f32 3.8918573e-05, %v4234_v3  ;;  %vm1478_vm10 = vweird.f32 %v4567_v58 }
 0x225   : > { %v1547_v33 = vmul.f32 %v1546_v32, %v4119_v7  ;;  %v1626_v4 = vadd.f32 0.014752088, %v1625_v30  ;;  %v1743_v6 = vmul.f32 3.8918573e-05, %v4357_v22  ;;  %vm1399_vm11 = vweird.f32 %v2932_v17 }
 0x226   : > { %v2934_v16 = vpop.eup %2933  ;;  %v2058_v47 = vpack.c.bf16 %v2020_v63, %v2018_v19  ;;  %v1396_v43 = vmul.f32 %v2932_v17, %v1395_v50  ;;  %v1590_v15 = vadd.f32 0.4994258, %v1589_v39  ;;  %vm4603_vm12 = vcmp.eq.f32.partialorder %v1482_v28, 8.507059e+37  ;;  %vm1400_vm14 = vmor %vm1398_vm8, %vm1399_vm11 }
 0x227   : > { %v1474_v2 = vmul.f32 %v2934_v16, %v4567_v58  ;;  %v1485_v31 = vor.u32 1.1754944e-38, %v1484_v5  ;;  %v1548_v29 = vadd.f32 0.112945676, %v1547_v33  ;;  %v1627_v0 = vmul.f32 %v1626_v4, %v4211_v53 }
 0x228   : > { %2222 = vmatmul.bf16.gmra.mxu2 %v2058_v47  ;;  %v1397_v32 = vadd.f32 %v2932_v17, %v1396_v43  ;;  %vm1518_vm13 = vweird.f32 %v4584_v49  ;;  %v1522_v30 = vand.u32 2147483647, %v4584_v49  ;;  %v1524_v9 = vand.u32 2147483648, %v4584_v49 }
 0x229   : > { %v1591_v23 = vmul.f32 %v1590_v15, %v4209_v59  ;;  %v2936_v19 = vpop.eup %2935  ;;  %v1475_v34 = vsub.f32 1.0, %v1474_v2  ;;  %v1549_v28 = vmul.f32 %v1548_v29, %v4119_v7  ;;  %v1628_v5 = vadd.f32 0.112945676, %v1627_v0 }
 0x22a   : > { %v1664_v37 = vadd.f32 0.001143296, %v1663_v52  ;;  %v1401_v63 = vsel %vm1400_vm14, %v2932_v17, %v1397_v32  ;;  %vm1479_vm15 = vweird.f32 %v2934_v16  ;;  %v1514_v50 = vmul.f32 %v2936_v19, %v4584_v49 }
 0x22b   : > { %v4616_v39 = vadd.f32 1.0, %v1591_v23  ;;  %v1406_v33 = vsel %vm4589_vm9, %v1405_v14, %v1401_v63  ;;  %v1476_v4 = vmul.f32 %v2934_v16, %v1475_v34  ;;  %v1550_v59 = vadd.f32 0.4994258, %v1549_v28  ;;  %vm1480_vm1 = vmor %vm1478_vm10, %vm1479_vm15 }
 0x22c   : > { %v1629_v47 = vmul.f32 %v1628_v5, %v4211_v53  ;;  %v1407_v43 = vmul.f32 %v1406_v33, %v5122_v51  ;;  %v1515_v15 = vsub.f32 1.0, %v1514_v50  ;;  %vm4622_vm0 = vcmp.eq.f32.partialorder %v1522_v30, 8.507059e+37 }
 0x22d   : > { %2937 = vrcp.f32 %v4616_v39  ;;  %v1477_v17 = vadd.f32 %v2934_v16, %v1476_v4  ;;  %v1525_v52 = vor.u32 1.1754944e-38, %v1524_v9  ;;  %v1551_v29 = vmul.f32 %v1550_v59, %v4119_v7 }
 0x22e   : > { %v1665_v11 = vmul.f32 %v1664_v37, %v4234_v3  ;;  %v2649_v14 = vclamps-f32 %v1407_v43, 1.0  ;;  %v1516_v0 = vmul.f32 %v2936_v19, %v1515_v15  ;;  %vm1519_vm2 = vweird.f32 %v2936_v19  ;;  %v5127_v43 = vld [vmem:[#allocation51_spill] sm:$0xff] }
 0x22f   : > { %v1630_v32 = vadd.f32 0.4994258, %v1629_v47  ;;  %v1481_v30 = vsel %vm1480_vm1, %v2934_v16, %v1477_v17  ;;  %v1602_v23 = vand.u32 2147483647, %v4616_v39  ;;  %v1604_v34 = vand.u32 2147483648, %v4616_v39  ;;  %vm1520_vm3 = vmor %vm1518_vm13, %vm1519_vm2 }
 0x230   : > { %v4634_v28 = vadd.f32 1.0, %v1551_v29  ;;  %v1486_v7 = vsel %vm4603_vm12, %v1485_v31, %v1481_v30  ;;  %v1517_v9 = vadd.f32 %v2936_v19, %v1516_v0  ;;  %v1744_v37 = vadd.f32 0.001143296, %v1743_v6 }
 0x231   : > { %v1631_v5 = vmul.f32 %v1630_v32, %v4211_v53  ;;  %v1487_v58 = vmul.f32 %v1486_v7, %v4268_v35  ;;  %v1987_v63 = vadd.f32 1.0, %v2649_v14  ;;  %v1703_v16 = vmul.f32 3.8918573e-05, %v4275_v27  ;;  %v5128_v14 = vld [vmem:[#allocation44_spill] sm:$0xff] }
 0x232   : > { %2939 = vrcp.f32 %v4634_v28  ;;  %v1521_v33 = vsel %vm1520_vm3, %v2936_v19, %v1517_v9  ;;  %vm1598_vm4 = vweird.f32 %v4616_v39  ;;  %v1666_v31 = vadd.f32 0.014752088, %v1665_v11 }
 0x233   : > { %v2938_v50 = vpop.eup %2937  ;;  %v4645_v20 = vadd.f32 1.0, %v1631_v5  ;;  %v2651_v4 = vclamps-f32 %v1487_v58, 1.0  ;;  %v1526_v53 = vsel %vm4622_vm0, %v1525_v52, %v1521_v33  ;;  %vm4650_vm5 = vcmp.eq.f32.partialorder %v1602_v23, 8.507059e+37 }
 0x234   : > { %v1594_v35 = vmul.f32 %v2938_v50, %v4616_v39  ;;  %v1605_v6 = vor.u32 1.1754944e-38, %v1604_v34  ;;  %v1527_v59 = vmul.f32 %v1526_v53, %v4284_v56  ;;  %v1562_v19 = vand.u32 2147483647, %v4634_v28 }
 0x235   : > { %v1564_v47 = vand.u32 2147483648, %v4634_v28  ;;  %2941 = vrcp.f32 %v4645_v20  ;;  %v1989_v51 = vadd.f32 1.0, %v2651_v4  ;;  %v2019_v15 = vmul.f32 %v1987_v63, %v5127_v43 }
 0x236   : > { %v1595_v2 = vsub.f32 1.0, %v1594_v35  ;;  %vm1599_vm6 = vweird.f32 %v2938_v50  ;;  %v2652_v17 = vclamps-f32 %v1527_v59, 1.0  ;;  %vm1558_vm7 = vweird.f32 %v4634_v28 }
 0x237   : > { %v1644_v52 = vand.u32 2147483648, %v4645_v20  ;;  %v1667_v29 = vmul.f32 %v1666_v31, %v4234_v3  ;;  %v1745_v56 = vmul.f32 %v1744_v37, %v4357_v22  ;;  %v2021_v0 = vmul.f32 %v1989_v51, %v5128_v14  ;;  %vm1600_vm11 = vmor %vm1598_vm4, %vm1599_vm6 }
 0x238   : > { %v2940_v11 = vpop.eup %2939  ;;  %v1596_v32 = vmul.f32 %v2938_v50, %v1595_v2  ;;  %v1642_v30 = vand.u32 2147483647, %v4645_v20  ;;  %v1704_v23 = vadd.f32 0.001143296, %v1703_v16  ;;  %v1990_v34 = vadd.f32 1.0, %v2652_v17 }
 0x239   : > { %v1554_v7 = vmul.f32 %v2940_v11, %v4634_v28  ;;  %vm1559_vm8 = vweird.f32 %v2940_v11  ;;  %vm4666_vm9 = vcmp.eq.f32.partialorder %v1562_v19, 8.507059e+37  ;;  %v1565_v5 = vor.u32 1.1754944e-38, %v1564_v47 }
 0x23a   : > { %v2059_v58 = vpack.c.bf16 %v2021_v0, %v2019_v15  ;;  %v1597_v63 = vadd.f32 %v2938_v50, %v1596_v32  ;;  %vm1638_vm10 = vweird.f32 %v4645_v20  ;;  %v1668_v37 = vadd.f32 0.112945676, %v1667_v29  ;;  %vm1560_vm14 = vmor %vm1558_vm7, %vm1559_vm8 }
 0x23b   : > { %v1746_v33 = vadd.f32 0.014752088, %v1745_v56  ;;  %v2942_v31 = vpop.eup %2941  ;;  %v1555_v16 = vsub.f32 1.0, %v1554_v7  ;;  %v1645_v4 = vor.u32 1.1754944e-38, %v1644_v52  ;;  %v1705_v53 = vmul.f32 %v1704_v23, %v4275_v27 }
 0x23c   : > { %v1783_v35 = vmul.f32 3.8918573e-05, %v4361_v36  ;;  %2271 = vmatmul.bf16.gmra.mxu3 %v2059_v58  ;;  %v1601_v59 = vsel %vm1600_vm11, %v2938_v50, %v1597_v63  ;;  %v1634_v19 = vmul.f32 %v2942_v31, %v4645_v20  ;;  %vm1639_vm12 = vweird.f32 %v2942_v31 }
 0x23d   : > { %vm4677_vm13 = vcmp.eq.f32.partialorder %v1642_v30, 8.507059e+37  ;;  %v1669_v51 = vmul.f32 %v1668_v37, %v4234_v3  ;;  %v1606_v39 = vsel %vm4650_vm5, %v1605_v6, %v1601_v59  ;;  %v1556_v43 = vmul.f32 %v2940_v11, %v1555_v16  ;;  %vm1640_vm15 = vmor %vm1638_vm10, %vm1639_vm12 }
 0x23e   : > { %v1747_v15 = vmul.f32 %v1746_v33, %v4357_v22  ;;  %v1706_v2 = vadd.f32 0.014752088, %v1705_v53  ;;  %v1607_v17 = vmul.f32 %v1606_v39, %v4424_v40  ;;  %v1635_v52 = vsub.f32 1.0, %v1634_v19  ;;  %v5133_v40 = vld [vmem:[#allocation49_spill] sm:$0xff] }
 0x23f   : > { %v1670_v50 = vadd.f32 0.4994258, %v1669_v51  ;;  %v1784_v29 = vadd.f32 0.001143296, %v1783_v35  ;;  %v1557_v56 = vadd.f32 %v2940_v11, %v1556_v43  ;;  %v1823_v32 = vmul.f32 3.8918573e-05, %v4415_v42 }
 0x240   : > { %v1748_v14 = vadd.f32 0.112945676, %v1747_v15  ;;  %v1707_v0 = vmul.f32 %v1706_v2, %v4275_v27  ;;  %v2654_v30 = vclamps-f32 %v1607_v17, 1.0  ;;  %v1636_v49 = vmul.f32 %v2942_v31, %v1635_v52 }
 0x241   : > { %v1671_v6 = vmul.f32 %v1670_v50, %v4234_v3  ;;  %v1785_v23 = vmul.f32 %v1784_v29, %v4361_v36  ;;  %v2022_v7 = vmul.f32 %v1990_v34, %v5133_v40  ;;  %v1561_v58 = vsel %vm1560_vm14, %v2940_v11, %v1557_v56 }
 0x242   : > { %v1749_v63 = vmul.f32 %v1748_v14, %v4357_v22  ;;  %v1708_v37 = vadd.f32 0.112945676, %v1707_v0  ;;  %v1992_v33 = vadd.f32 1.0, %v2654_v30  ;;  %v1566_v16 = vsel %vm4666_vm9, %v1565_v5, %v1561_v58 }
 0x243   : > { %v1637_v53 = vadd.f32 %v2942_v31, %v1636_v49  ;;  %v4697_v35 = vadd.f32 1.0, %v1671_v6  ;;  %v1567_v28 = vmul.f32 %v1566_v16, %v4300_v25  ;;  %v1786_v11 = vadd.f32 0.014752088, %v1785_v23  ;;  %v5135_v49 = vld [vmem:[#allocation30_spill] sm:$0xff]  ;;  %v5136_v23 = vld [vmem:[#allocation33_spill] sm:$0xff] }
 0x244   : > { %v1750_v3 = vadd.f32 0.4994258, %v1749_v63  ;;  %v1709_v34 = vmul.f32 %v1708_v37, %v4275_v27  ;;  %v2024_v59 = vmul.f32 %v1992_v33, %v4305_v18  ;;  %v1824_v9 = vadd.f32 0.001143296, %v1823_v32 }
 0x245   : > { %v1641_v19 = vsel %vm1640_vm15, %v2942_v31, %v1637_v53  ;;  %2943 = vrcp.f32 %v4697_v35  ;;  %v1894_v5 = vmul.f32 %v4576_v26, %v4515_v21  ;;  %v1934_v25 = vmul.f32 %v4580_v46, %v4535_v48  ;;  %v5134_v31 = vld [vmem:[#allocation28_spill] sm:$0xff] }
 0x246   : > { %v2653_v51 = vclamps-f32 %v1567_v28, 1.0  ;;  %v1646_v20 = vsel %vm4677_vm13, %v1645_v4, %v1641_v19  ;;  %v2060_v39 = vpack.c.bf16 %v2024_v59, %v2022_v7  ;;  %v1751_v15 = vmul.f32 %v1750_v3, %v4357_v22 }
 0x247   : > { %v1647_v43 = vmul.f32 %v1646_v20, %v4447_v8  ;;  %v1710_v18 = vadd.f32 0.4994258, %v1709_v34  ;;  %v4716_v2 = vmul.f32 %v4521_v55, %v5134_v31  ;;  %v4719_v17 = vadd.f32 0.18741608, %v4526_v12 }
 0x248   : > { %v1991_v26 = vadd.f32 1.0, %v2653_v51  ;;  %v1787_v46 = vmul.f32 %v1786_v11, %v4361_v36  ;;  %2227 = vmatmul.bf16.gmra.mxu2 %v2060_v39  ;;  %v4722_v47 = vadd.f32 1.0, %v1751_v15  ;;  %v1825_v8 = vmul.f32 %v1824_v9, %v4415_v42 }
 0x249   : > { %v2655_v52 = vclamps-f32 %v1647_v43, 1.0  ;;  %v1711_v4 = vmul.f32 %v1710_v18, %v4275_v27  ;;  %v4728_v22 = vmul.f32 %v4528_v54, %v4431_v41  ;;  %v1895_v55 = vadd.f32 0.0036580483, %v1894_v5 }
 0x24a   : > { %v1935_v50 = vadd.f32 0.0036580483, %v1934_v25  ;;  %v1788_v29 = vadd.f32 0.112945676, %v1787_v46  ;;  %v1682_v14 = vand.u32 2147483647, %v4697_v35  ;;  %2945 = vrcp.f32 %v4722_v47 }
 0x24b   : > { %v2944_v12 = vpop.eup %2943  ;;  %v1993_v56 = vadd.f32 1.0, %v2655_v52  ;;  %v1684_v0 = vand.u32 2147483648, %v4697_v35  ;;  %v4734_v27 = vadd.f32 1.0, %v1711_v4  ;;  %v1903_v30 = vmul.f32 3.8918573e-05, %v4515_v21 }
 0x24c   : > { %v1674_v32 = vmul.f32 %v2944_v12, %v4697_v35  ;;  %v1863_v54 = vmul.f32 3.8918573e-05, %v4431_v41  ;;  %v2023_v6 = vmul.f32 %v1991_v26, %v5135_v49  ;;  %v1789_v7 = vmul.f32 %v1788_v29, %v4361_v36 }
 0x24d   : > { %v2025_v40 = vmul.f32 %v1993_v56, %v5136_v23  ;;  %v1826_v58 = vadd.f32 0.014752088, %v1825_v8  ;;  %v4742_v63 = vmul.f32 %v1895_v55, %v4515_v21  ;;  %v4745_v37 = vmul.f32 %v1935_v50, %v4535_v48 }
 0x24e   : > { %v1675_v33 = vsub.f32 1.0, %v1674_v32  ;;  %2947 = vrcp.f32 %v4734_v27  ;;  %vm1678_vm0 = vweird.f32 %v4697_v35  ;;  %vm1679_vm1 = vweird.f32 %v2944_v12 }
 0x24f   : > { %v2061_v16 = vpack.c.bf16 %v2025_v40, %v2023_v6  ;;  %v1790_v53 = vadd.f32 0.4994258, %v1789_v7  ;;  %v1827_v3 = vmul.f32 %v1826_v58, %v4415_v42  ;;  %v1904_v34 = vadd.f32 0.001143296, %v1903_v30  ;;  %vm1680_vm4 = vmor %vm1678_vm0, %vm1679_vm1 }
 0x250   : > { %v1676_v28 = vmul.f32 %v2944_v12, %v1675_v33  ;;  %v1864_v11 = vadd.f32 0.001143296, %v1863_v54  ;;  %v2946_v59 = vpop.eup %2945  ;;  %vm4750_vm2 = vcmp.eq.f32.partialorder %v1682_v14, 8.507059e+37  ;;  %v1685_v9 = vor.u32 1.1754944e-38, %v1684_v0 }
 0x251   : > { %2276 = vmatmul.bf16.gmra.mxu3 %v2061_v16  ;;  %v1762_v5 = vand.u32 2147483647, %v4722_v47  ;;  %v1791_v25 = vmul.f32 %v1790_v53, %v4361_v36  ;;  %v1754_v20 = vmul.f32 %v2946_v59, %v4722_v47  ;;  %vm1758_vm3 = vweird.f32 %v4722_v47 }
 0x252   : > { %v1677_v51 = vadd.f32 %v2944_v12, %v1676_v28  ;;  %v1828_v39 = vadd.f32 0.112945676, %v1827_v3  ;;  %v1764_v43 = vand.u32 2147483648, %v4722_v47  ;;  %v1905_v18 = vmul.f32 %v1904_v34, %v4515_v21 }
 0x253   : > { %v4762_v15 = vadd.f32 1.0, %v1791_v25  ;;  %v1943_v31 = vmul.f32 3.8918573e-05, %v4535_v48  ;;  %v1755_v46 = vsub.f32 1.0, %v1754_v20  ;;  %v1865_v4 = vmul.f32 %v1864_v11, %v4431_v41 }
 0x254   : > { %v2948_v26 = vpop.eup %2947  ;;  %v1681_v36 = vsel %vm1680_vm4, %v2944_v12, %v1677_v51  ;;  %v1829_v52 = vmul.f32 %v1828_v39, %v4415_v42  ;;  %vm4770_vm5 = vcmp.eq.f32.partialorder %v1762_v5, 8.507059e+37  ;;  %vm1759_vm6 = vweird.f32 %v2946_v59 }
 0x255   : > { %v1686_v8 = vsel %vm4750_vm2, %v1685_v9, %v1681_v36  ;;  %v1714_v55 = vmul.f32 %v2948_v26, %v4734_v27  ;;  %2949 = vrcp.f32 %v4762_v15  ;;  %v1756_v29 = vmul.f32 %v2946_v59, %v1755_v46  ;;  %vm1760_vm7 = vmor %vm1758_vm3, %vm1759_vm6 }
 0x256   : > { %v1687_v50 = vmul.f32 %v1686_v8, %v4455_v61  ;;  %v1722_v12 = vand.u32 2147483647, %v4734_v27  ;;  %v1765_v56 = vor.u32 1.1754944e-38, %v1764_v43  ;;  %v1830_v0 = vadd.f32 0.4994258, %v1829_v52  ;;  %v5141_v8 = vld [vmem:[#allocation39_spill] sm:$0xff] }
 0x257   : > { %v1715_v14 = vsub.f32 1.0, %v1714_v55  ;;  %v1906_v32 = vadd.f32 0.014752088, %v1905_v18  ;;  %v1757_v30 = vadd.f32 %v2946_v59, %v1756_v29  ;;  %v1724_v54 = vand.u32 2147483648, %v4734_v27 }
 0x258   : > { %v1866_v49 = vadd.f32 0.014752088, %v1865_v4  ;;  %v1944_v6 = vadd.f32 0.001143296, %v1943_v31  ;;  %vm1719_vm8 = vweird.f32 %v2948_v26  ;;  %v1831_v61 = vmul.f32 %v1830_v0, %v4415_v42 }
 0x259   : > { %v1716_v23 = vmul.f32 %v2948_v26, %v1715_v14  ;;  %v1907_v40 = vmul.f32 %v1906_v32, %v4515_v21  ;;  %v2656_v7 = vclamps-f32 %v1687_v50, 1.0  ;;  %v1761_v58 = vsel %vm1760_vm7, %v2946_v59, %v1757_v30 }
 0x25a   : > { %vm1718_vm9 = vweird.f32 %v4734_v27  ;;  %v1867_v33 = vmul.f32 %v1866_v49, %v4431_v41  ;;  %v1766_v53 = vsel %vm4770_vm5, %v1765_v56, %v1761_v58  ;;  %v4787_v3 = vadd.f32 1.0, %v1831_v61 }
 0x25b   : > { %v2950_v16 = vpop.eup %2949  ;;  %v1717_v28 = vadd.f32 %v2948_v26, %v1716_v23  ;;  %v1908_v47 = vadd.f32 0.112945676, %v1907_v40  ;;  %v1767_v34 = vmul.f32 %v1766_v53, %v4573_v57  ;;  %vm1720_vm10 = vmor %vm1718_vm9, %vm1719_vm8  ;;  %v1725_v11 = vor.u32 1.1754944e-38, %v1724_v54 }
 0x25c   : > { %v1794_v19 = vmul.f32 %v2950_v16, %v4762_v15  ;;  %v1945_v59 = vmul.f32 %v1944_v6, %v4535_v48  ;;  %vm1723_vm11 = vcmp.eq.f32.partialorder %v1722_v12, 8.507059e+37  ;;  %v1802_v27 = vand.u32 2147483647, %v4762_v15 }
 0x25d   : > { %v1721_v9 = vsel %vm1720_vm10, %v2948_v26, %v1717_v28  ;;  %2951 = vrcp.f32 %v4787_v3  ;;  %v2658_v5 = vclamps-f32 %v1767_v34, 1.0  ;;  %v1994_v25 = vadd.f32 1.0, %v2656_v7 }
 0x25e   : > { %v1726_v51 = vsel %vm1723_vm11, %v1725_v11, %v1721_v9  ;;  %v1795_v20 = vsub.f32 1.0, %v1794_v19  ;;  %v1804_v57 = vand.u32 2147483648, %v4762_v15  ;;  %v1909_v43 = vmul.f32 %v1908_v47, %v4515_v21  ;;  %v5144_v9 = vld [vmem:[#allocation45_spill] sm:$0xff] }
 0x25f   : > { %v1727_v39 = vmul.f32 %v1726_v51, %v4458_v62  ;;  %v1868_v18 = vadd.f32 0.112945676, %v1867_v33  ;;  %v1996_v31 = vadd.f32 1.0, %v2658_v5  ;;  %vm1799_vm12 = vweird.f32 %v2950_v16  ;;  %v2203_v51 = vpop.f32.mrf.mxu2 }
 0x260   : > { %v1796_v36 = vmul.f32 %v2950_v16, %v1795_v20  ;;  %v1946_v26 = vadd.f32 0.014752088, %v1945_v59  ;;  %v1897_v46 = vadd.f32 0.05243302, %v4742_v63  ;;  %vm1798_vm13 = vweird.f32 %v4762_v15 }
 0x261   : > { %v1910_v52 = vadd.f32 0.4994258, %v1909_v43  ;;  %v1869_v4 = vmul.f32 %v1868_v18, %v4431_v41  ;;  %v2026_v35 = vmul.f32 %v1994_v25, %v5141_v8  ;;  %v2028_v62 = vmul.f32 %v1996_v31, %v4463_v24  ;;  %vm1800_vm14 = vmor %vm1798_vm13, %vm1799_vm12 }
 0x262   : > { %v1797_v55 = vadd.f32 %v2950_v16, %v1796_v36  ;;  %v1947_v50 = vmul.f32 %v1946_v26, %v4535_v48  ;;  %v2657_v12 = vclamps-f32 %v1727_v39, 1.0  ;;  %v1805_v56 = vor.u32 1.1754944e-38, %v1804_v57 }
 0x263   : > { %v2952_v29 = vpop.eup %2951  ;;  %v1911_v14 = vmul.f32 %v1910_v52, %v4515_v21  ;;  %v1870_v0 = vadd.f32 0.4994258, %v1869_v4  ;;  %v2062_v63 = vpack.c.bf16 %v2028_v62, %v2026_v35  ;;  %vm1803_vm15 = vcmp.eq.f32.partialorder %v1802_v27, 8.507059e+37  ;;  %v2034_v62 = vld [vmem:[%s3469_s30] sm:$0xff] }
 0x264   : > { %v1801_v32 = vsel %vm1800_vm14, %v2950_v16, %v1797_v55  ;;  %v1834_v15 = vmul.f32 %v2952_v29, %v4787_v3  ;;  %v1898_v30 = vmul.f32 %v1897_v46, %v4515_v21  ;;  %v1820_v6 = vmul.f32 %v4719_v17, %v4415_v42 }
 0x265   : > { %v1806_v54 = vsel %vm1803_vm15, %v1805_v56, %v1801_v32  ;;  %v4806_v49 = vadd.f32 1.0, %v1911_v14  ;;  %v1871_v24 = vmul.f32 %v1870_v0, %v4431_v41  ;;  %2232 = vmatmul.bf16.gmra.mxu2 %v2062_v63  ;;  %v1948_v40 = vadd.f32 0.112945676, %v1947_v50 }
 0x266   : > { %v1807_v23 = vmul.f32 %v1806_v54, %v4716_v2  ;;  %v1835_v61 = vsub.f32 1.0, %v1834_v15  ;;  %v1937_v7 = vadd.f32 0.05243302, %v4745_v37  ;;  %v1995_v58 = vadd.f32 1.0, %v2657_v12  ;;  %v2035_v54 = vld [vmem:[%s3469_s30 + $0x8] sm:$0xff] }
 0x267   : > { %vm1839_vm0 = vweird.f32 %v2952_v29  ;;  %2953 = vrcp.f32 %v4806_v49  ;;  %v4814_v53 = vadd.f32 1.0, %v1871_v24  ;;  %v1949_v28 = vmul.f32 %v1948_v40, %v4535_v48 }
 0x268   : > { %v2659_v33 = vclamps-f32 %v1807_v23, 1.0  ;;  %v1836_v16 = vmul.f32 %v2952_v29, %v1835_v61  ;;  %v1859_v47 = vadd.f32 0.18741608, %v4728_v22  ;;  %v1899_v42 = vadd.f32 0.18741608, %v1898_v30  ;;  %v2205_v30 = vpop.f32.mrf.mxu2 }
 0x269   : > { %vm1838_vm1 = vweird.f32 %v4787_v3  ;;  %v1844_v2 = vand.u32 2147483648, %v4787_v3  ;;  %v1842_v37 = vand.u32 2147483647, %v4787_v3  ;;  %2955 = vrcp.f32 %v4814_v53  ;;  %v2252_v3 = vpop.f32.mrf.mxu3 }
 0x26a   : > { %v1997_v17 = vadd.f32 1.0, %v2659_v33  ;;  %v1837_v34 = vadd.f32 %v2952_v29, %v1836_v16  ;;  %v1938_v11 = vmul.f32 %v1937_v7, %v4535_v48  ;;  %vm4824_vm2 = vmor %vm1838_vm1, %vm1839_vm0  ;;  %v1950_v59 = vadd.f32 0.4994258, %v1949_v28 }
 0x26b   : > { %v1821_v22 = vadd.f32 1.1283791, %v1820_v6  ;;  %v2027_v27 = vmul.f32 %v1995_v58, %v5144_v9  ;;  %v1900_v39 = vmul.f32 %v1899_v42, %v4515_v21  ;;  %v1845_v57 = vor.u32 1.1754944e-38, %v1844_v2  ;;  %v5145_v2 = vld [vmem:[#allocation32_spill] sm:$0xff] }
 0x26c   : > { %v2029_v5 = vmul.f32 %v1997_v17, %v4466_v45  ;;  %v1841_v25 = vsel %vm4824_vm2, %v2952_v29, %v1837_v34  ;;  %v1951_v43 = vmul.f32 %v1950_v59, %v4535_v48  ;;  %v1860_v18 = vmul.f32 %v1859_v47, %v4431_v41 }
 0x26d   : > { %v2954_v20 = vpop.eup %2953  ;;  %vm1843_vm3 = vcmp.eq.f32.partialorder %v1842_v37, 8.507059e+37  ;;  %v1939_v26 = vadd.f32 0.18741608, %v1938_v11  ;;  %v2253_v52 = vadd.f32 %v2252_v3, %v2203_v51  ;;  %v1822_v8 = vmul.f32 %v1821_v22, %v4383_v13  ;;  %v2036_v3 = vld [vmem:[%s3469_s30 + $0x10] sm:$0xff] }
 0x26e   : > { %v2063_v31 = vpack.c.bf16 %v2029_v5, %v2027_v27  ;;  %v1914_v36 = vmul.f32 %v2954_v20, %v4806_v49  ;;  %v1846_v45 = vsel %vm1843_vm3, %v1845_v57, %v1841_v25  ;;  %v4836_v46 = vadd.f32 1.0, %v1951_v43 }
 0x26f   : > { %v2956_v4 = vpop.eup %2955  ;;  %v1924_v35 = vand.u32 2147483648, %v4806_v49  ;;  %v1901_v55 = vadd.f32 1.1283791, %v1900_v39  ;;  %v1847_v50 = vmul.f32 %v1846_v45, %v1822_v8  ;;  %vm1919_vm4 = vweird.f32 %v2954_v20 }
 0x270   : > { %2281 = vmatmul.bf16.gmra.mxu3 %v2063_v31  ;;  %v1915_v21 = vsub.f32 1.0, %v1914_v36  ;;  %v1874_v41 = vmul.f32 %v2956_v4, %v4814_v53  ;;  %2957 = vrcp.f32 %v4836_v46  ;;  %v1922_v12 = vand.u32 2147483647, %v4806_v49 }
 0x271   : > { %v1861_v56 = vadd.f32 1.1283791, %v1860_v18  ;;  %v1940_v13 = vmul.f32 %v1939_v26, %v4535_v48  ;;  %v2292_v0 = vadd.f32 %v2253_v52, %v2034_v62  ;;  %vm1918_vm5 = vweird.f32 %v4806_v49  ;;  %v2254_v24 = vpop.f32.mrf.mxu3 }
 0x272   : > { %v1916_v29 = vmul.f32 %v2954_v20, %v1915_v21  ;;  %v1875_v14 = vsub.f32 1.0, %v1874_v41  ;;  %v1925_v32 = vor.u32 1.1754944e-38, %v1924_v35  ;;  %v1884_v15 = vand.u32 2147483648, %v4814_v53  ;;  %vm1920_vm6 = vmor %vm1918_vm5, %vm1919_vm4  ;;  %v5146_v41 = vld [vmem:[#allocation34_spill] sm:$0xff] }
 0x273   : > { %vm1879_vm7 = vweird.f32 %v2956_v4  ;;  %v1882_v23 = vand.u32 2147483647, %v4814_v53  ;;  %2308 = vst [vmem:[%s3469_s30] sm:$0xff] %v2292_v0  ;;  %v2255_v61 = vadd.f32 %v2254_v24, %v2205_v30  ;;  %v1902_v48 = vmul.f32 %v1901_v55, %v4491_v38 }
 0x274   : > { %v1917_v63 = vadd.f32 %v2954_v20, %v1916_v29  ;;  %v1876_v6 = vmul.f32 %v2956_v4, %v1875_v14  ;;  %v2660_v40 = vclamps-f32 %v1847_v50, 1.0  ;;  %vm1923_vm8 = vcmp.eq.f32.partialorder %v1922_v12, 8.507059e+37 }
 0x275   : > { %vm1878_vm9 = vweird.f32 %v4814_v53  ;;  %v2293_v16 = vadd.f32 %v2255_v61, %v2035_v54  ;;  %v1885_v47 = vor.u32 1.1754944e-38, %v1884_v15  ;;  %v654_v17 = vmul.f32 0.5, %v5145_v2 }
 0x276   : > { %v1921_v7 = vsel %vm1920_vm6, %v2954_v20, %v1917_v63  ;;  %v2958_v49 = vpop.eup %2957  ;;  %v1877_v33 = vadd.f32 %v2956_v4, %v1876_v6  ;;  %vm1880_vm10 = vmor %vm1878_vm9, %vm1879_vm7  ;;  %v1862_v34 = vmul.f32 %v1861_v56, %v4401_v60  ;;  %vm1883_vm11 = vcmp.eq.f32.partialorder %v1882_v23, 8.507059e+37  ;;  %v2208_v60 = vpop.f32.mrf.mxu2  ;;  %v2039_v6 = vld [vmem:[%s3469_s30 + $0x28] sm:$0xff] }
 0x277   : > { %v1926_v58 = vsel %vm1923_vm8, %v1925_v32, %v1921_v7  ;;  %v1954_v42 = vmul.f32 %v2958_v49, %v4836_v46  ;;  %2309 = vst [vmem:[%s3469_s30 + $0x8] sm:$0xff] %v2293_v16  ;;  %v1998_v11 = vadd.f32 1.0, %v2660_v40  ;;  %v656_v53 = vmul.f32 0.5, %v4479_v44  ;;  %v2038_v32 = vld [vmem:[%s3469_s30 + $0x20] sm:$0xff]  ;;  %v2040_v40 = vld [vmem:[%s3469_s30 + $0x30] sm:$0xff]  ;;  %v2041_v16 = vld [vmem:[%s3469_s30 + $0x38] sm:$0xff] }
 0x278   : > { %v1927_v28 = vmul.f32 %v1926_v58, %v1902_v48  ;;  %v1881_v38 = vsel %vm1880_vm10, %v2956_v4, %v1877_v33  ;;  %v1941_v22 = vadd.f32 1.1283791, %v1940_v13  ;;  %v1962_v9 = vand.u32 2147483647, %v4836_v46 }
 0x279   : > { %v1886_v19 = vsel %vm1883_vm11, %v1885_v47, %v1881_v38  ;;  %v1955_v59 = vsub.f32 1.0, %v1954_v42  ;;  %v1964_v27 = vand.u32 2147483648, %v4836_v46  ;;  %vm1959_vm12 = vweird.f32 %v2958_v49  ;;  %v2257_v20 = vpop.f32.mrf.mxu3 }
 0x27a   : > { %v2662_v37 = vclamps-f32 %v1927_v28, 1.0  ;;  %v1887_v25 = vmul.f32 %v1886_v19, %v1862_v34  ;;  %v2258_v39 = vadd.f32 %v2257_v20, %v2208_v60  ;;  %v2030_v57 = vmul.f32 %v1998_v11, %v654_v17  ;;  %v2042_v17 = vld [vmem:[%s3469_s30 + $0x40] sm:$0xff]  ;;  %v2043_v19 = vld [vmem:[%s3469_s30 + $0x48] sm:$0xff] }
 0x27b   : > { %v1956_v51 = vmul.f32 %v2958_v49, %v1955_v59  ;;  %vm1958_vm13 = vweird.f32 %v4836_v46  ;;  %v1942_v44 = vmul.f32 %v1941_v22, %v4500_v1  ;;  %v1965_v31 = vor.u32 1.1754944e-38, %v1964_v27  ;;  %v2037_v46 = vld [vmem:[%s3469_s30 + $0x18] sm:$0xff]  ;;  %v2044_v27 = vld [vmem:[%s3469_s30 + $0x50] sm:$0xff] }
 0x27c   : > { %v2000_v5 = vadd.f32 1.0, %v2662_v37  ;;  %vm1960_vm14 = vmor %vm1958_vm13, %vm1959_vm12  ;;  %v2294_v36 = vadd.f32 %v2258_v39, %v2036_v3  ;;  %v2661_v45 = vclamps-f32 %v1887_v25, 1.0  ;;  %vm1963_vm15 = vcmp.eq.f32.partialorder %v1962_v9, 8.507059e+37  ;;  %v2045_v3 = vld [vmem:[%s3469_s30 + $0x58] sm:$0xff] }
 0x27d   : > { %v1957_v18 = vadd.f32 %v2958_v49, %v1956_v51  ;;  %v655_v50 = vmul.f32 0.5, %v5146_v41  ;;  %v657_v29 = vmul.f32 0.5, %v4486_v10  ;;  %v2049_v41 = vld [vmem:[%s3469_s30 + $0x78] sm:$0xff] }
 0x27e   : > { %v2032_v43 = vmul.f32 %v2000_v5, %v656_v53  ;;  %2310 = vst [vmem:[%s3469_s30 + $0x10] sm:$0xff] %v2294_v36  ;;  %v1999_v35 = vadd.f32 1.0, %v2661_v45  ;;  %v2210_v62 = vpop.f32.mrf.mxu2  ;;  %v2047_v45 = vld [vmem:[%s3469_s30 + $0x68] sm:$0xff] }
 0x27f   : > { %v1961_v52 = vsel %vm1960_vm14, %v2958_v49, %v1957_v18  ;;  %v2046_v18 = vld [vmem:[%s3469_s30 + $0x60] sm:$0xff] }
 0x280   : > { %v2064_v26 = vpack.c.bf16 %v2032_v43, %v2030_v57  ;;  %v1966_v4 = vsel %vm1963_vm15, %v1965_v31, %v1961_v52  ;;  %v2031_v13 = vmul.f32 %v1999_v35, %v655_v50  ;;  %v2048_v35 = vld [vmem:[%s3469_s30 + $0x70] sm:$0xff] }
 0x281   : > { %v1967_v8 = vmul.f32 %v1966_v4, %v1942_v44  ;;  %v2259_v55 = vpop.f32.mrf.mxu3 }
 0x282   : > { %2237 = vmatmul.bf16.gmra.mxu2 %v2064_v26  ;;  %v2260_v1 = vadd.f32 %v2259_v55, %v2210_v62 }
 0x283   : > { %v2663_v21 = vclamps-f32 %v1967_v8, 1.0 }
 0x284   : > { %v2295_v56 = vadd.f32 %v2260_v1, %v2037_v46 }
 0x285   : > { %v2001_v12 = vadd.f32 1.0, %v2663_v21 }
 0x286   : > { %2311 = vst [vmem:[%s3469_s30 + $0x18] sm:$0xff] %v2295_v56  ;;  %v2213_v63 = vpop.f32.mrf.mxu2 }
 0x287   : > { %v2033_v14 = vmul.f32 %v2001_v12, %v657_v29 }
 0x289   : > { %v2065_v0 = vpack.c.bf16 %v2033_v14, %v2031_v13  ;;  %v2262_v15 = vpop.f32.mrf.mxu3 }
 0x28a   : > { %v2263_v30 = vadd.f32 %v2262_v15, %v2213_v63 }
 0x28b   : > { %2286 = vmatmul.bf16.gmra.mxu3 %v2065_v0 }
 0x28c   : > { %v2296_v54 = vadd.f32 %v2263_v30, %v2038_v32 }
 0x28e   : > { %2312 = vst [vmem:[%s3469_s30 + $0x20] sm:$0xff] %v2296_v54  ;;  %v2215_v24 = vpop.f32.mrf.mxu2 }
 0x291   : > { %v2264_v10 = vpop.f32.mrf.mxu3 }
 0x292   : > { %v2265_v23 = vadd.f32 %v2264_v10, %v2215_v24 }
 0x294   : > { %v2297_v61 = vadd.f32 %v2265_v23, %v2039_v6 }
 0x296   : > { %2313 = vst [vmem:[%s3469_s30 + $0x28] sm:$0xff] %v2297_v61  ;;  %v2218_v48 = vpop.f32.mrf.mxu2 }
 0x299   : > { %v2267_v7 = vpop.f32.mrf.mxu3 }
 0x29a   : > { %v2268_v49 = vadd.f32 %v2267_v7, %v2218_v48 }
 0x29c   : > { %v2298_v58 = vadd.f32 %v2268_v49, %v2040_v40 }
 0x29e   : > { %2314 = vst [vmem:[%s3469_s30 + $0x30] sm:$0xff] %v2298_v58  ;;  %v2220_v33 = vpop.f32.mrf.mxu2 }
 0x2a1   : > { %v2269_v28 = vpop.f32.mrf.mxu3 }
 0x2a2   : > { %v2270_v47 = vadd.f32 %v2269_v28, %v2220_v33 }
 0x2a4   : > { %v2299_v42 = vadd.f32 %v2270_v47, %v2041_v16 }
 0x2a6   : > { %2315 = vst [vmem:[%s3469_s30 + $0x38] sm:$0xff] %v2299_v42 }
 0x2ab   : > { %v2223_v2 = vpop.f32.mrf.mxu2 }
 0x2b3   : > { %v2225_v11 = vpop.f32.mrf.mxu2 }
 0x2bf   : > { %v2272_v34 = vpop.f32.mrf.mxu3 }
 0x2c0   : > { %v2273_v38 = vadd.f32 %v2272_v34, %v2223_v2 }
 0x2c2   : > { %v2300_v37 = vadd.f32 %v2273_v38, %v2042_v17 }
 0x2c4   : > { %2316 = vst [vmem:[%s3469_s30 + $0x40] sm:$0xff] %v2300_v37 }
 0x2c7   : > { %v2274_v59 = vpop.f32.mrf.mxu3 }
 0x2c8   : > { %v2275_v53 = vadd.f32 %v2274_v59, %v2225_v11 }
 0x2ca   : > { %v2301_v22 = vadd.f32 %v2275_v53, %v2043_v19 }
 0x2cb   : > { %v2228_v9 = vpop.f32.mrf.mxu2 }
 0x2cc   : > { %2317 = vst [vmem:[%s3469_s30 + $0x48] sm:$0xff] %v2301_v22 }
 0x2d3   : > { %v2230_v60 = vpop.f32.mrf.mxu2 }
 0x2d4   : > { %v2277_v5 = vpop.f32.mrf.mxu3 }
 0x2d5   : > { %v2278_v25 = vadd.f32 %v2277_v5, %v2228_v9 }
 0x2d7   : > { %v2302_v51 = vadd.f32 %v2278_v25, %v2044_v27 }
 0x2d9   : > { %2318 = vst [vmem:[%s3469_s30 + $0x50] sm:$0xff] %v2302_v51 }
 0x2dc   : > { %v2279_v20 = vpop.f32.mrf.mxu3 }
 0x2dd   : > { %v2280_v39 = vadd.f32 %v2279_v20, %v2230_v60 }
 0x2df   : > { %v2303_v57 = vadd.f32 %v2280_v39, %v2045_v3 }
 0x2e1   : > { %2319 = vst [vmem:[%s3469_s30 + $0x58] sm:$0xff] %v2303_v57 }
 0x2e8   : > { %v2233_v43 = vpop.f32.mrf.mxu2 }
 0x2f0   : > { %v2235_v26 = vpop.f32.mrf.mxu2 }
 0x2f3   : > { %v2282_v44 = vpop.f32.mrf.mxu3 }
 0x2f4   : > { %v2283_v31 = vadd.f32 %v2282_v44, %v2233_v43 }
 0x2f6   : > { %v2304_v36 = vadd.f32 %v2283_v31, %v2046_v18 }
 0x2f8   : > { %2320 = vst [vmem:[%s3469_s30 + $0x60] sm:$0xff] %v2304_v36 }
 0x2fb   : > { %v2284_v52 = vpop.f32.mrf.mxu3 }
 0x2fc   : > { %v2285_v4 = vadd.f32 %v2284_v52, %v2235_v26 }
 0x2fe   : > { %v2305_v8 = vadd.f32 %v2285_v4, %v2047_v45 }
 0x300   : > { %2321 = vst [vmem:[%s3469_s30 + $0x68] sm:$0xff] %v2305_v8 }
 0x305   : > { %v2238_v21 = vpop.f32.mrf.mxu2 }
 0x30d   : > { %v2240_v1 = vpop.f32.mrf.mxu2 }
 0x30e   : > { %v2287_v62 = vpop.f32.mrf.mxu3 }
 0x30f   : > { %v2288_v46 = vadd.f32 %v2287_v62, %v2238_v21 }
 0x311   : > { %v2306_v55 = vadd.f32 %v2288_v46, %v2048_v35 }
 0x313   : > { %2322 = vst [vmem:[%s3469_s30 + $0x70] sm:$0xff] %v2306_v55 }
 0x316   : > { %v2289_v50 = vpop.f32.mrf.mxu3 }
 0x317   : > { %v2290_v29 = vadd.f32 %v2289_v50, %v2240_v1  ;;  %2327 = sbr.rel (%p2728_p8) target bundleno = 815 (0x32f), region = 64 }
 0x319   : > { %v2307_v12 = vadd.f32 %v2290_v29, %v2049_v41 }
 0x31b   : > { %2323 = vst [vmem:[%s3469_s30 + $0x78] sm:$0xff] %v2307_v12 }
 0x31c   : > { %v2328_v56 = vld [vmem:[%s3469_s30] sm:$0xff]  ;;  %v2959_v13 = vld [vmem:[%s5148_s11] ss:$0 sm:$0xff]  ;;  %v2329_v14 = vld [vmem:[%s3469_s30 + $0x8] sm:$0xff] }
 0x31d   : > { %v2330_v0 = vld [vmem:[%s3469_s30 + $0x10] sm:$0xff]  ;;  %v2331_v63 = vld [vmem:[%s3469_s30 + $0x18] sm:$0xff]  ;;  %v2348_v32 = vadd.f32 %v2959_v13, %v2328_v56  ;;  %v2349_v15 = vadd.f32 %v2959_v13, %v2329_v14  ;;  %v2332_v54 = vld [vmem:[%s3469_s30 + $0x20] sm:$0xff] }
 0x31e   : > { %v2350_v30 = vadd.f32 %v2959_v13, %v2330_v0  ;;  %v2333_v24 = vld [vmem:[%s3469_s30 + $0x28] sm:$0xff]  ;;  %v2351_v6 = vadd.f32 %v2959_v13, %v2331_v63  ;;  %v2334_v10 = vld [vmem:[%s3469_s30 + $0x30] sm:$0xff]  ;;  %v2352_v23 = vadd.f32 %v2959_v13, %v2332_v54  ;;  %v2335_v61 = vld [vmem:[%s3469_s30 + $0x38] sm:$0xff] }
 0x31f   : > { %2364 = vst [vmem:[%s3469_s30] sm:$0xff] %v2348_v32  ;;  %v2353_v48 = vadd.f32 %v2959_v13, %v2333_v24  ;;  %v2336_v40 = vld [vmem:[%s3469_s30 + $0x40] sm:$0xff]  ;;  %v2354_v7 = vadd.f32 %v2959_v13, %v2334_v10  ;;  %v2337_v49 = vld [vmem:[%s3469_s30 + $0x48] sm:$0xff]  ;;  %v2355_v58 = vadd.f32 %v2959_v13, %v2335_v61  ;;  %v2338_v33 = vld [vmem:[%s3469_s30 + $0x50] sm:$0xff] }
 0x320   : > { %2365 = vst [vmem:[%s3469_s30 + $0x8] sm:$0xff] %v2349_v15  ;;  %v2356_v16 = vadd.f32 %v2959_v13, %v2336_v40  ;;  %v2339_v28 = vld [vmem:[%s3469_s30 + $0x58] sm:$0xff]  ;;  %v2357_v47 = vadd.f32 %v2959_v13, %v2337_v49  ;;  %v2340_v42 = vld [vmem:[%s3469_s30 + $0x60] sm:$0xff]  ;;  %v2358_v2 = vadd.f32 %v2959_v13, %v2338_v33  ;;  %v2341_v17 = vld [vmem:[%s3469_s30 + $0x68] sm:$0xff] }
 0x321   : > { %2366 = vst [vmem:[%s3469_s30 + $0x10] sm:$0xff] %v2350_v30  ;;  %v2359_v34 = vadd.f32 %v2959_v13, %v2339_v28  ;;  %v2342_v38 = vld [vmem:[%s3469_s30 + $0x70] sm:$0xff]  ;;  %v2360_v37 = vadd.f32 %v2959_v13, %v2340_v42  ;;  %v2361_v19 = vadd.f32 %v2959_v13, %v2341_v17 }
 0x322   : > { %2367 = vst [vmem:[%s3469_s30 + $0x18] sm:$0xff] %v2351_v6  ;;  %v2343_v11 = vld [vmem:[%s3469_s30 + $0x78] sm:$0xff]  ;;  %v2362_v59 = vadd.f32 %v2959_v13, %v2342_v38 }
 0x323   : > { %2368 = vst [vmem:[%s3469_s30 + $0x20] sm:$0xff] %v2352_v23  ;;  %v2363_v53 = vadd.f32 %v2959_v13, %v2343_v11 }
 0x324   : > { %2369 = vst [vmem:[%s3469_s30 + $0x28] sm:$0xff] %v2353_v48 }
 0x325   : > { %2370 = vst [vmem:[%s3469_s30 + $0x30] sm:$0xff] %v2354_v7 }
 0x326   : > { %2371 = vst [vmem:[%s3469_s30 + $0x38] sm:$0xff] %v2355_v58 }
 0x327   : > { %2372 = vst [vmem:[%s3469_s30 + $0x40] sm:$0xff] %v2356_v16 }
 0x328   : > { %2373 = vst [vmem:[%s3469_s30 + $0x48] sm:$0xff] %v2357_v47 }
 0x329   : > { %2374 = vst [vmem:[%s3469_s30 + $0x50] sm:$0xff] %v2358_v2 }
 0x32a   : > { %2375 = vst [vmem:[%s3469_s30 + $0x58] sm:$0xff] %v2359_v34 }
 0x32b   : > { %2376 = vst [vmem:[%s3469_s30 + $0x60] sm:$0xff] %v2360_v37 }
 0x32c   : > { %2377 = vst [vmem:[%s3469_s30 + $0x68] sm:$0xff] %v2361_v19 }
 0x32d   : > { %2378 = vst [vmem:[%s3469_s30 + $0x70] sm:$0xff] %v2362_v59 }
 0x32e   : > { %2379 = vst [vmem:[%s3469_s30 + $0x78] sm:$0xff] %v2363_v53 }
 0x32f PF: > { %s5149_s12 = sld [smem:[#allocation19_spill]]  ;;  %s2393_s4 = sshll.u32 %s3469_s30, 4  ;;  %s2394_s4 = int_to_ptr.vmem [resolvable:$true] %s2393_s4 }
 0x330   : > { %s5151_s23 = sld [smem:[#allocation55_spill]]  ;;  %s2381_s28 = scalar_lea.sflag [#allocation4], %s3443_s16 }
 0x335   : > { %s2769_s21 = sshll.u32 %s5149_s12, 7 }
 0x336   : > { %s5152_s8 = smov %s5151_s23  ;;  %s2392_s0 = scalar_lea.hbm %s5151_s23, %s2769_s21 }
 0x337   : > { %s2395_s24 = sshll.u32 %s2392_s0, 4  ;;  %s3100_s29 = scalar_lea.hbm %s5152_s8, 256  ;;  %s2396_s24 = int_to_ptr.hbm [resolvable:$true] %s2395_s24 }
 0x338   : > { %s3094_s6 = sshra.s32 %s2396_s24, 4  ;;  %s3095_s6 = int_to_ptr.hbm [resolvable:$true] %s3094_s6 }
 0x339   : > { %s3096_s15 = scalar_lea.hbm %s3095_s6, 128  ;;  %p3101_p4 = scmp.lt.s32.totalorder %s3095_s6, %s5152_s8 }
 0x33a   : > { %p3097_p11 = scmp.ne.s32.totalorder %s3095_s6, %s3096_s15  ;;  %p3102_p6 = scmp.lt.s32.totalorder %s3100_s29, %s3096_s15 }
 0x33c   : > { %p3098_p12 = pnand %p3097_p11, %p3401_p1  ;;  %p3103_p0 = por %p3102_p6, %p3101_p4 }
 0x33e   : > { %p3099_p13 = pneg %p3098_p12 }
 0x340   : > { %p3104_p7 = pnand %p3103_p0, %p3099_p13 }
 0x342   : > { %3107 = shalt.err (!%p3104_p7)
}
 0x343   : > { %s3218_s16 = smov 128   ;;  %s3219_s7 = smov 8  }
 0x344   : > { %2778 = dma.vmem_to_hbm [thread:$0]  (%p3401_p1), %s2394_s4, 2048, %s2396_s24, %s2381_s28, %s3218_s16, %s3218_s16, %s3219_s7  }
 0x345 PF: > { %s5153_s30 = sld [smem:[#allocation21_spill]] }
 0x346   : > { %s5154_s9 = sld [smem:[#allocation16_spill]] }
 0x34b   : > { %p2798_p9 = scmp.ge.s32.totalorder %s5153_s30, 2 }
 0x34c   : > { %s2410_s1 = sand.u32 1, %s5154_s9  }
 0x34d   : > { %p2794_p3 = pnand %p2798_p9, %p3408_p2  ;;  %s2411_s25 = scalar_lea.sflag [#allocation4], %s2410_s1 }
 0x34f   : > { %p2795_p10 = pneg %p2794_p3 }
 0x351   : > { %3165 = dma.done.wait (%p2795_p10), %s2411_s25, 2048  }
 0x352   : > { %3167 = vsyncadd (%p2795_p10), %s2411_s25, 4294965248  ;;  %s27_s28 = sadd.s32 1, %s5153_s30   ;;  %s5156_s11 = sld [smem:[#allocation15_spill]] }
 0x353   : > { %p24_p5 = scmp.ge.s32.totalorder %s27_s28, 6   ;;  %s5157_s20 = sld [smem:[#allocation24_spill]] }
 0x354   : > { %s5158_s12 = sld [smem:[#allocation17_spill]]  ;;  %s5163_s18 = smov %s3174_s19 }
 0x355   : > { %s5159_s23 = sld [smem:[#allocation25_spill]]  ;;  %s5165_s21 = smov %s3186_s22 }
 0x356   : > { %s5160_s25 = sld [smem:[#allocation20_spill]]  ;;  %s5167_s24 = smov %s3202_s26 }
 0x357   : > { %s5161_s14 = sld [smem:[#allocation22_spill]] }
 0x358   : > { %s5162_s27 = sld [smem:[#allocation23_spill]]  ;;  %s5164_s19 = smov %s5156_s11 }
 0x359   :  { %26 = sbr.rel (!%p24_p5) target bundleno = 18 (0x12), region = 130 }
 0x35a   : > { %s5166_s22 = smov %s5158_s12 }
 0x35d   : > { %s5168_s26 = smov %s5161_s14 }
 0x35e   :  { %2417 = vsyncpa [#allocation3], 1 }
 0x35f   :  { %2419 = vsyncpa [#allocation3 + $0x1], 1 }
 0x360   :  { %2420 = vsyncpa [#allocation6], 1 }
 0x361   :  { %2422 = vsyncpa [#allocation6 + $0x1], 1 }
 0x362   :  { %2423 = vsyncpa [#allocation9], 1 }
 0x363   :  { %2425 = vsyncpa [#allocation9 + $0x1], 1 }
 0x364   :  { %2426 = vsyncpa [#allocation4], 1 }
 0x365   :  { %2428 = vsyncpa [#allocation4 + $0x1], 1 }

</bundles_post_ra>
